<compile_context>
chip_gen: v7x
topology: tpu7x:2x2x1
jax: 0.10.0
libtpu: 0.0.40
codegen_flags: <defaults>
</compile_context>

<pallas_src>
import functools

import jax
import jax.numpy as jnp
from jax.experimental import pallas as pl
from jax.experimental.pallas import tpu as pltpu

HIDDEN = 128      # LSTM hidden size / embedding size
FEAT_C = 512      # feature-map channels (ResNet-18 final stage)
FM_H = FM_W = 7   # feature-map spatial size (matches 128*7*7 Linear)
IN_C = 3          # image channels


def _round_up(x, m):
    return (x + m - 1) // m * m


# ----------------------------------------------------------------------------
# single fused kernel: batched frame-independent precompute + serial LSTM
# recurrence + metric_fc head.  No grid, no scratch: one invocation.
# ----------------------------------------------------------------------------
def _fused_net_kernel(x_ref, pool_all_ref, pool_x_ref, fmw_ref, fmb_ref,
                      ffcw_ref, ffcb_ref, fcw_ref, fcb_ref,
                      wfull_ref, msfc_ref, wih_ref, whh_ref, lstmb_ref,
                      mfc1w_ref, mfc1b_ref, mfc2w_ref, mfc2b_ref,
                      out_ref, *, n_frames, batch, m_pad, hidden):
    T, B = n_frames, batch

    # ---- batched precompute over ALL (T+1) frames: one big-M pass ----------
    # conv-as-matmul feature map, M=(T+1)*M_pad rows (K=8 is small but the
    # large M keeps sublane occupancy high; feeds one MXU dot instead of T+1).
    feat_all = jnp.maximum(
        jnp.dot(x_ref[...], fmw_ref[...], preferred_element_type=jnp.float32)
        + fmb_ref[...], 0.0)                                  # ((T+1)*M_pad, 512)

    # mean pooling for every (frame, batch) pair as one MXU matmul
    pooled = jnp.dot(pool_all_ref[...], feat_all,
                     preferred_element_type=jnp.float32)      # ((T+1)*B, 512)
    emb_all = (jnp.dot(pooled, ffcw_ref[...],
                       preferred_element_type=jnp.float32)
               + ffcb_ref[...])                               # ((T+1)*B, 128)

    x_inputs = emb_all[:T * B]                                # per-frame xt_input
    y_emb = emb_all[T * B:]                                   # target embedding
    y_out = jnp.tanh(
        jnp.dot(y_emb, fcw_ref[...], preferred_element_type=jnp.float32)
        + fcb_ref[...])                                       # (B, 128)

    # metric subnet, batched over all T frames:
    #   logit[t,b] = sum_{p,c} |xt_map - y_map| * W_eff + const
    feat_x = feat_all[:T * m_pad]                             # (T*M_pad, 512)
    y_map = feat_all[T * m_pad:]                              # (M_pad, 512)
    y_tiled = jnp.concatenate([y_map] * T, axis=0)            # (T*M_pad, 512)
    dw = jnp.abs(feat_x - y_tiled) * wfull_ref[...]           # (T*M_pad, 512)
    msum = jnp.dot(pool_x_ref[...], dw,
                   preferred_element_type=jnp.float32)        # (T*B, 512)
    # channel reduction on the MXU (no XLU lane-reduce); the all-ones RHS also
    # replicates the logit across all 128 lanes, so prob needs no broadcast
    # later in the recurrence.
    ones_mat = jnp.ones((FEAT_C, hidden), jnp.float32)
    logits = (jnp.dot(msum, ones_mat, preferred_element_type=jnp.float32)
              + msfc_ref[0, 0])                               # (T*B, 128), lane-const
    probs = jax.nn.sigmoid(logits)                            # (T*B, 128)

    # ---- serial LSTM recurrence (the only truly sequential part) -----------
    # Statically unrolled; two dots per step (no concatenate on the critical
    # path).  PyTorch gate order i, f, g, o.
    wih = wih_ref[...]
    whh = whh_ref[...]
    b_g = lstmb_ref[...]
    h = jnp.zeros((B, hidden), jnp.float32)
    c = jnp.zeros((B, hidden), jnp.float32)
    for t in range(T):
        xt = x_inputs[t * B:(t + 1) * B]                      # (B, 128)
        p = probs[t * B:(t + 1) * B]                          # (B, 128) lane-const
        cur = p * xt + (1.0 - p) * h
        gates = (jnp.dot(cur, wih, preferred_element_type=jnp.float32)
                 + jnp.dot(h, whh, preferred_element_type=jnp.float32) + b_g)
        i = jax.nn.sigmoid(gates[:, 0 * hidden:1 * hidden])
        f = jax.nn.sigmoid(gates[:, 1 * hidden:2 * hidden])
        g = jnp.tanh(gates[:, 2 * hidden:3 * hidden])
        o = jax.nn.sigmoid(gates[:, 3 * hidden:4 * hidden])
        c = f * c + i * g
        h = o * jnp.tanh(c)

    # ---- metric_fc head (lane-dense store; wrapper takes column 0) ----------
    z = jnp.tanh(jnp.dot(jnp.abs(h - y_out), mfc1w_ref[...],
                         preferred_element_type=jnp.float32) + mfc1b_ref[...])
    out_ref[...] = jax.nn.sigmoid(
        jnp.dot(z, mfc2w_ref[...], preferred_element_type=jnp.float32)
        + mfc2b_ref[...])


# ----------------------------------------------------------------------------
# wrapper: one-time parameter folding + a single (gridless) pallas_call
# ----------------------------------------------------------------------------
def net_forward(params, inp):
    """inp: (B, T+1, IN_C, H, W)  ->  (B, 1) probability."""
    B, tp1, C, H, W = inp.shape
    T = tp1 - 1
    HW = H * W
    M = B * HW
    M_pad = _round_up(M, 8)           # sublane-aligned rows per frame
    C_pad = max(8, _round_up(C, 8))   # pad K=3 -> 8

    # channels-last rows for every frame, stacked frame-major: ((T+1)*M_pad, C_pad)
    frames = jnp.transpose(inp, (1, 0, 3, 4, 2)).reshape(tp1, M, C)
    frames = jnp.pad(frames, ((0, 0), (0, M_pad - M), (0, C_pad - C)))
    x_all = frames.reshape(tp1 * M_pad, C_pad)

    # ---- fold parameters (all layout / algebra work done once, on host/XLA) -
    fm_w = jnp.pad(params["fm_w"], ((0, C_pad - params["fm_w"].shape[0]), (0, 0)))

    # mean-pool selection matrix for all (frame, batch) pairs; zero on padded
    # rows so padding never enters the mean.
    col = jnp.arange(tp1 * M_pad)
    col_frame = col // M_pad
    col_batch = (col % M_pad) // HW               # >= B for padded rows -> excluded
    row = jnp.arange(tp1 * B)
    row_frame = row // B
    row_batch = row % B
    pool_all = ((col_frame[None, :] == row_frame[:, None])
                & (col_batch[None, :] == row_batch[:, None])
                ).astype(jnp.float32) / HW                         # ((T+1)*B, (T+1)*M_pad)
    pool_x = pool_all[:T * B, :T * M_pad]                          # x-frames only

    # metric_subnet (1x1 conv -> NCHW flatten -> Linear(128*HW, 1)) collapsed
    # into one per-pixel weight; scaled by HW so the 1/HW pool matrix performs
    # the plain sum; tiled over batch rows and T frames; zero on padded rows.
    msf_r = params["msf_w"].reshape(HIDDEN, HW)                    # (k, p) flatten order
    w_eff = (params["msc_w"] @ msf_r).T                            # (HW, FEAT_C)
    w_rows = jnp.pad(jnp.tile(w_eff * HW, (B, 1)), ((0, M_pad - M), (0, 0)))
    w_full_all = jnp.tile(w_rows, (T, 1))                          # (T*M_pad, FEAT_C)
    msf_const = (jnp.sum(msf_r * params["msc_b"][0][:, None])
                 + params["msf_b"][0, 0]).reshape(1, 1)            # scalar -> SMEM

    # lane-dense final head: pad Linear(128, 1) to (128, 128); column 0 is real
    mfc2_w = jnp.pad(params["mfc2_w"], ((0, 0), (0, HIDDEN - 1)))
    mfc2_b = jnp.pad(params["mfc2_b"], ((0, 0), (0, HIDDEN - 1)))

    vmem = pl.BlockSpec(memory_space=pltpu.MemorySpace.VMEM)
    smem = pl.BlockSpec(memory_space=pltpu.MemorySpace.SMEM)

    out = pl.pallas_call(
        functools.partial(_fused_net_kernel, n_frames=T, batch=B,
                          m_pad=M_pad, hidden=HIDDEN),
        out_shape=jax.ShapeDtypeStruct((B, HIDDEN), jnp.float32),
        in_specs=[vmem] * 10 + [smem] + [vmem] * 7,
        out_specs=vmem,
    )(x_all, pool_all, pool_x, fm_w, params["fm_b"],
      params["ffc_w"], params["ffc_b"], params["fc_w"], params["fc_b"],
      w_full_all, msf_const, params["lstm_wih"], params["lstm_whh"],
      params["lstm_b"], params["mfc1_w"], params["mfc1_b"], mfc2_w, mfc2_b)
    return out[:, :1]


# ----------------------------------------------------------------------------
# pure-JAX reference (mirrors the PyTorch forward, same stand-in feature_map)
# ----------------------------------------------------------------------------
def net_forward_reference(params, inp):
    x, y = inp[:, :-1], inp[:, -1]
    B, T = x.shape[0], x.shape[1]

    def fmap(img):   # (B, C, H, W) -> (B, 512, H, W)
        z = jnp.einsum("bchw,cf->bfhw", img, params["fm_w"])
        return jnp.maximum(z + params["fm_b"][0][None, :, None, None], 0.0)

    def embed(fm):   # (B, 512, H, W) -> (B, 128)
        return jnp.mean(fm, axis=(2, 3)) @ params["ffc_w"] + params["ffc_b"]

    y_map = fmap(y)
    y_out = jnp.tanh(embed(y_map) @ params["fc_w"] + params["fc_b"])
    h = jnp.zeros((B, HIDDEN), jnp.float32)
    c = jnp.zeros((B, HIDDEN), jnp.float32)
    for t in range(T):
        xt_map = fmap(x[:, t])
        xt_in = embed(xt_map)
        d = jnp.abs(xt_map - y_map)
        dm = (jnp.einsum("bchw,ck->bkhw", d, params["msc_w"])
              + params["msc_b"][0][None, :, None, None])
        prob = jax.nn.sigmoid(dm.reshape(B, -1) @ params["msf_w"] + params["msf_b"])
        cur = prob * xt_in + (1.0 - prob) * h
        gates = cur @ params["lstm_wih"] + h @ params["lstm_whh"] + params["lstm_b"]
        i = jax.nn.sigmoid(gates[:, :HIDDEN])
        f = jax.nn.sigmoid(gates[:, HIDDEN:2 * HIDDEN])
        g = jnp.tanh(gates[:, 2 * HIDDEN:3 * HIDDEN])
        o = jax.nn.sigmoid(gates[:, 3 * HIDDEN:])
        c = f * c + i * g
        h = o * jnp.tanh(c)
    z = jnp.tanh(jnp.abs(h - y_out) @ params["mfc1_w"] + params["mfc1_b"])
    return jax.nn.sigmoid(z @ params["mfc2_w"] + params["mfc2_b"])


# ----------------------------------------------------------------------------
# deterministic parameter initialization (weights are (in, out); biases (1, out))
# ----------------------------------------------------------------------------
def init_params(key):
    ks = jax.random.split(key, 14)

    def w(k, shape, scale=0.05):
        return (scale * jax.random.normal(k, shape)).astype(jnp.float32)

    return {
        # feature_map stand-in: 1x1 conv IN_C -> 512 (+ReLU)
        "fm_w": w(ks[0], (IN_C, FEAT_C)),
        "fm_b": w(ks[1], (1, FEAT_C)),
        # feature_fc: 512 -> 128
        "ffc_w": w(ks[2], (FEAT_C, HIDDEN)),
        "ffc_b": w(ks[3], (1, HIDDEN)),
        # fc: Linear(128,128) + Tanh
        "fc_w": w(ks[4], (HIDDEN, HIDDEN)),
        "fc_b": w(ks[5], (1, HIDDEN)),
        # metric_subnet_conv: Conv2d(512, 128, 1)
        "msc_w": w(ks[6], (FEAT_C, HIDDEN)),
        "msc_b": w(ks[7], (1, HIDDEN)),
        # metric_subnet_fc: Linear(128*7*7, 1) + Sigmoid
        "msf_w": w(ks[8], (HIDDEN * FM_H * FM_W, 1)),
        "msf_b": jnp.zeros((1, 1), jnp.float32),
        # metric_fc: Linear(128,128)+Tanh, Linear(128,1)+Sigmoid
        "mfc1_w": w(ks[9], (HIDDEN, HIDDEN)),
        "mfc1_b": jnp.zeros((1, HIDDEN), jnp.float32),
        "mfc2_w": w(ks[10], (HIDDEN, 1)),
        "mfc2_b": jnp.zeros((1, 1), jnp.float32),
        # LSTMCell(128, 128): gates in PyTorch order (i, f, g, o)
        "lstm_wih": w(ks[11], (HIDDEN, 4 * HIDDEN)),
        "lstm_whh": w(ks[12], (HIDDEN, 4 * HIDDEN)),
        "lstm_b": jnp.zeros((1, 4 * HIDDEN), jnp.float32),
    }


if __name__ == "__main__":
    key = jax.random.PRNGKey(0)
    pkey, xkey = jax.random.split(key)
    params = init_params(pkey)

    B, T = 2, 3  # small video: 3 reference frames + 1 target frame
    inp = jax.random.normal(xkey, (B, T + 1, IN_C, FM_H, FM_W), dtype=jnp.float32)

    out = jax.jit(net_forward)(params, inp)
    out = jax.block_until_ready(out)
    assert out.shape == (B, 1) and out.dtype == jnp.float32
    assert bool(jnp.all(jnp.isfinite(out)))

    ref = jax.block_until_ready(jax.jit(net_forward_reference)(params, inp))
    assert bool(jnp.allclose(out, ref, atol=1e-3, rtol=1e-3)), (out, ref)

    print("KERNEL_OK")
</pallas_src>

<mosaic_0001>
module attributes {stable_mosaic.version = 11 : i64} {
  func.func @_fused_net_kernel(%arg0: memref<416x8xf32, #tpu.memory_space<vmem>>, %arg1: memref<8x416xf32, #tpu.memory_space<vmem>>, %arg2: memref<6x312xf32, #tpu.memory_space<vmem>>, %arg3: memref<8x512xf32, #tpu.memory_space<vmem>>, %arg4: memref<1x512xf32, #tpu.memory_space<vmem>>, %arg5: memref<512x128xf32, #tpu.memory_space<vmem>>, %arg6: memref<1x128xf32, #tpu.memory_space<vmem>>, %arg7: memref<128x128xf32, #tpu.memory_space<vmem>>, %arg8: memref<1x128xf32, #tpu.memory_space<vmem>>, %arg9: memref<312x512xf32, #tpu.memory_space<vmem>>, %arg10: memref<1x1xf32, #tpu.memory_space<smem>>, %arg11: memref<128x512xf32, #tpu.memory_space<vmem>>, %arg12: memref<128x512xf32, #tpu.memory_space<vmem>>, %arg13: memref<1x512xf32, #tpu.memory_space<vmem>>, %arg14: memref<128x128xf32, #tpu.memory_space<vmem>>, %arg15: memref<1x128xf32, #tpu.memory_space<vmem>>, %arg16: memref<128x128xf32, #tpu.memory_space<vmem>>, %arg17: memref<1x128xf32, #tpu.memory_space<vmem>>, %arg18: memref<2x128xf32, #tpu.memory_space<vmem>>) attributes {dimension_semantics = [], scalar_prefetch = 0 : i64, scratch_operands = 0 : i64, tpu.core_type = #tpu.core_type<tc>} {
    %c0 = arith.constant 0 : index
    %c0_0 = arith.constant 0 : index
    %0 = vector.load %arg0[%c0, %c0_0] : memref<416x8xf32, #tpu.memory_space<vmem>>, vector<416x8xf32>
    %c0_1 = arith.constant 0 : index
    %c0_2 = arith.constant 0 : index
    %1 = vector.load %arg3[%c0_1, %c0_2] : memref<8x512xf32, #tpu.memory_space<vmem>>, vector<8x512xf32>
    %cst = arith.constant dense<0.000000e+00> : vector<416x512xf32>
    %2 = tpu.matmul %0, %1, %cst {dimension_numbers = #tpu.dot_dimension_numbers<[1], [0], [0], [1], [0, 0, 1, 1], [], []>} : vector<416x8xf32>, vector<8x512xf32>, vector<416x512xf32> -> vector<416x512xf32>
    %c0_3 = arith.constant 0 : index
    %c0_4 = arith.constant 0 : index
    %3 = vector.load %arg4[%c0_3, %c0_4] : memref<1x512xf32, #tpu.memory_space<vmem>>, vector<1x512xf32>
    %4 = vector.broadcast %3 : vector<1x512xf32> to vector<416x512xf32>
    %5 = arith.addf %2, %4 : vector<416x512xf32>
    %cst_5 = arith.constant 0.000000e+00 : f32
    %6 = vector.broadcast %cst_5 : f32 to vector<416x512xf32>
    %7 = arith.maximumf %5, %6 : vector<416x512xf32>
    %c0_6 = arith.constant 0 : index
    %c0_7 = arith.constant 0 : index
    %8 = vector.load %arg1[%c0_6, %c0_7] : memref<8x416xf32, #tpu.memory_space<vmem>>, vector<8x416xf32>
    %cst_8 = arith.constant dense<0.000000e+00> : vector<8x512xf32>
    %9 = tpu.matmul %8, %7, %cst_8 {dimension_numbers = #tpu.dot_dimension_numbers<[1], [0], [0], [1], [0, 0, 1, 1], [], []>} : vector<8x416xf32>, vector<416x512xf32>, vector<8x512xf32> -> vector<8x512xf32>
    %c0_9 = arith.constant 0 : index
    %c0_10 = arith.constant 0 : index
    %10 = vector.load %arg5[%c0_9, %c0_10] : memref<512x128xf32, #tpu.memory_space<vmem>>, vector<512x128xf32>
    %cst_11 = arith.constant dense<0.000000e+00> : vector<8x128xf32>
    %11 = tpu.matmul %9, %10, %cst_11 {dimension_numbers = #tpu.dot_dimension_numbers<[1], [0], [0], [1], [0, 0, 1, 1], [], []>} : vector<8x512xf32>, vector<512x128xf32>, vector<8x128xf32> -> vector<8x128xf32>
    %c0_12 = arith.constant 0 : index
    %c0_13 = arith.constant 0 : index
    %12 = vector.load %arg6[%c0_12, %c0_13] : memref<1x128xf32, #tpu.memory_space<vmem>>, vector<1x128xf32>
    %13 = vector.broadcast %12 : vector<1x128xf32> to vector<8x128xf32>
    %14 = arith.addf %11, %13 : vector<8x128xf32>
    %15 = vector.extract_strided_slice %14 {offsets = [0, 0], sizes = [6, 128], strides = [1, 1]} : vector<8x128xf32> to vector<6x128xf32>
    %16 = vector.extract_strided_slice %14 {offsets = [6, 0], sizes = [2, 128], strides = [1, 1]} : vector<8x128xf32> to vector<2x128xf32>
    %c0_14 = arith.constant 0 : index
    %c0_15 = arith.constant 0 : index
    %17 = vector.load %arg7[%c0_14, %c0_15] : memref<128x128xf32, #tpu.memory_space<vmem>>, vector<128x128xf32>
    %cst_16 = arith.constant dense<0.000000e+00> : vector<2x128xf32>
    %18 = tpu.matmul %16, %17, %cst_16 {dimension_numbers = #tpu.dot_dimension_numbers<[1], [0], [0], [1], [0, 0, 1, 1], [], []>} : vector<2x128xf32>, vector<128x128xf32>, vector<2x128xf32> -> vector<2x128xf32>
    %c0_17 = arith.constant 0 : index
    %c0_18 = arith.constant 0 : index
    %19 = vector.load %arg8[%c0_17, %c0_18] : memref<1x128xf32, #tpu.memory_space<vmem>>, vector<1x128xf32>
    %20 = vector.broadcast %19 : vector<1x128xf32> to vector<2x128xf32>
    %21 = arith.addf %18, %20 : vector<2x128xf32>
    %22 = math.tanh %21 : vector<2x128xf32>
    %23 = vector.extract_strided_slice %7 {offsets = [0, 0], sizes = [312, 512], strides = [1, 1]} : vector<416x512xf32> to vector<312x512xf32>
    %24 = vector.extract_strided_slice %7 {offsets = [312, 0], sizes = [104, 512], strides = [1, 1]} : vector<416x512xf32> to vector<104x512xf32>
    %25 = tpu.concatenate %24, %24, %24 in 0 : vector<104x512xf32>, vector<104x512xf32>, vector<104x512xf32> -> vector<312x512xf32>
    %26 = arith.subf %23, %25 : vector<312x512xf32>
    %27 = math.absf %26 : vector<312x512xf32>
    %c0_19 = arith.constant 0 : index
    %c0_20 = arith.constant 0 : index
    %28 = vector.load %arg9[%c0_19, %c0_20] : memref<312x512xf32, #tpu.memory_space<vmem>>, vector<312x512xf32>
    %29 = arith.mulf %27, %28 : vector<312x512xf32>
    %c0_21 = arith.constant 0 : index
    %c0_22 = arith.constant 0 : index
    %30 = vector.load %arg2[%c0_21, %c0_22] : memref<6x312xf32, #tpu.memory_space<vmem>>, vector<6x312xf32>
    %cst_23 = arith.constant dense<0.000000e+00> : vector<6x512xf32>
    %31 = tpu.matmul %30, %29, %cst_23 {dimension_numbers = #tpu.dot_dimension_numbers<[1], [0], [0], [1], [0, 0, 1, 1], [], []>} : vector<6x312xf32>, vector<312x512xf32>, vector<6x512xf32> -> vector<6x512xf32>
    %cst_24 = arith.constant 1.000000e+00 : f32
    %32 = vector.broadcast %cst_24 : f32 to vector<512x128xf32>
    %cst_25 = arith.constant dense<0.000000e+00> : vector<6x128xf32>
    %33 = tpu.matmul %31, %32, %cst_25 {dimension_numbers = #tpu.dot_dimension_numbers<[1], [0], [0], [1], [0, 0, 1, 1], [], []>} : vector<6x512xf32>, vector<512x128xf32>, vector<6x128xf32> -> vector<6x128xf32>
    %c0_26 = arith.constant 0 : index
    %c0_27 = arith.constant 0 : index
    %34 = memref.load %arg10[%c0_26, %c0_27] : memref<1x1xf32, #tpu.memory_space<smem>>
    %35 = vector.broadcast %34 : f32 to vector<6x128xf32>
    %36 = arith.addf %33, %35 : vector<6x128xf32>
    %37 = arith.negf %36 : vector<6x128xf32>
    %38 = math.exp %37 : vector<6x128xf32>
    %cst_28 = arith.constant 1.000000e+00 : f32
    %39 = vector.broadcast %cst_28 : f32 to vector<6x128xf32>
    %40 = arith.addf %39, %38 : vector<6x128xf32>
    %41 = arith.divf %39, %40 : vector<6x128xf32>
    %c0_29 = arith.constant 0 : index
    %c0_30 = arith.constant 0 : index
    %42 = vector.load %arg11[%c0_29, %c0_30] : memref<128x512xf32, #tpu.memory_space<vmem>>, vector<128x512xf32>
    %c0_31 = arith.constant 0 : index
    %c0_32 = arith.constant 0 : index
    %43 = vector.load %arg12[%c0_31, %c0_32] : memref<128x512xf32, #tpu.memory_space<vmem>>, vector<128x512xf32>
    %c0_33 = arith.constant 0 : index
    %c0_34 = arith.constant 0 : index
    %44 = vector.load %arg13[%c0_33, %c0_34] : memref<1x512xf32, #tpu.memory_space<vmem>>, vector<1x512xf32>
    %cst_35 = arith.constant 0.000000e+00 : f32
    %45 = vector.broadcast %cst_35 : f32 to vector<2x128xf32>
    %cst_36 = arith.constant 0.000000e+00 : f32
    %46 = vector.broadcast %cst_36 : f32 to vector<2x128xf32>
    %47 = vector.extract_strided_slice %15 {offsets = [0, 0], sizes = [2, 128], strides = [1, 1]} : vector<6x128xf32> to vector<2x128xf32>
    %48 = vector.extract_strided_slice %41 {offsets = [0, 0], sizes = [2, 128], strides = [1, 1]} : vector<6x128xf32> to vector<2x128xf32>
    %49 = arith.mulf %48, %47 : vector<2x128xf32>
    %cst_37 = arith.constant 1.000000e+00 : f32
    %50 = vector.broadcast %cst_37 : f32 to vector<2x128xf32>
    %51 = arith.subf %50, %48 : vector<2x128xf32>
    %52 = arith.mulf %51, %45 : vector<2x128xf32>
    %53 = arith.addf %49, %52 : vector<2x128xf32>
    %cst_38 = arith.constant dense<0.000000e+00> : vector<2x512xf32>
    %54 = tpu.matmul %53, %42, %cst_38 {dimension_numbers = #tpu.dot_dimension_numbers<[1], [0], [0], [1], [0, 0, 1, 1], [], []>} : vector<2x128xf32>, vector<128x512xf32>, vector<2x512xf32> -> vector<2x512xf32>
    %cst_39 = arith.constant dense<0.000000e+00> : vector<2x512xf32>
    %55 = tpu.matmul %45, %43, %cst_39 {dimension_numbers = #tpu.dot_dimension_numbers<[1], [0], [0], [1], [0, 0, 1, 1], [], []>} : vector<2x128xf32>, vector<128x512xf32>, vector<2x512xf32> -> vector<2x512xf32>
    %56 = arith.addf %54, %55 : vector<2x512xf32>
    %57 = vector.broadcast %44 : vector<1x512xf32> to vector<2x512xf32>
    %58 = arith.addf %56, %57 : vector<2x512xf32>
    %59 = vector.extract_strided_slice %58 {offsets = [0, 0], sizes = [2, 128], strides = [1, 1]} : vector<2x512xf32> to vector<2x128xf32>
    %60 = arith.negf %59 : vector<2x128xf32>
    %61 = math.exp %60 : vector<2x128xf32>
    %cst_40 = arith.constant 1.000000e+00 : f32
    %62 = vector.broadcast %cst_40 : f32 to vector<2x128xf32>
    %63 = arith.addf %62, %61 : vector<2x128xf32>
    %64 = arith.divf %62, %63 : vector<2x128xf32>
    %65 = vector.extract_strided_slice %58 {offsets = [0, 128], sizes = [2, 128], strides = [1, 1]} : vector<2x512xf32> to vector<2x128xf32>
    %66 = arith.negf %65 : vector<2x128xf32>
    %67 = math.exp %66 : vector<2x128xf32>
    %cst_41 = arith.constant 1.000000e+00 : f32
    %68 = vector.broadcast %cst_41 : f32 to vector<2x128xf32>
    %69 = arith.addf %68, %67 : vector<2x128xf32>
    %70 = arith.divf %68, %69 : vector<2x128xf32>
    %71 = vector.extract_strided_slice %58 {offsets = [0, 256], sizes = [2, 128], strides = [1, 1]} : vector<2x512xf32> to vector<2x128xf32>
    %72 = math.tanh %71 : vector<2x128xf32>
    %73 = vector.extract_strided_slice %58 {offsets = [0, 384], sizes = [2, 128], strides = [1, 1]} : vector<2x512xf32> to vector<2x128xf32>
    %74 = arith.negf %73 : vector<2x128xf32>
    %75 = math.exp %74 : vector<2x128xf32>
    %cst_42 = arith.constant 1.000000e+00 : f32
    %76 = vector.broadcast %cst_42 : f32 to vector<2x128xf32>
    %77 = arith.addf %76, %75 : vector<2x128xf32>
    %78 = arith.divf %76, %77 : vector<2x128xf32>
    %79 = arith.mulf %70, %46 : vector<2x128xf32>
    %80 = arith.mulf %64, %72 : vector<2x128xf32>
    %81 = arith.addf %79, %80 : vector<2x128xf32>
    %82 = math.tanh %81 : vector<2x128xf32>
    %83 = arith.mulf %78, %82 : vector<2x128xf32>
    %84 = vector.extract_strided_slice %15 {offsets = [2, 0], sizes = [2, 128], strides = [1, 1]} : vector<6x128xf32> to vector<2x128xf32>
    %85 = vector.extract_strided_slice %41 {offsets = [2, 0], sizes = [2, 128], strides = [1, 1]} : vector<6x128xf32> to vector<2x128xf32>
    %86 = arith.mulf %85, %84 : vector<2x128xf32>
    %cst_43 = arith.constant 1.000000e+00 : f32
    %87 = vector.broadcast %cst_43 : f32 to vector<2x128xf32>
    %88 = arith.subf %87, %85 : vector<2x128xf32>
    %89 = arith.mulf %88, %83 : vector<2x128xf32>
    %90 = arith.addf %86, %89 : vector<2x128xf32>
    %cst_44 = arith.constant dense<0.000000e+00> : vector<2x512xf32>
    %91 = tpu.matmul %90, %42, %cst_44 {dimension_numbers = #tpu.dot_dimension_numbers<[1], [0], [0], [1], [0, 0, 1, 1], [], []>} : vector<2x128xf32>, vector<128x512xf32>, vector<2x512xf32> -> vector<2x512xf32>
    %cst_45 = arith.constant dense<0.000000e+00> : vector<2x512xf32>
    %92 = tpu.matmul %83, %43, %cst_45 {dimension_numbers = #tpu.dot_dimension_numbers<[1], [0], [0], [1], [0, 0, 1, 1], [], []>} : vector<2x128xf32>, vector<128x512xf32>, vector<2x512xf32> -> vector<2x512xf32>
    %93 = arith.addf %91, %92 : vector<2x512xf32>
    %94 = vector.broadcast %44 : vector<1x512xf32> to vector<2x512xf32>
    %95 = arith.addf %93, %94 : vector<2x512xf32>
    %96 = vector.extract_strided_slice %95 {offsets = [0, 0], sizes = [2, 128], strides = [1, 1]} : vector<2x512xf32> to vector<2x128xf32>
    %97 = arith.negf %96 : vector<2x128xf32>
    %98 = math.exp %97 : vector<2x128xf32>
    %cst_46 = arith.constant 1.000000e+00 : f32
    %99 = vector.broadcast %cst_46 : f32 to vector<2x128xf32>
    %100 = arith.addf %99, %98 : vector<2x128xf32>
    %101 = arith.divf %99, %100 : vector<2x128xf32>
    %102 = vector.extract_strided_slice %95 {offsets = [0, 128], sizes = [2, 128], strides = [1, 1]} : vector<2x512xf32> to vector<2x128xf32>
    %103 = arith.negf %102 : vector<2x128xf32>
    %104 = math.exp %103 : vector<2x128xf32>
    %cst_47 = arith.constant 1.000000e+00 : f32
    %105 = vector.broadcast %cst_47 : f32 to vector<2x128xf32>
    %106 = arith.addf %105, %104 : vector<2x128xf32>
    %107 = arith.divf %105, %106 : vector<2x128xf32>
    %108 = vector.extract_strided_slice %95 {offsets = [0, 256], sizes = [2, 128], strides = [1, 1]} : vector<2x512xf32> to vector<2x128xf32>
    %109 = math.tanh %108 : vector<2x128xf32>
    %110 = vector.extract_strided_slice %95 {offsets = [0, 384], sizes = [2, 128], strides = [1, 1]} : vector<2x512xf32> to vector<2x128xf32>
    %111 = arith.negf %110 : vector<2x128xf32>
    %112 = math.exp %111 : vector<2x128xf32>
    %cst_48 = arith.constant 1.000000e+00 : f32
    %113 = vector.broadcast %cst_48 : f32 to vector<2x128xf32>
    %114 = arith.addf %113, %112 : vector<2x128xf32>
    %115 = arith.divf %113, %114 : vector<2x128xf32>
    %116 = arith.mulf %107, %81 : vector<2x128xf32>
    %117 = arith.mulf %101, %109 : vector<2x128xf32>
    %118 = arith.addf %116, %117 : vector<2x128xf32>
    %119 = math.tanh %118 : vector<2x128xf32>
    %120 = arith.mulf %115, %119 : vector<2x128xf32>
    %121 = vector.extract_strided_slice %15 {offsets = [4, 0], sizes = [2, 128], strides = [1, 1]} : vector<6x128xf32> to vector<2x128xf32>
    %122 = vector.extract_strided_slice %41 {offsets = [4, 0], sizes = [2, 128], strides = [1, 1]} : vector<6x128xf32> to vector<2x128xf32>
    %123 = arith.mulf %122, %121 : vector<2x128xf32>
    %cst_49 = arith.constant 1.000000e+00 : f32
    %124 = vector.broadcast %cst_49 : f32 to vector<2x128xf32>
    %125 = arith.subf %124, %122 : vector<2x128xf32>
    %126 = arith.mulf %125, %120 : vector<2x128xf32>
    %127 = arith.addf %123, %126 : vector<2x128xf32>
    %cst_50 = arith.constant dense<0.000000e+00> : vector<2x512xf32>
    %128 = tpu.matmul %127, %42, %cst_50 {dimension_numbers = #tpu.dot_dimension_numbers<[1], [0], [0], [1], [0, 0, 1, 1], [], []>} : vector<2x128xf32>, vector<128x512xf32>, vector<2x512xf32> -> vector<2x512xf32>
    %cst_51 = arith.constant dense<0.000000e+00> : vector<2x512xf32>
    %129 = tpu.matmul %120, %43, %cst_51 {dimension_numbers = #tpu.dot_dimension_numbers<[1], [0], [0], [1], [0, 0, 1, 1], [], []>} : vector<2x128xf32>, vector<128x512xf32>, vector<2x512xf32> -> vector<2x512xf32>
    %130 = arith.addf %128, %129 : vector<2x512xf32>
    %131 = vector.broadcast %44 : vector<1x512xf32> to vector<2x512xf32>
    %132 = arith.addf %130, %131 : vector<2x512xf32>
    %133 = vector.extract_strided_slice %132 {offsets = [0, 0], sizes = [2, 128], strides = [1, 1]} : vector<2x512xf32> to vector<2x128xf32>
    %134 = arith.negf %133 : vector<2x128xf32>
    %135 = math.exp %134 : vector<2x128xf32>
    %cst_52 = arith.constant 1.000000e+00 : f32
    %136 = vector.broadcast %cst_52 : f32 to vector<2x128xf32>
    %137 = arith.addf %136, %135 : vector<2x128xf32>
    %138 = arith.divf %136, %137 : vector<2x128xf32>
    %139 = vector.extract_strided_slice %132 {offsets = [0, 128], sizes = [2, 128], strides = [1, 1]} : vector<2x512xf32> to vector<2x128xf32>
    %140 = arith.negf %139 : vector<2x128xf32>
    %141 = math.exp %140 : vector<2x128xf32>
    %cst_53 = arith.constant 1.000000e+00 : f32
    %142 = vector.broadcast %cst_53 : f32 to vector<2x128xf32>
    %143 = arith.addf %142, %141 : vector<2x128xf32>
    %144 = arith.divf %142, %143 : vector<2x128xf32>
    %145 = vector.extract_strided_slice %132 {offsets = [0, 256], sizes = [2, 128], strides = [1, 1]} : vector<2x512xf32> to vector<2x128xf32>
    %146 = math.tanh %145 : vector<2x128xf32>
    %147 = vector.extract_strided_slice %132 {offsets = [0, 384], sizes = [2, 128], strides = [1, 1]} : vector<2x512xf32> to vector<2x128xf32>
    %148 = arith.negf %147 : vector<2x128xf32>
    %149 = math.exp %148 : vector<2x128xf32>
    %cst_54 = arith.constant 1.000000e+00 : f32
    %150 = vector.broadcast %cst_54 : f32 to vector<2x128xf32>
    %151 = arith.addf %150, %149 : vector<2x128xf32>
    %152 = arith.divf %150, %151 : vector<2x128xf32>
    %153 = arith.mulf %144, %118 : vector<2x128xf32>
    %154 = arith.mulf %138, %146 : vector<2x128xf32>
    %155 = arith.addf %153, %154 : vector<2x128xf32>
    %156 = math.tanh %155 : vector<2x128xf32>
    %157 = arith.mulf %152, %156 : vector<2x128xf32>
    %158 = arith.subf %157, %22 : vector<2x128xf32>
    %159 = math.absf %158 : vector<2x128xf32>
    %c0_55 = arith.constant 0 : index
    %c0_56 = arith.constant 0 : index
    %160 = vector.load %arg14[%c0_55, %c0_56] : memref<128x128xf32, #tpu.memory_space<vmem>>, vector<128x128xf32>
    %cst_57 = arith.constant dense<0.000000e+00> : vector<2x128xf32>
    %161 = tpu.matmul %159, %160, %cst_57 {dimension_numbers = #tpu.dot_dimension_numbers<[1], [0], [0], [1], [0, 0, 1, 1], [], []>} : vector<2x128xf32>, vector<128x128xf32>, vector<2x128xf32> -> vector<2x128xf32>
    %c0_58 = arith.constant 0 : index
    %c0_59 = arith.constant 0 : index
    %162 = vector.load %arg15[%c0_58, %c0_59] : memref<1x128xf32, #tpu.memory_space<vmem>>, vector<1x128xf32>
    %163 = vector.broadcast %162 : vector<1x128xf32> to vector<2x128xf32>
    %164 = arith.addf %161, %163 : vector<2x128xf32>
    %165 = math.tanh %164 : vector<2x128xf32>
    %c0_60 = arith.constant 0 : index
    %c0_61 = arith.constant 0 : index
    %166 = vector.load %arg16[%c0_60, %c0_61] : memref<128x128xf32, #tpu.memory_space<vmem>>, vector<128x128xf32>
    %cst_62 = arith.constant dense<0.000000e+00> : vector<2x128xf32>
    %167 = tpu.matmul %165, %166, %cst_62 {dimension_numbers = #tpu.dot_dimension_numbers<[1], [0], [0], [1], [0, 0, 1, 1], [], []>} : vector<2x128xf32>, vector<128x128xf32>, vector<2x128xf32> -> vector<2x128xf32>
    %c0_63 = arith.constant 0 : index
    %c0_64 = arith.constant 0 : index
    %168 = vector.load %arg17[%c0_63, %c0_64] : memref<1x128xf32, #tpu.memory_space<vmem>>, vector<1x128xf32>
    %169 = vector.broadcast %168 : vector<1x128xf32> to vector<2x128xf32>
    %170 = arith.addf %167, %169 : vector<2x128xf32>
    %171 = arith.negf %170 : vector<2x128xf32>
    %172 = math.exp %171 : vector<2x128xf32>
    %cst_65 = arith.constant 1.000000e+00 : f32
    %173 = vector.broadcast %cst_65 : f32 to vector<2x128xf32>
    %174 = arith.addf %173, %172 : vector<2x128xf32>
    %175 = arith.divf %173, %174 : vector<2x128xf32>
    %c0_66 = arith.constant 0 : index
    %c0_67 = arith.constant 0 : index
    %176 = vector.load %arg18[%c0_66, %c0_67] : memref<2x128xf32, #tpu.memory_space<vmem>>, vector<2x128xf32>
    tpu.vector_store %arg18[%c0_66, %c0_67], %175 {strides = array<i32>} : memref<2x128xf32, #tpu.memory_space<vmem>>, vector<2x128xf32>,
    return
  }
}

</mosaic_0001>

<bundles_post_ra>
// kernel: tile.14
= control target key start
LH: loop header
LB: loop body
LE: loop exit
PB: predicated region body
PF: predicated region fallthrough
CT: control target
= control target key end

     0   :  { %vm100_vm0 = vcmask 1044484   ;;  %s766_s0 = inlined_call_operand.vmem [shape: f32[2,49,512], index: 0, kind: input, shape index: {}]   ;;  %s767_s1 = inlined_call_operand.vmem [shape: f32[98,512], index: 1, kind: output, shape index: {}]  }
   0x1   :  { %v2_v0 = vld [vmem:[%s766_s0] sm:$0xff]   ;;  %v254_v1 = vld [vmem:[%s766_s0 + $0x8] sm:$0xff]   ;;  %v256_v2 = vld [vmem:[%s766_s0 + $0x10] sm:$0xff]  }
   0x2   :  { %3 = vst [vmem:[%s767_s1] sm:$0xff] %v2_v0   ;;  %255 = vst [vmem:[%s767_s1 + $0x8] sm:$0xff] %v254_v1   ;;  %v258_v3 = vld [vmem:[%s766_s0 + $0x18] sm:$0xff]   ;;  %v260_v4 = vld [vmem:[%s766_s0 + $0x20] sm:$0xff]  }
   0x3   :  { %257 = vst [vmem:[%s767_s1 + $0x10] sm:$0xff] %v256_v2   ;;  %v262_v5 = vld [vmem:[%s766_s0 + $0x28] sm:$0xff]   ;;  %259 = vst [vmem:[%s767_s1 + $0x18] sm:$0xff] %v258_v3   ;;  %v264_v6 = vld [vmem:[%s766_s0 + $0x30] sm:$0xff]  }
   0x4   :  { %261 = vst [vmem:[%s767_s1 + $0x20] sm:$0xff] %v260_v4   ;;  %263 = vst [vmem:[%s767_s1 + $0x28] sm:$0xff] %v262_v5   ;;  %v266_v7 = vld [vmem:[%s766_s0 + $0x38] sm:$0xff]   ;;  %v268_v8 = vld [vmem:[%s766_s0 + $0x40] sm:$0xff]  }
   0x5   :  { %265 = vst [vmem:[%s767_s1 + $0x30] sm:$0xff] %v264_v6   ;;  %267 = vst [vmem:[%s767_s1 + $0x38] sm:$0xff] %v266_v7   ;;  %v270_v9 = vld [vmem:[%s766_s0 + $0x48] sm:$0xff]   ;;  %v272_v10 = vld [vmem:[%s766_s0 + $0x50] sm:$0xff]  }
   0x6   :  { %269 = vst [vmem:[%s767_s1 + $0x40] sm:$0xff] %v268_v8   ;;  %v274_v11 = vld [vmem:[%s766_s0 + $0x58] sm:$0xff]   ;;  %271 = vst [vmem:[%s767_s1 + $0x48] sm:$0xff] %v270_v9   ;;  %v276_v12 = vld [vmem:[%s766_s0 + $0x60] sm:$0xff]  }
   0x7   :  { %273 = vst [vmem:[%s767_s1 + $0x50] sm:$0xff] %v272_v10   ;;  %275 = vst [vmem:[%s767_s1 + $0x58] sm:$0xff] %v274_v11   ;;  %v278_v13 = vld [vmem:[%s766_s0 + $0x68] sm:$0xff]   ;;  %v280_v14 = vld [vmem:[%s766_s0 + $0x70] sm:$0xff]  }
   0x8   :  { %277 = vst [vmem:[%s767_s1 + $0x60] sm:$0xff] %v276_v12   ;;  %279 = vst [vmem:[%s767_s1 + $0x68] sm:$0xff] %v278_v13   ;;  %v282_v15 = vld [vmem:[%s766_s0 + $0x78] sm:$0xff]   ;;  %v284_v16 = vld [vmem:[%s766_s0 + $0x80] sm:$0xff]  }
   0x9   :  { %281 = vst [vmem:[%s767_s1 + $0x70] sm:$0xff] %v280_v14   ;;  %v286_v17 = vld [vmem:[%s766_s0 + $0x88] sm:$0xff]   ;;  %283 = vst [vmem:[%s767_s1 + $0x78] sm:$0xff] %v282_v15   ;;  %v288_v18 = vld [vmem:[%s766_s0 + $0x90] sm:$0xff]  }
   0xa   :  { %285 = vst [vmem:[%s767_s1 + $0x80] sm:$0xff] %v284_v16   ;;  %287 = vst [vmem:[%s767_s1 + $0x88] sm:$0xff] %v286_v17   ;;  %v290_v19 = vld [vmem:[%s766_s0 + $0x98] sm:$0xff]   ;;  %v292_v20 = vld [vmem:[%s766_s0 + $0xa0] sm:$0xff]  }
   0xb   :  { %289 = vst [vmem:[%s767_s1 + $0x90] sm:$0xff] %v288_v18   ;;  %291 = vst [vmem:[%s767_s1 + $0x98] sm:$0xff] %v290_v19   ;;  %v294_v21 = vld [vmem:[%s766_s0 + $0xa8] sm:$0xff]   ;;  %v296_v22 = vld [vmem:[%s766_s0 + $0xb0] sm:$0xff]  }
   0xc   :  { %293 = vst [vmem:[%s767_s1 + $0xa0] sm:$0xff] %v292_v20   ;;  %v298_v23 = vld [vmem:[%s766_s0 + $0xb8] sm:$0xff]   ;;  %295 = vst [vmem:[%s767_s1 + $0xa8] sm:$0xff] %v294_v21   ;;  %v301_v25 = vld [vmem:[%s766_s0 + $0xdc] sm:$0x10]  }
   0xd   :  { %297 = vst [vmem:[%s767_s1 + $0xb0] sm:$0xff] %v296_v22   ;;  %299 = vst [vmem:[%s767_s1 + $0xb8] sm:$0xff] %v298_v23   ;;  %v300_v24 = vld [vmem:[%s766_s0 + $0xc0] ss:$8 sm:$0xf]  }
   0xe   :  { %v304_v26 = vld [vmem:[%s766_s0 + $0xe1] sm:$0xff]   ;;  %v101_v27 = vsel %vm100_vm0, %v301_v25, %v300_v24  ;;  %v307_v28 = vld [vmem:[%s766_s0 + $0xe9] sm:$0xff]   ;;  %v310_v29 = vld [vmem:[%s766_s0 + $0xf1] sm:$0xff]  }
   0xf   :  { %305 = vst [vmem:[%s767_s1 + $0xc2] sm:$0x3f] %v304_v26   ;;  %306 = vst [vmem:[%s767_s1 + $0x16a] ss:$-23 sm:$0xc0] %v304_v26   ;;  %v313_v30 = vld [vmem:[%s766_s0 + $0xf9] sm:$0xff]  }
  0x10   :  { %302 = vst [vmem:[%s767_s1 + $0xc0] ss:$8 sm:$0xf] %v101_v27   ;;  %303 = vst [vmem:[%s767_s1 + $0xbd] sm:$0x10] %v101_v27   ;;  %v316_v31 = vld [vmem:[%s766_s0 + $0x101] sm:$0xff]  }
  0x11   :  { %308 = vst [vmem:[%s767_s1 + $0xca] sm:$0x3f] %v307_v28   ;;  %309 = vst [vmem:[%s767_s1 + $0x172] ss:$-23 sm:$0xc0] %v307_v28   ;;  %v319_v32 = vld [vmem:[%s766_s0 + $0x109] sm:$0xff]  }
  0x12   :  { %311 = vst [vmem:[%s767_s1 + $0xd2] sm:$0x3f] %v310_v29   ;;  %312 = vst [vmem:[%s767_s1 + $0x17a] ss:$-23 sm:$0xc0] %v310_v29   ;;  %v322_v33 = vld [vmem:[%s766_s0 + $0x111] sm:$0xff]  }
  0x13   :  { %314 = vst [vmem:[%s767_s1 + $0xda] sm:$0x3f] %v313_v30   ;;  %315 = vst [vmem:[%s767_s1 + $0x182] ss:$-23 sm:$0xc0] %v313_v30   ;;  %v325_v34 = vld [vmem:[%s766_s0 + $0x119] sm:$0xff]  }
  0x14   :  { %317 = vst [vmem:[%s767_s1 + $0xe2] sm:$0x3f] %v316_v31   ;;  %318 = vst [vmem:[%s767_s1 + $0x18a] ss:$-23 sm:$0xc0] %v316_v31   ;;  %v328_v35 = vld [vmem:[%s766_s0 + $0x121] sm:$0xff]  }
  0x15   :  { %320 = vst [vmem:[%s767_s1 + $0xea] sm:$0x3f] %v319_v32   ;;  %321 = vst [vmem:[%s767_s1 + $0x192] ss:$-23 sm:$0xc0] %v319_v32   ;;  %v331_v36 = vld [vmem:[%s766_s0 + $0x129] sm:$0xff]  }
  0x16   :  { %323 = vst [vmem:[%s767_s1 + $0xf2] sm:$0x3f] %v322_v33   ;;  %324 = vst [vmem:[%s767_s1 + $0x19a] ss:$-23 sm:$0xc0] %v322_v33   ;;  %v334_v37 = vld [vmem:[%s766_s0 + $0x131] sm:$0xff]  }
  0x17   :  { %326 = vst [vmem:[%s767_s1 + $0xfa] sm:$0x3f] %v325_v34   ;;  %327 = vst [vmem:[%s767_s1 + $0x1a2] ss:$-23 sm:$0xc0] %v325_v34   ;;  %v337_v38 = vld [vmem:[%s766_s0 + $0x139] sm:$0xff]  }
  0x18   :  { %329 = vst [vmem:[%s767_s1 + $0x102] sm:$0x3f] %v328_v35   ;;  %330 = vst [vmem:[%s767_s1 + $0x1aa] ss:$-23 sm:$0xc0] %v328_v35   ;;  %v340_v39 = vld [vmem:[%s766_s0 + $0x141] sm:$0xff]  }
  0x19   :  { %332 = vst [vmem:[%s767_s1 + $0x10a] sm:$0x3f] %v331_v36   ;;  %333 = vst [vmem:[%s767_s1 + $0x1b2] ss:$-23 sm:$0xc0] %v331_v36   ;;  %v343_v40 = vld [vmem:[%s766_s0 + $0x149] sm:$0xff]  }
  0x1a   :  { %335 = vst [vmem:[%s767_s1 + $0x112] sm:$0x3f] %v334_v37   ;;  %336 = vst [vmem:[%s767_s1 + $0x1ba] ss:$-23 sm:$0xc0] %v334_v37   ;;  %v346_v41 = vld [vmem:[%s766_s0 + $0x151] sm:$0xff]  }
  0x1b   :  { %338 = vst [vmem:[%s767_s1 + $0x11a] sm:$0x3f] %v337_v38   ;;  %339 = vst [vmem:[%s767_s1 + $0x1c2] ss:$-23 sm:$0xc0] %v337_v38   ;;  %v349_v42 = vld [vmem:[%s766_s0 + $0x159] sm:$0xff]  }
  0x1c   :  { %341 = vst [vmem:[%s767_s1 + $0x122] sm:$0x3f] %v340_v39   ;;  %342 = vst [vmem:[%s767_s1 + $0x1ca] ss:$-23 sm:$0xc0] %v340_v39   ;;  %v352_v43 = vld [vmem:[%s766_s0 + $0x161] sm:$0xff]  }
  0x1d   :  { %344 = vst [vmem:[%s767_s1 + $0x12a] sm:$0x3f] %v343_v40   ;;  %345 = vst [vmem:[%s767_s1 + $0x1d2] ss:$-23 sm:$0xc0] %v343_v40   ;;  %v355_v44 = vld [vmem:[%s766_s0 + $0x169] sm:$0xff]  }
  0x1e   :  { %347 = vst [vmem:[%s767_s1 + $0x132] sm:$0x3f] %v346_v41   ;;  %348 = vst [vmem:[%s767_s1 + $0x1da] ss:$-23 sm:$0xc0] %v346_v41   ;;  %v358_v45 = vld [vmem:[%s766_s0 + $0x171] sm:$0xff]  }
  0x1f   :  { %350 = vst [vmem:[%s767_s1 + $0x13a] sm:$0x3f] %v349_v42   ;;  %351 = vst [vmem:[%s767_s1 + $0x1e2] ss:$-23 sm:$0xc0] %v349_v42   ;;  %v361_v46 = vld [vmem:[%s766_s0 + $0x179] sm:$0xff]  }
  0x20   :  { %353 = vst [vmem:[%s767_s1 + $0x142] sm:$0x3f] %v352_v43   ;;  %354 = vst [vmem:[%s767_s1 + $0x1ea] ss:$-23 sm:$0xc0] %v352_v43   ;;  %v364_v47 = vld [vmem:[%s766_s0 + $0x181] sm:$0xff]  }
  0x21   :  { %356 = vst [vmem:[%s767_s1 + $0x14a] sm:$0x3f] %v355_v44   ;;  %357 = vst [vmem:[%s767_s1 + $0x1f2] ss:$-23 sm:$0xc0] %v355_v44   ;;  %v367_v48 = vld [vmem:[%s766_s0 + $0x189] sm:$0xff]  }
  0x22   :  { %359 = vst [vmem:[%s767_s1 + $0x152] sm:$0x3f] %v358_v45   ;;  %360 = vst [vmem:[%s767_s1 + $0x1fa] ss:$-23 sm:$0xc0] %v358_v45   ;;  %v370_v49 = vld [vmem:[%s766_s0 + $0x191] sm:$0xff]  }
  0x23   :  { %362 = vst [vmem:[%s767_s1 + $0x15a] sm:$0x3f] %v361_v46   ;;  %363 = vst [vmem:[%s767_s1 + $0x202] ss:$-23 sm:$0xc0] %v361_v46   ;;  %v373_v50 = vld [vmem:[%s766_s0 + $0x199] sm:$0xff]  }
  0x24   :  { %365 = vst [vmem:[%s767_s1 + $0x162] sm:$0x3f] %v364_v47   ;;  %366 = vst [vmem:[%s767_s1 + $0x20a] ss:$-23 sm:$0xc0] %v364_v47  }
  0x25   :  { %368 = vst [vmem:[%s767_s1 + $0x16a] sm:$0x3f] %v367_v48   ;;  %369 = vst [vmem:[%s767_s1 + $0x212] ss:$-23 sm:$0xc0] %v367_v48  }
  0x26   :  { %v376_v51 = vld [vmem:[%s766_s0 + $0x1a8] ss:$8 sm:$0x7]   ;;  %371 = vst [vmem:[%s767_s1 + $0x172] sm:$0x3f] %v370_v49  }
  0x27   :  { %372 = vst [vmem:[%s767_s1 + $0x21a] ss:$-23 sm:$0xc0] %v370_v49   ;;  %374 = vst [vmem:[%s767_s1 + $0x17a] sm:$0x3f] %v373_v50  }
  0x28   :  { %375 = vst [vmem:[%s767_s1 + $0x222] ss:$-23 sm:$0xc0] %v373_v50   ;;  %377 = vst [vmem:[%s767_s1 + $0x189] ss:$8 sm:$0x7] %v376_v51  }

// kernel: net_forward.1
= control target key start
LH: loop header
LB: loop body
LE: loop exit
PB: predicated region body
PF: predicated region fallthrough
CT: control target
= control target key end

     0   :  { %v10214_v2 = vmov 0.0   ;;  %vm138_vm0 = vcmask 64512   ;;  %v118_v57 = vlaneseq  ;;  %vm1261_vm1 = vcmask 261120   ;;  %s10189_s3 = inlined_call_operand.vmem [shape: f32[8,512], index: 3, kind: input, shape index: {}]   ;;  %s10190_s0 = inlined_call_operand.vmem [shape: f32[416,8], index: 0, kind: input, shape index: {}]   ;;  %s10191_s4 = inlined_call_operand.vmem [shape: f32[1,512], index: 4, kind: input, shape index: {}]   ;;  %s10192_s1 = inlined_call_operand.vmem [shape: f32[8,416], index: 1, kind: input, shape index: {}]   ;;  %s10193_s9 = inlined_call_operand.vmem [shape: f32[312,512], index: 9, kind: input, shape index: {}]   ;;  %s10194_s5 = inlined_call_operand.vmem [shape: f32[512,128], index: 5, kind: input, shape index: {}]   ;;  %s10195_s7 = inlined_call_operand.vmem [shape: f32[128,128], index: 7, kind: input, shape index: {}]   ;;  %s10196_s2 = inlined_call_operand.vmem [shape: f32[6,312], index: 2, kind: input, shape index: {}]   ;;  %s10197_s6 = inlined_call_operand.vmem [shape: f32[1,128], index: 6, kind: input, shape index: {}]   ;;  %s10198_s12 = inlined_call_operand.vmem [shape: f32[128,512], index: 12, kind: input, shape index: {}]   ;;  %s10199_s11 = inlined_call_operand.vmem [shape: f32[128,512], index: 11, kind: input, shape index: {}]   ;;  %s10200_s10 = inlined_call_operand.<no memory space> [shape: f32[1,1], index: 10, kind: input, shape index: {}]   ;;  %s10201_s13 = inlined_call_operand.vmem [shape: f32[1,512], index: 13, kind: input, shape index: {}]   ;;  %s10202_s14 = inlined_call_operand.vmem [shape: f32[128,128], index: 14, kind: input, shape index: {}]   ;;  %s10203_s16 = inlined_call_operand.vmem [shape: f32[128,128], index: 16, kind: input, shape index: {}]   ;;  %s10204_s8 = inlined_call_operand.vmem [shape: f32[1,128], index: 8, kind: input, shape index: {}]   ;;  %s10205_s15 = inlined_call_operand.vmem [shape: f32[1,128], index: 15, kind: input, shape index: {}]   ;;  %s10206_s17 = inlined_call_operand.vmem [shape: f32[1,128], index: 17, kind: input, shape index: {}]   ;;  %s10207_s18 = inlined_call_operand.vmem [shape: f32[2,128], index: 18, kind: output, shape index: {}]  }
   0x1   :  { %10618 = sst [smem:[#allocation208_spill]] %s10189_s3  ;;  %359 = vmatprep.mubr.f32.mxu0 %v10214_v2  ;;  %647 = vmatprep.mubr.f32.mxu1 %v10214_v2  ;;  %vm5645_vm2 = vmmov 0   ;;  %vm2484_vm3 = vcmask 457728  }
   0x2   :  { %10619 = sst [smem:[#allocation209_spill]] %s10190_s0  ;;  %s10621_s29 = sld [smem:[#allocation208_spill]]  ;;  %v6121_v58 = vshrl.u32 %v118_v57, 7 }
   0x3   :  { %10620 = sst [smem:[#allocation210_spill]] %s10191_s4  ;;  %s10622_s20 = sld [smem:[#allocation209_spill]] }
   0x4   :  { %10623 = vst [vmem:[#allocation3_spill] sm:$0xff] %v6121_v58  ;;  %v10213_v59 = vsub.s32 0, %v6121_v58  ;;  %s10624_s30 = sld [smem:[#allocation210_spill]]  ;;  %v10212_v61 = vsub.s32 1, %v6121_v58 }
   0x8   :  { %v113_v0 = vld [vmem:[%s10621_s29 + $0x8] sm:$0xff]  ;;  %v112_v1 = vld [vmem:[%s10621_s29] sm:$0xff]  ;;  %v115_v5 = vld [vmem:[%s10621_s29 + $0x18] sm:$0xff] }
   0x9   :  { %v60_v3 = vld [vmem:[%s10622_s20] sm:$0xff]  ;;  %295 = vmatprep.subr.mxu0 %v113_v0  ;;  %5557 = vmatprep.subr.mxu1 %v113_v0  ;;  %v114_v6 = vld [vmem:[%s10621_s29 + $0x10] sm:$0xff]  ;;  %v61_v7 = vld [vmem:[%s10622_s20 + $0x8] sm:$0xff] }
   0xa   :  { %v5756_v4 = vld [vmem:[%s10622_s20 + $0x180] sm:$0xff]  ;;  %296 = vmatpush1.msra.mxu0 %v112_v1  ;;  %5558 = vmatpush1.msra.mxu1 %v112_v1  ;;  %v5775_v8 = vld [vmem:[%s10622_s20 + $0x188] sm:$0xff]  ;;  %v62_v9 = vld [vmem:[%s10622_s20 + $0x10] sm:$0xff] }
   0xb   :  { %4226 = vmatmul.mubr.msk.f32.vlgmr.msra.gmra.mrb[0].mxu0 %vm138_vm0, %v60_v3  ;;  %4274 = vmatmul.mubr.msk.f32.vlgmr.msra.gmra.mrb[0].mxu1 %vm138_vm0, %v5756_v4  ;;  %v5788_v10 = vld [vmem:[%s10622_s20 + $0x190] sm:$0xff]  ;;  %v63_v11 = vld [vmem:[%s10622_s20 + $0x18] sm:$0xff]  ;;  %v64_v13 = vld [vmem:[%s10622_s20 + $0x20] sm:$0xff] }
   0xc   :  { %365 = vmatprep.mubr.f32.mxu0 %v10214_v2  ;;  %653 = vmatprep.mubr.f32.mxu1 %v10214_v2  ;;  %v5801_v12 = vld [vmem:[%s10622_s20 + $0x198] sm:$0xff]  ;;  %v65_v14 = vld [vmem:[%s10622_s20 + $0x28] sm:$0xff]  ;;  %v66_v15 = vld [vmem:[%s10622_s20 + $0x30] sm:$0xff] }
   0xd   :  { %672 = vmatprep.subr.mxu1 %v115_v5  ;;  %v67_v16 = vld [vmem:[%s10622_s20 + $0x38] sm:$0xff]  ;;  %v68_v17 = vld [vmem:[%s10622_s20 + $0x40] sm:$0xff]  ;;  %v69_v18 = vld [vmem:[%s10622_s20 + $0x48] sm:$0xff] }
   0xe   :  { %673 = vmatpush1.msra.mxu1 %v114_v6  ;;  %v70_v19 = vld [vmem:[%s10622_s20 + $0x50] sm:$0xff]  ;;  %v71_v20 = vld [vmem:[%s10622_s20 + $0x58] sm:$0xff]  ;;  %v72_v21 = vld [vmem:[%s10622_s20 + $0x60] sm:$0xff] }
   0xf   :  { %4227 = vmatmul.mubr.msk.f32.gmra.mrb[2].mxu0 %vm138_vm0, %v61_v7  ;;  %4275 = vmatmul.mubr.msk.f32.gmra.mrb[2].mxu1 %vm138_vm0, %v5775_v8  ;;  %v73_v22 = vld [vmem:[%s10622_s20 + $0x68] sm:$0xff]  ;;  %v74_v23 = vld [vmem:[%s10622_s20 + $0x70] sm:$0xff]  ;;  %v75_v24 = vld [vmem:[%s10622_s20 + $0x78] sm:$0xff] }
  0x10   :  { %371 = vmatprep.mubr.f32.mxu0 %v10214_v2  ;;  %659 = vmatprep.mubr.f32.mxu1 %v10214_v2  ;;  %v76_v25 = vld [vmem:[%s10622_s20 + $0x80] sm:$0xff]  ;;  %v77_v26 = vld [vmem:[%s10622_s20 + $0x88] sm:$0xff]  ;;  %v78_v27 = vld [vmem:[%s10622_s20 + $0x90] sm:$0xff] }
  0x11   :  { %v79_v28 = vld [vmem:[%s10622_s20 + $0x98] sm:$0xff]  ;;  %v80_v29 = vld [vmem:[%s10622_s20 + $0xa0] sm:$0xff]  ;;  %v81_v30 = vld [vmem:[%s10622_s20 + $0xa8] sm:$0xff] }
  0x12   :  { %v82_v31 = vld [vmem:[%s10622_s20 + $0xb0] sm:$0xff]  ;;  %v83_v32 = vld [vmem:[%s10622_s20 + $0xb8] sm:$0xff]  ;;  %v84_v33 = vld [vmem:[%s10622_s20 + $0xc0] sm:$0xff] }
  0x13   :  { %4228 = vmatmul.mubr.msk.f32.gmra.mrb[4].mxu0 %vm138_vm0, %v62_v9  ;;  %4276 = vmatmul.mubr.msk.f32.gmra.mrb[4].mxu1 %vm138_vm0, %v5788_v10  ;;  %v85_v34 = vld [vmem:[%s10622_s20 + $0xc8] sm:$0xff]  ;;  %v86_v35 = vld [vmem:[%s10622_s20 + $0xd0] sm:$0xff]  ;;  %v87_v36 = vld [vmem:[%s10622_s20 + $0xd8] sm:$0xff] }
  0x14   :  { %377 = vmatprep.mubr.f32.mxu0 %v10214_v2  ;;  %665 = vmatprep.mubr.f32.mxu1 %v10214_v2  ;;  %v88_v37 = vld [vmem:[%s10622_s20 + $0xe0] sm:$0xff]  ;;  %v89_v38 = vld [vmem:[%s10622_s20 + $0xe8] sm:$0xff]  ;;  %v90_v39 = vld [vmem:[%s10622_s20 + $0xf0] sm:$0xff] }
  0x15   :  { %v91_v40 = vld [vmem:[%s10622_s20 + $0xf8] sm:$0xff]  ;;  %v92_v41 = vld [vmem:[%s10622_s20 + $0x100] sm:$0xff]  ;;  %v93_v42 = vld [vmem:[%s10622_s20 + $0x108] sm:$0xff] }
  0x16   :  { %v94_v43 = vld [vmem:[%s10622_s20 + $0x110] sm:$0xff]  ;;  %v95_v44 = vld [vmem:[%s10622_s20 + $0x118] sm:$0xff]  ;;  %v96_v45 = vld [vmem:[%s10622_s20 + $0x120] sm:$0xff] }
  0x17   :  { %4229 = vmatmul.mubr.msk.f32.gmra.mrb[6].mxu0 %vm138_vm0, %v63_v11  ;;  %4277 = vmatmul.mubr.msk.f32.gmra.mrb[6].mxu1 %vm138_vm0, %v5801_v12  ;;  %v97_v46 = vld [vmem:[%s10622_s20 + $0x128] sm:$0xff]  ;;  %v98_v47 = vld [vmem:[%s10622_s20 + $0x130] sm:$0xff]  ;;  %v99_v48 = vld [vmem:[%s10622_s20 + $0x138] sm:$0xff] }
  0x18   :  { %383 = vmatprep.mubr.f32.mxu0 %v10214_v2  ;;  %736 = vmatprep.mubr.f32.mxu1 %v10214_v2  ;;  %v100_v49 = vld [vmem:[%s10622_s20 + $0x140] sm:$0xff]  ;;  %v101_v50 = vld [vmem:[%s10622_s20 + $0x148] sm:$0xff]  ;;  %v102_v51 = vld [vmem:[%s10622_s20 + $0x150] sm:$0xff] }
  0x19   :  { %v103_v52 = vld [vmem:[%s10622_s20 + $0x158] sm:$0xff]  ;;  %v104_v53 = vld [vmem:[%s10622_s20 + $0x160] sm:$0xff]  ;;  %v105_v54 = vld [vmem:[%s10622_s20 + $0x168] sm:$0xff] }
  0x1a   :  { %v106_v55 = vld [vmem:[%s10622_s20 + $0x170] sm:$0xff]  ;;  %v107_v56 = vld [vmem:[%s10622_s20 + $0x178] sm:$0xff]  ;;  %v116_v60 = vld [vmem:[%s10624_s30] sm:$0xf] }
  0x1b   :  { %4230 = vmatmul.mubr.msk.f32.gmra.mrb[8].mxu0 %vm138_vm0, %v64_v13  ;;  %4278 = vmatmul.mubr.msk.f32.vlgmr.msra.gmra.mrb[8].mxu1 %vm138_vm0, %v60_v3  ;;  %v6135_v62 = vrot.slane %v116_v60, %v10213_v59  ;;  %v6141_v0 = vrot.slane %v116_v60, %v10212_v61 }
  0x1c   :  { %389 = vmatprep.mubr.f32.mxu0 %v10214_v2  ;;  %742 = vmatprep.mubr.f32.mxu1 %v10214_v2 }
  0x1f   :  { %4231 = vmatmul.mubr.msk.f32.gmra.mrb[10].mxu0 %vm138_vm0, %v65_v14  ;;  %4279 = vmatmul.mubr.msk.f32.gmra.mrb[10].mxu1 %vm138_vm0, %v61_v7 }
  0x20   :  { %395 = vmatprep.mubr.f32.mxu0 %v10214_v2  ;;  %748 = vmatprep.mubr.f32.mxu1 %v10214_v2 }
  0x23   :  { %4232 = vmatmul.mubr.msk.f32.gmra.mrb[12].mxu0 %vm138_vm0, %v66_v15  ;;  %4280 = vmatmul.mubr.msk.f32.gmra.mrb[12].mxu1 %vm138_vm0, %v62_v9 }
  0x24   :  { %401 = vmatprep.mubr.f32.mxu0 %v10214_v2  ;;  %754 = vmatprep.mubr.f32.mxu1 %v10214_v2 }
  0x27   :  { %4233 = vmatmul.mubr.msk.f32.gmra.mrb[14].mxu0 %vm138_vm0, %v67_v16  ;;  %4281 = vmatmul.mubr.msk.f32.gmra.mrb[14].mxu1 %vm138_vm0, %v63_v11 }
  0x28   :  { %407 = vmatprep.mubr.f32.mxu0 %v10214_v2  ;;  %760 = vmatprep.mubr.f32.mxu1 %v10214_v2 }
  0x2b   :  { %4234 = vmatmul.mubr.msk.f32.gmra.mrb[16].mxu0 %vm138_vm0, %v68_v17  ;;  %4282 = vmatmul.mubr.msk.f32.gmra.mrb[16].mxu1 %vm138_vm0, %v64_v13 }
  0x2c   :  { %413 = vmatprep.mubr.f32.mxu0 %v10214_v2  ;;  %766 = vmatprep.mubr.f32.mxu1 %v10214_v2 }
  0x2f   :  { %4235 = vmatmul.mubr.msk.f32.gmra.mrb[18].mxu0 %vm138_vm0, %v69_v18  ;;  %4283 = vmatmul.mubr.msk.f32.gmra.mrb[18].mxu1 %vm138_vm0, %v65_v14 }
  0x30   :  { %419 = vmatprep.mubr.f32.mxu0 %v10214_v2  ;;  %772 = vmatprep.mubr.f32.mxu1 %v10214_v2 }
  0x33   :  { %4236 = vmatmul.mubr.msk.f32.gmra.mrb[20].mxu0 %vm138_vm0, %v70_v19  ;;  %4284 = vmatmul.mubr.msk.f32.gmra.mrb[20].mxu1 %vm138_vm0, %v66_v15 }
  0x34   :  { %425 = vmatprep.mubr.f32.mxu0 %v10214_v2  ;;  %778 = vmatprep.mubr.f32.mxu1 %v10214_v2 }
  0x37   :  { %4237 = vmatmul.mubr.msk.f32.gmra.mrb[22].mxu0 %vm138_vm0, %v71_v20  ;;  %4285 = vmatmul.mubr.msk.f32.gmra.mrb[22].mxu1 %vm138_vm0, %v67_v16 }
  0x38   :  { %431 = vmatprep.mubr.f32.mxu0 %v10214_v2  ;;  %784 = vmatprep.mubr.f32.mxu1 %v10214_v2 }
  0x3b   :  { %4238 = vmatmul.mubr.msk.f32.gmra.mrb[24].mxu0 %vm138_vm0, %v72_v21  ;;  %4286 = vmatmul.mubr.msk.f32.gmra.mrb[24].mxu1 %vm138_vm0, %v68_v17 }
  0x3c   :  { %437 = vmatprep.mubr.f32.mxu0 %v10214_v2  ;;  %790 = vmatprep.mubr.f32.mxu1 %v10214_v2 }
  0x3f   :  { %4239 = vmatmul.mubr.msk.f32.gmra.mrb[26].mxu0 %vm138_vm0, %v73_v22  ;;  %4287 = vmatmul.mubr.msk.f32.gmra.mrb[26].mxu1 %vm138_vm0, %v69_v18 }
  0x40   :  { %443 = vmatprep.mubr.f32.mxu0 %v10214_v2  ;;  %796 = vmatprep.mubr.f32.mxu1 %v10214_v2 }
  0x43   :  { %4240 = vmatmul.mubr.msk.f32.gmra.mrb[28].mxu0 %vm138_vm0, %v74_v23  ;;  %4288 = vmatmul.mubr.msk.f32.gmra.mrb[28].mxu1 %vm138_vm0, %v70_v19 }
  0x44   :  { %449 = vmatprep.mubr.f32.mxu0 %v10214_v2  ;;  %802 = vmatprep.mubr.f32.mxu1 %v10214_v2 }
  0x47   :  { %4241 = vmatmul.mubr.msk.f32.gmra.mrb[30].mxu0 %vm138_vm0, %v75_v24  ;;  %4289 = vmatmul.mubr.msk.f32.gmra.mrb[30].mxu1 %vm138_vm0, %v71_v20 }
  0x48   :  { %455 = vmatprep.mubr.f32.mxu0 %v10214_v2  ;;  %808 = vmatprep.mubr.f32.mxu1 %v10214_v2 }
  0x4b   :  { %4242 = vmatmul.mubr.msk.f32.gmra.mrb[32].mxu0 %vm138_vm0, %v76_v25  ;;  %4290 = vmatmul.mubr.msk.f32.gmra.mrb[32].mxu1 %vm138_vm0, %v72_v21 }
  0x4c   :  { %461 = vmatprep.mubr.f32.mxu0 %v10214_v2  ;;  %814 = vmatprep.mubr.f32.mxu1 %v10214_v2 }
  0x4f   :  { %4243 = vmatmul.mubr.msk.f32.gmra.mrb[34].mxu0 %vm138_vm0, %v77_v26  ;;  %4291 = vmatmul.mubr.msk.f32.gmra.mrb[34].mxu1 %vm138_vm0, %v73_v22 }
  0x50   :  { %467 = vmatprep.mubr.f32.mxu0 %v10214_v2  ;;  %820 = vmatprep.mubr.f32.mxu1 %v10214_v2 }
  0x53   :  { %4244 = vmatmul.mubr.msk.f32.gmra.mrb[36].mxu0 %vm138_vm0, %v78_v27  ;;  %4292 = vmatmul.mubr.msk.f32.gmra.mrb[36].mxu1 %vm138_vm0, %v74_v23 }
  0x54   :  { %473 = vmatprep.mubr.f32.mxu0 %v10214_v2  ;;  %826 = vmatprep.mubr.f32.mxu1 %v10214_v2 }
  0x57   :  { %4245 = vmatmul.mubr.msk.f32.gmra.mrb[38].mxu0 %vm138_vm0, %v79_v28  ;;  %4293 = vmatmul.mubr.msk.f32.gmra.mrb[38].mxu1 %vm138_vm0, %v75_v24 }
  0x58   :  { %479 = vmatprep.mubr.f32.mxu0 %v10214_v2  ;;  %832 = vmatprep.mubr.f32.mxu1 %v10214_v2 }
  0x5b   :  { %4246 = vmatmul.mubr.msk.f32.gmra.mrb[40].mxu0 %vm138_vm0, %v80_v29  ;;  %4294 = vmatmul.mubr.msk.f32.gmra.mrb[40].mxu1 %vm138_vm0, %v76_v25 }
  0x5c   :  { %485 = vmatprep.mubr.f32.mxu0 %v10214_v2  ;;  %838 = vmatprep.mubr.f32.mxu1 %v10214_v2 }
  0x5f   :  { %4247 = vmatmul.mubr.msk.f32.gmra.mrb[42].mxu0 %vm138_vm0, %v81_v30  ;;  %4295 = vmatmul.mubr.msk.f32.gmra.mrb[42].mxu1 %vm138_vm0, %v77_v26 }
  0x60   :  { %491 = vmatprep.mubr.f32.mxu0 %v10214_v2  ;;  %844 = vmatprep.mubr.f32.mxu1 %v10214_v2 }
  0x63   :  { %4248 = vmatmul.mubr.msk.f32.gmra.mrb[44].mxu0 %vm138_vm0, %v82_v31  ;;  %4296 = vmatmul.mubr.msk.f32.gmra.mrb[44].mxu1 %vm138_vm0, %v78_v27 }
  0x64   :  { %497 = vmatprep.mubr.f32.mxu0 %v10214_v2  ;;  %850 = vmatprep.mubr.f32.mxu1 %v10214_v2 }
  0x67   :  { %4249 = vmatmul.mubr.msk.f32.gmra.mrb[46].mxu0 %vm138_vm0, %v83_v32  ;;  %4297 = vmatmul.mubr.msk.f32.gmra.mrb[46].mxu1 %vm138_vm0, %v79_v28 }
  0x68   :  { %503 = vmatprep.mubr.f32.mxu0 %v10214_v2  ;;  %856 = vmatprep.mubr.f32.mxu1 %v10214_v2 }
  0x6b   :  { %4250 = vmatmul.mubr.msk.f32.gmra.mrb[48].mxu0 %vm138_vm0, %v84_v33  ;;  %4298 = vmatmul.mubr.msk.f32.gmra.mrb[48].mxu1 %vm138_vm0, %v80_v29  ;;  %v10210_v29 = vsub.s32 2, %v6121_v58 }
  0x6c   :  { %509 = vmatprep.mubr.f32.mxu0 %v10214_v2  ;;  %862 = vmatprep.mubr.f32.mxu1 %v10214_v2 }
  0x6f   :  { %4251 = vmatmul.mubr.msk.f32.gmra.mrb[50].mxu0 %vm138_vm0, %v85_v34  ;;  %4299 = vmatmul.mubr.msk.f32.gmra.mrb[50].mxu1 %vm138_vm0, %v81_v30 }
  0x70   :  { %515 = vmatprep.mubr.f32.mxu0 %v10214_v2  ;;  %868 = vmatprep.mubr.f32.mxu1 %v10214_v2 }
  0x73   :  { %4252 = vmatmul.mubr.msk.f32.gmra.mrb[52].mxu0 %vm138_vm0, %v86_v35  ;;  %4300 = vmatmul.mubr.msk.f32.gmra.mrb[52].mxu1 %vm138_vm0, %v82_v31 }
  0x74   :  { %521 = vmatprep.mubr.f32.mxu0 %v10214_v2  ;;  %874 = vmatprep.mubr.f32.mxu1 %v10214_v2 }
  0x77   :  { %4253 = vmatmul.mubr.msk.f32.gmra.mrb[54].mxu0 %vm138_vm0, %v87_v36  ;;  %4301 = vmatmul.mubr.msk.f32.gmra.mrb[54].mxu1 %vm138_vm0, %v83_v32 }
  0x78   :  { %527 = vmatprep.mubr.f32.mxu0 %v10214_v2  ;;  %880 = vmatprep.mubr.f32.mxu1 %v10214_v2 }
  0x7b   :  { %4254 = vmatmul.mubr.msk.f32.gmra.mrb[56].mxu0 %vm138_vm0, %v88_v37  ;;  %4302 = vmatmul.mubr.msk.f32.gmra.mrb[56].mxu1 %vm138_vm0, %v84_v33 }
  0x7c   :  { %533 = vmatprep.mubr.f32.mxu0 %v10214_v2  ;;  %886 = vmatprep.mubr.f32.mxu1 %v10214_v2 }
  0x7f   :  { %4255 = vmatmul.mubr.msk.f32.gmra.mrb[58].mxu0 %vm138_vm0, %v89_v38  ;;  %4303 = vmatmul.mubr.msk.f32.gmra.mrb[58].mxu1 %vm138_vm0, %v85_v34 }
  0x80   :  { %539 = vmatprep.mubr.f32.mxu0 %v10214_v2  ;;  %892 = vmatprep.mubr.f32.mxu1 %v10214_v2 }
  0x83   :  { %4256 = vmatmul.mubr.msk.f32.gmra.mrb[60].mxu0 %vm138_vm0, %v90_v39  ;;  %4304 = vmatmul.mubr.msk.f32.gmra.mrb[60].mxu1 %vm138_vm0, %v86_v35 }
  0x84   :  { %545 = vmatprep.mubr.f32.mxu0 %v10214_v2  ;;  %898 = vmatprep.mubr.f32.mxu1 %v10214_v2 }
  0x87   :  { %4257 = vmatmul.mubr.msk.f32.gmra.mrb[62].mxu0 %vm138_vm0, %v91_v40  ;;  %4305 = vmatmul.mubr.msk.f32.gmra.mrb[62].mxu1 %vm138_vm0, %v87_v36 }
  0x88   :  { %551 = vmatprep.mubr.f32.mxu0 %v10214_v2  ;;  %904 = vmatprep.mubr.f32.mxu1 %v10214_v2 }
  0x8b   :  { %4258 = vmatmul.mubr.msk.f32.gmra.mrb[64].mxu0 %vm138_vm0, %v92_v41  ;;  %4306 = vmatmul.mubr.msk.f32.gmra.mrb[64].mxu1 %vm138_vm0, %v88_v37 }
  0x8c   :  { %557 = vmatprep.mubr.f32.mxu0 %v10214_v2  ;;  %910 = vmatprep.mubr.f32.mxu1 %v10214_v2 }
  0x8f   :  { %4259 = vmatmul.mubr.msk.f32.gmra.mrb[66].mxu0 %vm138_vm0, %v93_v42  ;;  %4307 = vmatmul.mubr.msk.f32.gmra.mrb[66].mxu1 %vm138_vm0, %v89_v38 }
  0x90   :  { %563 = vmatprep.mubr.f32.mxu0 %v10214_v2  ;;  %916 = vmatprep.mubr.f32.mxu1 %v10214_v2 }
  0x93   :  { %4260 = vmatmul.mubr.msk.f32.gmra.mrb[68].mxu0 %vm138_vm0, %v94_v43  ;;  %4308 = vmatmul.mubr.msk.f32.gmra.mrb[68].mxu1 %vm138_vm0, %v90_v39 }
  0x94   :  { %569 = vmatprep.mubr.f32.mxu0 %v10214_v2  ;;  %922 = vmatprep.mubr.f32.mxu1 %v10214_v2 }
  0x97   :  { %4261 = vmatmul.mubr.msk.f32.gmra.mrb[70].mxu0 %vm138_vm0, %v95_v44  ;;  %4309 = vmatmul.mubr.msk.f32.gmra.mrb[70].mxu1 %vm138_vm0, %v91_v40  ;;  %v6213_v40 = vrot.slane %v116_v60, %v10210_v29 }
  0x98   :  { %575 = vmatprep.mubr.f32.mxu0 %v10214_v2  ;;  %928 = vmatprep.mubr.f32.mxu1 %v10214_v2 }
  0x9b   :  { %4262 = vmatmul.mubr.msk.f32.gmra.mrb[72].mxu0 %vm138_vm0, %v96_v45  ;;  %4310 = vmatmul.mubr.msk.f32.gmra.mrb[72].mxu1 %vm138_vm0, %v92_v41 }
  0x9c   :  { %581 = vmatprep.mubr.f32.mxu0 %v10214_v2  ;;  %934 = vmatprep.mubr.f32.mxu1 %v10214_v2 }
  0x9f   :  { %4263 = vmatmul.mubr.msk.f32.gmra.mrb[74].mxu0 %vm138_vm0, %v97_v46  ;;  %4311 = vmatmul.mubr.msk.f32.gmra.mrb[74].mxu1 %vm138_vm0, %v93_v42 }
  0xa0   :  { %587 = vmatprep.mubr.f32.mxu0 %v10214_v2  ;;  %940 = vmatprep.mubr.f32.mxu1 %v10214_v2 }
  0xa3   :  { %4264 = vmatmul.mubr.msk.f32.gmra.mrb[76].mxu0 %vm138_vm0, %v98_v47  ;;  %4312 = vmatmul.mubr.msk.f32.gmra.mrb[76].mxu1 %vm138_vm0, %v94_v43 }
  0xa4   :  { %593 = vmatprep.mubr.f32.mxu0 %v10214_v2  ;;  %946 = vmatprep.mubr.f32.mxu1 %v10214_v2 }
  0xa7   :  { %4265 = vmatmul.mubr.msk.f32.gmra.mrb[78].mxu0 %vm138_vm0, %v99_v48  ;;  %4313 = vmatmul.mubr.msk.f32.gmra.mrb[78].mxu1 %vm138_vm0, %v95_v44 }
  0xa8   :  { %599 = vmatprep.mubr.f32.mxu0 %v10214_v2  ;;  %952 = vmatprep.mubr.f32.mxu1 %v10214_v2 }
  0xab   :  { %4266 = vmatmul.mubr.msk.f32.gmra.mrb[80].mxu0 %vm138_vm0, %v100_v49  ;;  %4314 = vmatmul.mubr.msk.f32.gmra.mrb[80].mxu1 %vm138_vm0, %v96_v45 }
  0xac   :  { %605 = vmatprep.mubr.f32.mxu0 %v10214_v2  ;;  %958 = vmatprep.mubr.f32.mxu1 %v10214_v2 }
  0xaf   :  { %4267 = vmatmul.mubr.msk.f32.gmra.mrb[82].mxu0 %vm138_vm0, %v101_v50  ;;  %4315 = vmatmul.mubr.msk.f32.gmra.mrb[82].mxu1 %vm138_vm0, %v97_v46 }
  0xb0   :  { %611 = vmatprep.mubr.f32.mxu0 %v10214_v2  ;;  %964 = vmatprep.mubr.f32.mxu1 %v10214_v2 }
  0xb3   :  { %4268 = vmatmul.mubr.msk.f32.gmra.mrb[84].mxu0 %vm138_vm0, %v102_v51  ;;  %4316 = vmatmul.mubr.msk.f32.gmra.mrb[84].mxu1 %vm138_vm0, %v98_v47 }
  0xb4   :  { %617 = vmatprep.mubr.f32.mxu0 %v10214_v2  ;;  %970 = vmatprep.mubr.f32.mxu1 %v10214_v2 }
  0xb7   :  { %4269 = vmatmul.mubr.msk.f32.gmra.mrb[86].mxu0 %vm138_vm0, %v103_v52  ;;  %4317 = vmatmul.mubr.msk.f32.gmra.mrb[86].mxu1 %vm138_vm0, %v99_v48 }
  0xb8   :  { %623 = vmatprep.mubr.f32.mxu0 %v10214_v2  ;;  %976 = vmatprep.mubr.f32.mxu1 %v10214_v2 }
  0xbb   :  { %4270 = vmatmul.mubr.msk.f32.gmra.mrb[88].mxu0 %vm138_vm0, %v104_v53  ;;  %4318 = vmatmul.mubr.msk.f32.gmra.mrb[88].mxu1 %vm138_vm0, %v100_v49 }
  0xbc   :  { %629 = vmatprep.mubr.f32.mxu0 %v10214_v2  ;;  %982 = vmatprep.mubr.f32.mxu1 %v10214_v2 }
  0xbf   :  { %4271 = vmatmul.mubr.msk.f32.gmra.mrb[90].mxu0 %vm138_vm0, %v105_v54  ;;  %4319 = vmatmul.mubr.msk.f32.gmra.mrb[90].mxu1 %vm138_vm0, %v101_v50 }
  0xc0   :  { %635 = vmatprep.mubr.f32.mxu0 %v10214_v2  ;;  %988 = vmatprep.mubr.f32.mxu1 %v10214_v2 }
  0xc3   :  { %4272 = vmatmul.mubr.msk.f32.gmra.mrb[92].mxu0 %vm138_vm0, %v106_v55  ;;  %4320 = vmatmul.mubr.msk.f32.gmra.mrb[92].mxu1 %vm138_vm0, %v102_v51 }
  0xc4   :  { %641 = vmatprep.mubr.f32.mxu0 %v10214_v2  ;;  %994 = vmatprep.mubr.f32.mxu1 %v10214_v2 }
  0xc7   :  { %4273 = vmatmul.mubr.msk.f32.gmra.mrb[94].mxu0 %vm138_vm0, %v107_v56  ;;  %4321 = vmatmul.mubr.msk.f32.gmra.mrb[94].mxu1 %vm138_vm0, %v103_v52 }
  0xc8   :  { %1000 = vmatprep.mubr.f32.mxu1 %v10214_v2 }
  0xcb   :  { %4322 = vmatmul.mubr.msk.f32.gmra.mrb[96].mxu1 %vm138_vm0, %v104_v53 }
  0xcc   :  { %1006 = vmatprep.mubr.f32.mxu1 %v10214_v2 }
  0xcf   :  { %4323 = vmatmul.mubr.msk.f32.gmra.mrb[98].mxu1 %vm138_vm0, %v105_v54 }
  0xd0   :  { %1012 = vmatprep.mubr.f32.mxu1 %v10214_v2 }
  0xd3   :  { %4324 = vmatmul.mubr.msk.f32.gmra.mrb[100].mxu1 %vm138_vm0, %v106_v55 }
  0xd4   :  { %1018 = vmatprep.mubr.f32.mxu1 %v10214_v2 }
  0xd7   :  { %4325 = vmatmul.mubr.msk.f32.gmra.mrb[102].mxu1 %vm138_vm0, %v107_v56 }
  0xd8   :  { %1024 = vmatprep.mubr.f32.mxu1 %v10214_v2 }
  0xdb   :  { %4326 = vmatmul.mubr.msk.f32.gmra.mrb[104].mxu1 %vm138_vm0, %v5756_v4 }
  0xdc   :  { %1030 = vmatprep.mubr.f32.mxu1 %v10214_v2 }
  0xde   :  { %v6137_v63 = vpop.f32.mrb[0].mxu1  ;;  %v361_v1 = vpop.f32.mrb[0].mxu0 }
  0xdf   :  { %v6143_v3 = vpop.f32.mrb[1].mxu1  ;;  %4327 = vmatmul.mubr.msk.f32.gmra.mrb[106].mxu1 %vm138_vm0, %v5775_v8  ;;  %v6148_v4 = vadd.f32 %v361_v1, %v6135_v62  ;;  %v363_v5 = vpop.f32.mrb[1].mxu0 }
  0xe0   :  { %1036 = vmatprep.mubr.f32.mxu1 %v10214_v2  ;;  %v6152_v6 = vadd.f32 %v363_v5, %v6141_v0 }
  0xe1   :  { %10625 = vst [vmem:[#allocation4_spill] sm:$0xff] %v6148_v4  ;;  %v10240_v13 = vmax.f32 %v6148_v4, 0.0 }
  0xe2   :  { %10626 = vst [vmem:[#allocation5_spill] sm:$0xff] %v6152_v6  ;;  %v6154_v7 = vpop.f32.mrb[2].mxu1  ;;  %v367_v9 = vpop.f32.mrb[2].mxu0  ;;  %v10222_v15 = vmax.f32 %v6152_v6, 0.0 }
  0xe3   :  { %v6156_v11 = vpop.f32.mrb[3].mxu1  ;;  %4328 = vmatmul.mubr.msk.f32.gmra.mrb[108].mxu1 %vm138_vm0, %v5788_v10  ;;  %v6162_v8 = vadd.f32 %v367_v9, %v6135_v62  ;;  %v369_v14 = vpop.f32.mrb[3].mxu0 }
  0xe4   :  { %1042 = vmatprep.mubr.f32.mxu1 %v10214_v2  ;;  %v6167_v16 = vadd.f32 %v369_v14, %v6141_v0 }
  0xe5   :  { %10627 = vst [vmem:[#allocation6_spill] sm:$0xff] %v6162_v8  ;;  %v10238_v17 = vmax.f32 %v6162_v8, 0.0 }
  0xe6   :  { %10628 = vst [vmem:[#allocation7_spill] sm:$0xff] %v6167_v16  ;;  %v6170_v18 = vpop.f32.mrb[4].mxu1  ;;  %v10223_v19 = vmax.f32 %v6167_v16, 0.0  ;;  %v373_v10 = vpop.f32.mrb[4].mxu0 }
  0xe7   :  { %v6173_v20 = vpop.f32.mrb[5].mxu1  ;;  %4329 = vmatmul.mubr.msk.f32.gmra.mrb[110].mxu1 %vm138_vm0, %v5801_v12  ;;  %v4647_v21 = vpack.c.bf16 %v10238_v17, %v10240_v13  ;;  %v6182_v22 = vadd.f32 %v373_v10, %v6135_v62  ;;  %v375_v23 = vpop.f32.mrb[5].mxu0  ;;  %v10211_v12 = vsub.s32 3, %v6121_v58 }
  0xe8   :  { %v4645_v24 = vpack.c.bf16 %v10223_v19, %v10222_v15  ;;  %v6189_v25 = vadd.f32 %v375_v23, %v6141_v0 }
  0xe9   :  { %10629 = vst [vmem:[#allocation8_spill] sm:$0xff] %v6182_v22  ;;  %v10237_v30 = vmax.f32 %v6182_v22, 0.0  ;;  %v6208_v37 = vrot.slane %v116_v60, %v10211_v12 }
  0xea   :  { %10630 = vst [vmem:[#allocation9_spill] sm:$0xff] %v6189_v25  ;;  %v6191_v26 = vpop.f32.mrb[6].mxu1  ;;  %v379_v27 = vpop.f32.mrb[6].mxu0  ;;  %4646 = vmatprep.subr.bf16.mxu0 %v4645_v24  ;;  %v10220_v33 = vmax.f32 %v6189_v25, 0.0 }
  0xeb   :  { %v6194_v28 = vpop.f32.mrb[7].mxu1  ;;  %v6199_v31 = vadd.f32 %v379_v27, %v6135_v62  ;;  %v381_v32 = vpop.f32.mrb[7].mxu0  ;;  %4648 = vmatpush1.bf16.msra.mxu0 %v4647_v21 }
  0xec   :  { %v6203_v34 = vadd.f32 %v381_v32, %v6141_v0 }
  0xed   :  { %10631 = vst [vmem:[#allocation10_spill] sm:$0xff] %v6199_v31  ;;  %v10236_v35 = vmax.f32 %v6199_v31, 0.0 }
  0xee   :  { %10632 = vst [vmem:[#allocation11_spill] sm:$0xff] %v6203_v34  ;;  %v738_v36 = vpop.f32.mrb[8].mxu1  ;;  %v10221_v38 = vmax.f32 %v6203_v34, 0.0  ;;  %v385_v39 = vpop.f32.mrb[8].mxu0 }
  0xef   :  { %v740_v41 = vpop.f32.mrb[9].mxu1  ;;  %v4651_v42 = vpack.c.bf16 %v10236_v35, %v10237_v30  ;;  %v6220_v43 = vadd.f32 %v385_v39, %v6135_v62  ;;  %v387_v44 = vpop.f32.mrb[9].mxu0  ;;  %v6233_v50 = vadd.f32 %v738_v36, %v6213_v40 }
  0xf0   :  { %v4649_v45 = vpack.c.bf16 %v10221_v38, %v10220_v33  ;;  %v6227_v46 = vadd.f32 %v387_v44, %v6141_v0  ;;  %v6230_v47 = vadd.f32 %v740_v41, %v6208_v37 }
  0xf1   :  { %10633 = vst [vmem:[#allocation12_spill] sm:$0xff] %v6220_v43  ;;  %10636 = vst [vmem:[#allocation15_spill] sm:$0xff] %v6233_v50  ;;  %v10235_v53 = vmax.f32 %v6220_v43, 0.0  ;;  %v10227_v24 = vmax.f32 %v6233_v50, 0.0 }
  0xf2   :  { %10634 = vst [vmem:[#allocation13_spill] sm:$0xff] %v6227_v46  ;;  %10635 = vst [vmem:[#allocation14_spill] sm:$0xff] %v6230_v47  ;;  %v744_v48 = vpop.f32.mrb[10].mxu1  ;;  %v391_v49 = vpop.f32.mrb[10].mxu0  ;;  %4650 = vmatprep.subr.bf16.mxu0 %v4649_v45  ;;  %v10218_v57 = vmax.f32 %v6227_v46, 0.0  ;;  %v10216_v9 = vmax.f32 %v6230_v47, 0.0 }
  0xf3   :  { %v6236_v51 = vadd.f32 %v744_v48, %v6213_v40  ;;  %v746_v52 = vpop.f32.mrb[11].mxu1  ;;  %v6240_v54 = vadd.f32 %v391_v49, %v6135_v62  ;;  %v393_v55 = vpop.f32.mrb[11].mxu0  ;;  %4652 = vmatpush1.bf16.msra.mxu0 %v4651_v42 }
  0xf4   :  { %v6243_v56 = vadd.f32 %v746_v52, %v6208_v37  ;;  %v6247_v60 = vadd.f32 %v393_v55, %v6141_v0 }
  0xf5   :  { %10637 = vst [vmem:[#allocation16_spill] sm:$0xff] %v6236_v51  ;;  %10638 = vst [vmem:[#allocation17_spill] sm:$0xff] %v6240_v54  ;;  %v10224_v1 = vmax.f32 %v6236_v51, 0.0  ;;  %v10234_v5 = vmax.f32 %v6240_v54, 0.0 }
  0xf6   :  { %10639 = vst [vmem:[#allocation18_spill] sm:$0xff] %v6243_v56  ;;  %10640 = vst [vmem:[#allocation19_spill] sm:$0xff] %v6247_v60  ;;  %v10217_v14 = vmax.f32 %v6243_v56, 0.0  ;;  %v750_v10 = vpop.f32.mrb[12].mxu1  ;;  %v10219_v21 = vmax.f32 %v6247_v60, 0.0  ;;  %v397_v23 = vpop.f32.mrb[12].mxu0 }
  0xf7   :  { %v752_v27 = vpop.f32.mrb[13].mxu1  ;;  %v4655_v32 = vpack.c.bf16 %v10234_v5, %v10235_v53  ;;  %v6260_v36 = vadd.f32 %v397_v23, %v6135_v62  ;;  %v399_v39 = vpop.f32.mrb[13].mxu0  ;;  %v4751_v45 = vpack.c.bf16 %v10224_v1, %v10227_v24  ;;  %v6281_v55 = vadd.f32 %v750_v10, %v6213_v40 }
  0xf8   :  { %v4749_v41 = vpack.c.bf16 %v10217_v14, %v10216_v9  ;;  %v4653_v42 = vpack.c.bf16 %v10219_v21, %v10218_v57  ;;  %v6271_v44 = vadd.f32 %v399_v39, %v6141_v0  ;;  %v6278_v48 = vadd.f32 %v752_v27, %v6208_v37 }
  0xf9   :  { %10641 = vst [vmem:[#allocation20_spill] sm:$0xff] %v6260_v36  ;;  %10644 = vst [vmem:[#allocation23_spill] sm:$0xff] %v6281_v55  ;;  %v10233_v29 = vmax.f32 %v6260_v36, 0.0 }
  0xfa   :  { %10642 = vst [vmem:[#allocation21_spill] sm:$0xff] %v6271_v44  ;;  %10643 = vst [vmem:[#allocation22_spill] sm:$0xff] %v6278_v48  ;;  %v756_v49 = vpop.f32.mrb[14].mxu1  ;;  %4750 = vmatprep.subr.bf16.mxu1 %v4749_v41  ;;  %v403_v52 = vpop.f32.mrb[14].mxu0  ;;  %4654 = vmatprep.subr.bf16.mxu0 %v4653_v42  ;;  %v10231_v41 = vmax.f32 %v6271_v44, 0.0 }
  0xfb   :  { %v6284_v23 = vadd.f32 %v756_v49, %v6213_v40  ;;  %v758_v39 = vpop.f32.mrb[15].mxu1  ;;  %4752 = vmatpush1.bf16.msra.mxu1 %v4751_v45  ;;  %v6288_v12 = vadd.f32 %v403_v52, %v6135_v62  ;;  %v405_v61 = vpop.f32.mrb[15].mxu0  ;;  %4656 = vmatpush1.bf16.msra.mxu0 %v4655_v32  ;;  %v1258_v45 = vld [vmem:[%s10192_s1 + $0x8] sm:$0xff]  ;;  %v10225_v52 = vmax.f32 %v6278_v48, 0.0 }
  0xfc   :  { %v6291_v27 = vadd.f32 %v758_v39, %v6208_v37  ;;  %v6295_v10 = vadd.f32 %v405_v61, %v6141_v0  ;;  %1329 = vmatprep.mubr.f32.mxu0 %v1258_v45  ;;  %1471 = vmatprep.mubr.f32.mxu1 %v1258_v45  ;;  %v10230_v61 = vmax.f32 %v6281_v55, 0.0 }
  0xfd   :  { %10645 = vst [vmem:[#allocation24_spill] sm:$0xff] %v6284_v23  ;;  %10646 = vst [vmem:[#allocation25_spill] sm:$0xff] %v6288_v12  ;;  %v10229_v42 = vmax.f32 %v6284_v23, 0.0  ;;  %v10232_v49 = vmax.f32 %v6288_v12, 0.0 }
  0xfe   :  { %10647 = vst [vmem:[#allocation26_spill] sm:$0xff] %v6291_v27  ;;  %10648 = vst [vmem:[#allocation27_spill] sm:$0xff] %v6295_v10  ;;  %v10226_v32 = vmax.f32 %v6291_v27, 0.0  ;;  %v10228_v39 = vmax.f32 %v6295_v10, 0.0  ;;  %v409_v59 = vpop.f32.mrb[16].mxu0  ;;  %v762_v2 = vpop.f32.mrb[16].mxu1 }
  0xff   :  { %v4659_v9 = vpack.c.bf16 %v10232_v49, %v10233_v29  ;;  %v6311_v14 = vadd.f32 %v409_v59, %v6135_v62  ;;  %v411_v57 = vpop.f32.mrb[17].mxu0  ;;  %v764_v21 = vpop.f32.mrb[17].mxu1  ;;  %v4755_v59 = vpack.c.bf16 %v10229_v42, %v10230_v61 }
 0x100   :  { %v4753_v33 = vpack.c.bf16 %v10226_v32, %v10225_v52  ;;  %v4657_v45 = vpack.c.bf16 %v10228_v39, %v10231_v41  ;;  %v6322_v38 = vadd.f32 %v411_v57, %v6141_v0  ;;  %v6329_v19 = vadd.f32 %v764_v21, %v6208_v37 }
 0x101   :  { %10649 = vst [vmem:[#allocation28_spill] sm:$0xff] %v6311_v14  ;;  %v10239_v52 = vmax.f32 %v6311_v14, 0.0  ;;  %v6336_v57 = vadd.f32 %v762_v2, %v6213_v40 }
 0x102   :  { %10650 = vst [vmem:[#allocation29_spill] sm:$0xff] %v6322_v38  ;;  %v415_v15 = vpop.f32.mrb[18].mxu0  ;;  %4754 = vmatprep.subr.bf16.mxu1 %v4753_v33  ;;  %10651 = vst [vmem:[#allocation30_spill] sm:$0xff] %v6329_v19  ;;  %v768_v1 = vpop.f32.mrb[18].mxu1  ;;  %4658 = vmatprep.subr.bf16.mxu0 %v4657_v45  ;;  %v10242_v33 = vmax.f32 %v6322_v38, 0.0  ;;  %v10244_v61 = vmax.f32 %v6329_v19, 0.0 }
 0x103   :  { %v6333_v32 = vadd.f32 %v415_v15, %v6135_v62  ;;  %v417_v24 = vpop.f32.mrb[19].mxu0  ;;  %4756 = vmatpush1.bf16.msra.mxu1 %v4755_v59  ;;  %10652 = vst [vmem:[#allocation31_spill] sm:$0xff] %v6336_v57  ;;  %v6339_v39 = vadd.f32 %v768_v1, %v6213_v40  ;;  %v770_v42 = vpop.f32.mrb[19].mxu1  ;;  %4660 = vmatpush1.bf16.msra.mxu0 %v4659_v9 }
 0x104   :  { %v6343_v21 = vadd.f32 %v417_v24, %v6141_v0  ;;  %v6346_v45 = vadd.f32 %v770_v42, %v6208_v37  ;;  %v656_v15 = vadd.f32 %v6154_v7, %v6135_v62  ;;  %v658_v1 = vadd.f32 %v6156_v11, %v6141_v0 }
 0x105   :  { %10653 = vst [vmem:[#allocation32_spill] sm:$0xff] %v6339_v39  ;;  %v10241_v59 = vmax.f32 %v6333_v32, 0.0  ;;  %v10246_v2 = vmax.f32 %v6339_v39, 0.0  ;;  %v10247_v42 = vmax.f32 %v6336_v57, 0.0 }
 0x106   :  { %10654 = vst [vmem:[#allocation33_spill] sm:$0xff] %v6346_v45  ;;  %v10243_v9 = vmax.f32 %v6343_v21, 0.0  ;;  %v421_v41 = vpop.f32.mrb[20].mxu0  ;;  %v10245_v24 = vmax.f32 %v6346_v45, 0.0  ;;  %v774_v49 = vpop.f32.mrb[20].mxu1  ;;  %v6372_v17 = vmax.f32 %v656_v15, 0.0 }
 0x107   :  { %v4663_v7 = vpack.c.bf16 %v10241_v59, %v10239_v52  ;;  %v422_v29 = vadd.f32 %v421_v41, %v6135_v62  ;;  %v423_v5 = vpop.f32.mrb[21].mxu0  ;;  %v776_v53 = vpop.f32.mrb[21].mxu1  ;;  %v662_v52 = vadd.f32 %v6170_v18, %v6135_v62  ;;  %v4759_v13 = vpack.c.bf16 %v10246_v2, %v10247_v42 }
 0x108   :  { %v4661_v11 = vpack.c.bf16 %v10243_v9, %v10242_v33  ;;  %v424_v35 = vadd.f32 %v423_v5, %v6141_v0  ;;  %v4757_v30 = vpack.c.bf16 %v10245_v24, %v10244_v61  ;;  %v6380_v59 = vmax.f32 %v658_v1, 0.0 }
 0x109   :  { %v1089_v41 = vmax.f32 %v422_v29, 0.0  ;;  %v664_v5 = vadd.f32 %v6173_v20, %v6141_v0  ;;  %v6389_v42 = vadd.f32 %v776_v53, %v6208_v37  ;;  %v6391_v20 = vmax.f32 %v662_v52, 0.0 }
 0x10a   :  { %v1090_v33 = vmax.f32 %v424_v35, 0.0  ;;  %v427_v9 = vpop.f32.mrb[22].mxu0  ;;  %4758 = vmatprep.subr.bf16.mxu1 %v4757_v30  ;;  %v780_v61 = vpop.f32.mrb[22].mxu1  ;;  %4662 = vmatprep.subr.bf16.mxu0 %v4661_v11  ;;  %v6402_v58 = vadd.f32 %v774_v49, %v6213_v40 }
 0x10b   :  { %v1897_v15 = vsub.f32 %v1089_v41, %v6372_v17  ;;  %v428_v18 = vadd.f32 %v427_v9, %v6135_v62  ;;  %v429_v29 = vpop.f32.mrb[23].mxu0  ;;  %4760 = vmatpush1.bf16.msra.mxu1 %v4759_v13  ;;  %v782_v24 = vpop.f32.mrb[23].mxu1  ;;  %4664 = vmatpush1.bf16.msra.mxu0 %v4663_v7  ;;  %10655 = vst [vmem:[#allocation34_spill] sm:$0xff] %v6389_v42  ;;  %10656 = vst [vmem:[#allocation35_spill] sm:$0xff] %v6391_v20  ;;  %v6399_v9 = vmax.f32 %v664_v5, 0.0  ;;  %v2213_v5 = vld [vmem:[%s10193_s9 + $0x160] sm:$0xff] }
 0x10c   :  { %v1898_v2 = vsub.f32 %v1090_v33, %v6380_v59  ;;  %v430_v1 = vadd.f32 %v429_v29, %v6141_v0  ;;  %v6394_v35 = vadd.f32 %v780_v61, %v6213_v40  ;;  %v6397_v11 = vadd.f32 %v782_v24, %v6208_v37  ;;  %10659 = vst [vmem:[#allocation38_spill] sm:$0xff] %v6402_v58  ;;  %v2209_v61 = vld [vmem:[%s10193_s9 + $0x140] sm:$0xff] }
 0x10d   :  { %v1093_v30 = vmax.f32 %v428_v18, 0.0  ;;  %v2053_v19 = vand.u32 2147483647, %v1897_v15 }
 0x10e   :  { %10657 = vst [vmem:[#allocation36_spill] sm:$0xff] %v6394_v35  ;;  %10658 = vst [vmem:[#allocation37_spill] sm:$0xff] %v6397_v11  ;;  %v1094_v13 = vmax.f32 %v430_v1, 0.0  ;;  %v433_v7 = vpop.f32.mrb[24].mxu0  ;;  %v786_v29 = vpop.f32.mrb[24].mxu1 }
 0x10f   :  { %v4667_v53 = vpack.c.bf16 %v1093_v30, %v1089_v41  ;;  %v1901_v52 = vsub.f32 %v1093_v30, %v6391_v20  ;;  %v435_v45 = vpop.f32.mrb[25].mxu0  ;;  %v788_v18 = vpop.f32.mrb[25].mxu1  ;;  %v2054_v24 = vand.u32 2147483647, %v1898_v2  ;;  %v2210_v41 = vld [vmem:[%s10193_s9 + $0x148] sm:$0xff]  ;;  %v6420_v2 = vadd.f32 %v433_v7, %v6135_v62 }
 0x110   :  { %v4665_v1 = vpack.c.bf16 %v1094_v13, %v1090_v33  ;;  %v1902_v49 = vsub.f32 %v1094_v13, %v6399_v9  ;;  %v2214_v30 = vld [vmem:[%s10193_s9 + $0x168] sm:$0xff]  ;;  %v10260_v33 = vmax.f32 %v6397_v11, 0.0  ;;  %v6425_v13 = vadd.f32 %v435_v45, %v6141_v0 }
 0x111   :  { %v2057_v15 = vand.u32 2147483647, %v1901_v52  ;;  %v6428_v52 = vmul.f32 %v2209_v61, %v2053_v19  ;;  %v10663_v7 = vmax.f32 %v6389_v42, 0.0  ;;  %v6437_v25 = vadd.f32 %v788_v18, %v6208_v37 }
 0x112   :  { %v2058_v47 = vand.u32 2147483647, %v1902_v49  ;;  %10660 = vst [vmem:[#allocation39_spill] sm:$0xff] %v6425_v13  ;;  %v792_v56 = vpop.f32.mrb[26].mxu1  ;;  %v439_v46 = vpop.f32.mrb[26].mxu0  ;;  %4666 = vmatprep.subr.bf16.mxu0 %v4665_v1  ;;  %v6439_v34 = vmul.f32 %v2210_v41, %v2054_v24  ;;  %v10667_v19 = vmax.f32 %v6402_v58, 0.0  ;;  %v6448_v1 = vadd.f32 %v786_v29, %v6213_v40 }
 0x113   :  { %10661 = vst [vmem:[#allocation40_spill] sm:$0xff] %v6428_v52  ;;  %v6430_v60 = vmul.f32 %v2213_v5, %v2057_v15  ;;  %v4761_v27 = vpack.c.bf16 %v10260_v33, %v10663_v7  ;;  %10664 = vst [vmem:[#allocation42_spill] sm:$0xff] %v6437_v25  ;;  %v794_v49 = vpop.f32.mrb[27].mxu1  ;;  %v441_v45 = vpop.f32.mrb[27].mxu0  ;;  %4668 = vmatpush1.bf16.msra.mxu0 %v4667_v53  ;;  %v10668_v61 = vmax.f32 %v6394_v35, 0.0  ;;  %v10269_v15 = vmax.f32 %v6420_v2, 0.0 }
 0x114   :  { %10665 = vst [vmem:[#allocation43_spill] sm:$0xff] %v6439_v34  ;;  %v6441_v48 = vmul.f32 %v2214_v30, %v2058_v47  ;;  %10669 = vst [vmem:[#allocation45_spill] sm:$0xff] %v6448_v1  ;;  %v6452_v18 = vadd.f32 %v792_v56, %v6213_v40  ;;  %v6455_v53 = vadd.f32 %v794_v49, %v6208_v37  ;;  %v10265_v7 = vmax.f32 %v6437_v25, 0.0 }
 0x115   :  { %10662 = vst [vmem:[#allocation41_spill] sm:$0xff] %v6430_v60  ;;  %v4763_v5 = vpack.c.bf16 %v10668_v61, %v10667_v19  ;;  %4762 = vmatprep.subr.bf16.mxu1 %v4761_v27  ;;  %v6458_v47 = vadd.f32 %v439_v46, %v6135_v62  ;;  %v6462_v41 = vadd.f32 %v441_v45, %v6141_v0  ;;  %v10270_v45 = vmax.f32 %v6448_v1, 0.0 }
 0x116   :  { %10666 = vst [vmem:[#allocation44_spill] sm:$0xff] %v6441_v48  ;;  %10670 = vst [vmem:[#allocation46_spill] sm:$0xff] %v6452_v18  ;;  %v445_v29 = vpop.f32.mrb[28].mxu0  ;;  %v798_v30 = vpop.f32.mrb[28].mxu1  ;;  %v10266_v46 = vmax.f32 %v6455_v53, 0.0  ;;  %v10676_v33 = vmax.f32 %v6452_v18, 0.0 }
 0x117   :  { %10671 = vst [vmem:[#allocation47_spill] sm:$0xff] %v6455_v53  ;;  %10672 = vst [vmem:[#allocation48_spill] sm:$0xff] %v6458_v47  ;;  %4764 = vmatpush1.bf16.msra.mxu1 %v4763_v5  ;;  %v10268_v19 = vmax.f32 %v6458_v47, 0.0  ;;  %v447_v61 = vpop.f32.mrb[29].mxu0  ;;  %v800_v5 = vpop.f32.mrb[29].mxu1  ;;  %v6475_v24 = vadd.f32 %v445_v29, %v6135_v62  ;;  %v10677_v29 = vmax.f32 %v6425_v13, 0.0 }
 0x118   :  { %10673 = vst [vmem:[#allocation49_spill] sm:$0xff] %v6462_v41  ;;  %v6478_v27 = vadd.f32 %v447_v61, %v6141_v0  ;;  %v4765_v56 = vpack.c.bf16 %v10266_v46, %v10265_v7  ;;  %v4767_v42 = vpack.c.bf16 %v10676_v33, %v10270_v45  ;;  %v10678_v61 = vmax.f32 %v6462_v41, 0.0 }
 0x119   :  { %10674 = vst [vmem:[#allocation50_spill] sm:$0xff] %v6475_v24  ;;  %v4671_v49 = vpack.c.bf16 %v10268_v19, %v10269_v15  ;;  %v6497_v25 = vadd.f32 %v800_v5, %v6208_v37  ;;  %v6504_v15 = vadd.f32 %v798_v30, %v6213_v40 }
 0x11a   :  { %10675 = vst [vmem:[#allocation51_spill] sm:$0xff] %v6478_v27  ;;  %v4669_v11 = vpack.c.bf16 %v10678_v61, %v10677_v29  ;;  %v451_v52 = vpop.f32.mrb[30].mxu0  ;;  %v804_v7 = vpop.f32.mrb[30].mxu1  ;;  %4766 = vmatprep.subr.bf16.mxu1 %v4765_v56  ;;  %v10687_v30 = vmax.f32 %v6478_v27, 0.0 }
 0x11b   :  { %10679 = vst [vmem:[#allocation52_spill] sm:$0xff] %v6497_v25  ;;  %v6501_v53 = vadd.f32 %v451_v52, %v6135_v62  ;;  %v453_v19 = vpop.f32.mrb[31].mxu0  ;;  %10681 = vst [vmem:[#allocation54_spill] sm:$0xff] %v6504_v15  ;;  %v6507_v33 = vadd.f32 %v804_v7, %v6213_v40  ;;  %v806_v45 = vpop.f32.mrb[31].mxu1  ;;  %4768 = vmatpush1.bf16.msra.mxu1 %v4767_v42  ;;  %v10279_v56 = vmax.f32 %v6504_v15, 0.0  ;;  %v10690_v48 = vmax.f32 %v6497_v25, 0.0 }
 0x11c   :  { %v6511_v5 = vadd.f32 %v453_v19, %v6141_v0  ;;  %v6514_v61 = vadd.f32 %v806_v45, %v6208_v37  ;;  %4670 = vmatprep.subr.bf16.mxu0 %v4669_v11  ;;  %v10685_v19 = vmax.f32 %v6475_v24, 0.0 }
 0x11d   :  { %10680 = vst [vmem:[#allocation53_spill] sm:$0xff] %v6501_v53  ;;  %10682 = vst [vmem:[#allocation55_spill] sm:$0xff] %v6507_v33  ;;  %v10275_v52 = vmax.f32 %v6501_v53, 0.0  ;;  %4672 = vmatpush1.bf16.msra.mxu0 %v4671_v49 }
 0x11e   :  { %10683 = vst [vmem:[#allocation56_spill] sm:$0xff] %v6511_v5  ;;  %10684 = vst [vmem:[#allocation57_spill] sm:$0xff] %v6514_v61  ;;  %v457_v7 = vpop.f32.mrb[32].mxu0  ;;  %v810_v60 = vpop.f32.mrb[32].mxu1  ;;  %v10688_v34 = vmax.f32 %v6511_v5, 0.0  ;;  %v10691_v13 = vmax.f32 %v6514_v61, 0.0 }
 0x11f   :  { %v4675_v42 = vpack.c.bf16 %v10275_v52, %v10685_v19  ;;  %v6526_v11 = vadd.f32 %v457_v7, %v6135_v62  ;;  %v459_v45 = vpop.f32.mrb[33].mxu0  ;;  %v812_v49 = vpop.f32.mrb[33].mxu1  ;;  %v10692_v7 = vmax.f32 %v6507_v33, 0.0 }
 0x120   :  { %v4673_v46 = vpack.c.bf16 %v10688_v34, %v10687_v30  ;;  %v6534_v29 = vadd.f32 %v459_v45, %v6141_v0  ;;  %v4769_v19 = vpack.c.bf16 %v10691_v13, %v10690_v48  ;;  %v6545_v27 = vadd.f32 %v812_v49, %v6208_v37 }
 0x121   :  { %10686 = vst [vmem:[#allocation58_spill] sm:$0xff] %v6526_v11  ;;  %v4771_v52 = vpack.c.bf16 %v10692_v7, %v10279_v56  ;;  %v6552_v48 = vadd.f32 %v810_v60, %v6213_v40  ;;  %v10699_v49 = vmax.f32 %v6526_v11, 0.0 }
 0x122   :  { %10689 = vst [vmem:[#allocation59_spill] sm:$0xff] %v6534_v29  ;;  %v463_v41 = vpop.f32.mrb[34].mxu0  ;;  %4770 = vmatprep.subr.bf16.mxu1 %v4769_v19  ;;  %10693 = vst [vmem:[#allocation60_spill] sm:$0xff] %v6545_v27  ;;  %v816_v5 = vpop.f32.mrb[34].mxu1  ;;  %4674 = vmatprep.subr.bf16.mxu0 %v4673_v46  ;;  %v10701_v60 = vmax.f32 %v6534_v29, 0.0  ;;  %v10704_v15 = vmax.f32 %v6545_v27, 0.0 }
 0x123   :  { %v6549_v30 = vadd.f32 %v463_v41, %v6135_v62  ;;  %v465_v45 = vpop.f32.mrb[35].mxu0  ;;  %4772 = vmatpush1.bf16.msra.mxu1 %v4771_v52  ;;  %10695 = vst [vmem:[#allocation62_spill] sm:$0xff] %v6552_v48  ;;  %v6555_v13 = vadd.f32 %v816_v5, %v6213_v40  ;;  %v818_v7 = vpop.f32.mrb[35].mxu1  ;;  %4676 = vmatpush1.bf16.msra.mxu0 %v4675_v42  ;;  %v10289_v61 = vmax.f32 %v6552_v48, 0.0 }
 0x124   :  { %v6559_v19 = vadd.f32 %v465_v45, %v6141_v0  ;;  %v6562_v46 = vadd.f32 %v818_v7, %v6208_v37 }
 0x125   :  { %10694 = vst [vmem:[#allocation61_spill] sm:$0xff] %v6549_v30  ;;  %10696 = vst [vmem:[#allocation63_spill] sm:$0xff] %v6555_v13  ;;  %v10285_v41 = vmax.f32 %v6549_v30, 0.0 }
 0x126   :  { %10697 = vst [vmem:[#allocation64_spill] sm:$0xff] %v6559_v19  ;;  %10698 = vst [vmem:[#allocation65_spill] sm:$0xff] %v6562_v46  ;;  %v469_v56 = vpop.f32.mrb[36].mxu0  ;;  %v822_v42 = vpop.f32.mrb[36].mxu1  ;;  %v10702_v33 = vmax.f32 %v6559_v19, 0.0  ;;  %v10705_v18 = vmax.f32 %v6562_v46, 0.0 }
 0x127   :  { %v4679_v45 = vpack.c.bf16 %v10285_v41, %v10699_v49  ;;  %v6574_v7 = vadd.f32 %v469_v56, %v6135_v62  ;;  %v471_v25 = vpop.f32.mrb[37].mxu0  ;;  %v824_v52 = vpop.f32.mrb[37].mxu1  ;;  %v10706_v56 = vmax.f32 %v6555_v13, 0.0 }
 0x128   :  { %v4677_v5 = vpack.c.bf16 %v10702_v33, %v10701_v60  ;;  %v6582_v34 = vadd.f32 %v471_v25, %v6141_v0  ;;  %v4773_v49 = vpack.c.bf16 %v10705_v18, %v10704_v15  ;;  %v6593_v29 = vadd.f32 %v824_v52, %v6208_v37 }
 0x129   :  { %10700 = vst [vmem:[#allocation66_spill] sm:$0xff] %v6574_v7  ;;  %v4775_v41 = vpack.c.bf16 %v10706_v56, %v10289_v61  ;;  %v6600_v15 = vadd.f32 %v822_v42, %v6213_v40  ;;  %v10713_v52 = vmax.f32 %v6574_v7, 0.0 }
 0x12a   :  { %10703 = vst [vmem:[#allocation67_spill] sm:$0xff] %v6582_v34  ;;  %v475_v1 = vpop.f32.mrb[38].mxu0  ;;  %4774 = vmatprep.subr.bf16.mxu1 %v4773_v49  ;;  %10707 = vst [vmem:[#allocation68_spill] sm:$0xff] %v6593_v29  ;;  %v828_v19 = vpop.f32.mrb[38].mxu1  ;;  %4678 = vmatprep.subr.bf16.mxu0 %v4677_v5  ;;  %v10715_v42 = vmax.f32 %v6582_v34, 0.0  ;;  %v10718_v13 = vmax.f32 %v6593_v29, 0.0 }
 0x12b   :  { %v6597_v33 = vadd.f32 %v475_v1, %v6135_v62  ;;  %v477_v60 = vpop.f32.mrb[39].mxu0  ;;  %4776 = vmatpush1.bf16.msra.mxu1 %v4775_v41  ;;  %10709 = vst [vmem:[#allocation70_spill] sm:$0xff] %v6600_v15  ;;  %v6603_v18 = vadd.f32 %v828_v19, %v6213_v40  ;;  %v830_v56 = vpop.f32.mrb[39].mxu1  ;;  %4680 = vmatpush1.bf16.msra.mxu0 %v4679_v45  ;;  %v10299_v27 = vmax.f32 %v6600_v15, 0.0 }
 0x12c   :  { %v6607_v49 = vadd.f32 %v477_v60, %v6141_v0  ;;  %v6610_v5 = vadd.f32 %v830_v56, %v6208_v37 }
 0x12d   :  { %10708 = vst [vmem:[#allocation69_spill] sm:$0xff] %v6597_v33  ;;  %10710 = vst [vmem:[#allocation71_spill] sm:$0xff] %v6603_v18  ;;  %v10295_v1 = vmax.f32 %v6597_v33, 0.0 }
 0x12e   :  { %10711 = vst [vmem:[#allocation72_spill] sm:$0xff] %v6607_v49  ;;  %10712 = vst [vmem:[#allocation73_spill] sm:$0xff] %v6610_v5  ;;  %v481_v61 = vpop.f32.mrb[40].mxu0  ;;  %v834_v45 = vpop.f32.mrb[40].mxu1  ;;  %v10716_v48 = vmax.f32 %v6607_v49, 0.0  ;;  %v10719_v35 = vmax.f32 %v6610_v5, 0.0 }
 0x12f   :  { %v4683_v60 = vpack.c.bf16 %v10295_v1, %v10713_v52  ;;  %v6622_v56 = vadd.f32 %v481_v61, %v6135_v62  ;;  %v483_v46 = vpop.f32.mrb[41].mxu0  ;;  %v836_v41 = vpop.f32.mrb[41].mxu1  ;;  %v10720_v61 = vmax.f32 %v6603_v18, 0.0 }
 0x130   :  { %v4681_v19 = vpack.c.bf16 %v10716_v48, %v10715_v42  ;;  %v6630_v25 = vadd.f32 %v483_v46, %v6141_v0  ;;  %v4777_v52 = vpack.c.bf16 %v10719_v35, %v10718_v13  ;;  %v6641_v6 = vadd.f32 %v836_v41, %v6208_v37 }
 0x131   :  { %10714 = vst [vmem:[#allocation74_spill] sm:$0xff] %v6622_v56  ;;  %v4779_v1 = vpack.c.bf16 %v10720_v61, %v10299_v27  ;;  %v6648_v35 = vadd.f32 %v834_v45, %v6213_v40 }
 0x132   :  { %10717 = vst [vmem:[#allocation75_spill] sm:$0xff] %v6630_v25  ;;  %v487_v58 = vpop.f32.mrb[42].mxu0  ;;  %4778 = vmatprep.subr.bf16.mxu1 %v4777_v52  ;;  %10721 = vst [vmem:[#allocation76_spill] sm:$0xff] %v6641_v6  ;;  %v840_v16 = vpop.f32.mrb[42].mxu1  ;;  %4682 = vmatprep.subr.bf16.mxu0 %v4681_v19  ;;  %v10730_v39 = vmax.f32 %v6641_v6, 0.0 }
 0x133   :  { %v6645_v46 = vadd.f32 %v487_v58, %v6135_v62  ;;  %v489_v42 = vpop.f32.mrb[43].mxu0  ;;  %4780 = vmatpush1.bf16.msra.mxu1 %v4779_v1  ;;  %10723 = vst [vmem:[#allocation78_spill] sm:$0xff] %v6648_v35  ;;  %v6651_v13 = vadd.f32 %v840_v16, %v6213_v40  ;;  %v842_v61 = vpop.f32.mrb[43].mxu1  ;;  %4684 = vmatpush1.bf16.msra.mxu0 %v4683_v60  ;;  %v10310_v45 = vmax.f32 %v6648_v35, 0.0  ;;  %v10728_v60 = vmax.f32 %v6630_v25, 0.0 }
 0x134   :  { %v6655_v52 = vadd.f32 %v489_v42, %v6141_v0  ;;  %v6658_v19 = vadd.f32 %v842_v61, %v6208_v37  ;;  %v650_v58 = vadd.f32 %v6137_v63, %v6135_v62  ;;  %v652_v16 = vadd.f32 %v6143_v3, %v6141_v0 }
 0x135   :  { %10722 = vst [vmem:[#allocation77_spill] sm:$0xff] %v6645_v46  ;;  %10724 = vst [vmem:[#allocation79_spill] sm:$0xff] %v6651_v13  ;;  %v10305_v1 = vmax.f32 %v6645_v46, 0.0  ;;  %v10727_v61 = vmax.f32 %v6622_v56, 0.0  ;;  %v668_v3 = vadd.f32 %v6191_v26, %v6135_v62  ;;  %v10732_v23 = vmax.f32 %v6651_v13, 0.0 }
 0x136   :  { %10725 = vst [vmem:[#allocation80_spill] sm:$0xff] %v6655_v52  ;;  %10726 = vst [vmem:[#allocation81_spill] sm:$0xff] %v6658_v19  ;;  %v493_v27 = vpop.f32.mrb[44].mxu0  ;;  %v846_v48 = vpop.f32.mrb[44].mxu1  ;;  %v10729_v41 = vmax.f32 %v6655_v52, 0.0  ;;  %v6695_v51 = vmax.f32 %v652_v16, 0.0 }
 0x137   :  { %v4687_v63 = vpack.c.bf16 %v10305_v1, %v10727_v61  ;;  %v494_v29 = vadd.f32 %v493_v27, %v6135_v62  ;;  %v495_v5 = vpop.f32.mrb[45].mxu0  ;;  %v848_v18 = vpop.f32.mrb[45].mxu1  ;;  %v10731_v61 = vmax.f32 %v6658_v19, 0.0  ;;  %v6686_v27 = vmax.f32 %v650_v58, 0.0 }
 0x138   :  { %v4685_v42 = vpack.c.bf16 %v10729_v41, %v10728_v60  ;;  %v496_v15 = vadd.f32 %v495_v5, %v6141_v0  ;;  %v4783_v26 = vpack.c.bf16 %v10732_v23, %v10310_v45  ;;  %v6693_v55 = vadd.f32 %v846_v48, %v6213_v40 }
 0x139   :  { %v4781_v1 = vpack.c.bf16 %v10731_v61, %v10730_v39  ;;  %v1137_v57 = vmax.f32 %v494_v29, 0.0  ;;  %v6698_v60 = vadd.f32 %v848_v18, %v6208_v37  ;;  %v6705_v16 = vmax.f32 %v668_v3, 0.0 }
 0x13a   :  { %10733 = vst [vmem:[#allocation82_spill] sm:$0xff] %v6693_v55  ;;  %v1138_v41 = vmax.f32 %v496_v15, 0.0  ;;  %v499_v5 = vpop.f32.mrb[46].mxu0  ;;  %v852_v39 = vpop.f32.mrb[46].mxu1  ;;  %4686 = vmatprep.subr.bf16.mxu0 %v4685_v42  ;;  %v2257_v15 = vld [vmem:[%s10193_s9 + $0x2c0] sm:$0xff]  ;;  %v670_v45 = vadd.f32 %v6194_v28, %v6141_v0 }
 0x13b   :  { %4782 = vmatprep.subr.bf16.mxu1 %v4781_v1  ;;  %10734 = vst [vmem:[#allocation83_spill] sm:$0xff] %v6698_v60  ;;  %v1945_v29 = vsub.f32 %v1137_v57, %v6686_v27  ;;  %v500_v58 = vadd.f32 %v499_v5, %v6135_v62  ;;  %v501_v61 = vpop.f32.mrb[47].mxu0  ;;  %v6703_v23 = vadd.f32 %v852_v39, %v6213_v40  ;;  %v854_v48 = vpop.f32.mrb[47].mxu1  ;;  %10736 = vst [vmem:[#allocation85_spill] sm:$0xff] %v6705_v16 }
 0x13c   :  { %4784 = vmatpush1.bf16.msra.mxu1 %v4783_v26  ;;  %4688 = vmatpush1.bf16.msra.mxu0 %v4687_v63  ;;  %v1946_v18 = vsub.f32 %v1138_v41, %v6695_v51  ;;  %v502_v1 = vadd.f32 %v501_v61, %v6141_v0  ;;  %v6713_v42 = vadd.f32 %v854_v48, %v6208_v37  ;;  %v2258_v26 = vld [vmem:[%s10193_s9 + $0x2c8] sm:$0xff] }
 0x13d   :  { %10735 = vst [vmem:[#allocation84_spill] sm:$0xff] %v6703_v23  ;;  %v2101_v5 = vand.u32 2147483647, %v1945_v29  ;;  %v1141_v39 = vmax.f32 %v500_v58, 0.0  ;;  %v10320_v58 = vmax.f32 %v6698_v60, 0.0 }
 0x13e   :  { %10737 = vst [vmem:[#allocation86_spill] sm:$0xff] %v6713_v42  ;;  %v2102_v6 = vand.u32 2147483647, %v1946_v18  ;;  %v1142_v19 = vmax.f32 %v502_v1, 0.0  ;;  %v505_v13 = vpop.f32.mrb[48].mxu0  ;;  %v858_v48 = vpop.f32.mrb[48].mxu1 }
 0x13f   :  { %v4691_v35 = vpack.c.bf16 %v1141_v39, %v1137_v57  ;;  %v1949_v29 = vsub.f32 %v1141_v39, %v6372_v17  ;;  %v506_v52 = vadd.f32 %v505_v13, %v6135_v62  ;;  %v507_v25 = vpop.f32.mrb[49].mxu0  ;;  %v860_v63 = vpop.f32.mrb[49].mxu1  ;;  %v6726_v50 = vmul.f32 %v2257_v15, %v2101_v5  ;;  %v2262_v57 = vld [vmem:[%s10193_s9 + $0x2e8] sm:$0xff] }
 0x140   :  { %v4689_v3 = vpack.c.bf16 %v1142_v19, %v1138_v41  ;;  %v1950_v28 = vsub.f32 %v1142_v19, %v6380_v59  ;;  %v508_v18 = vadd.f32 %v507_v25, %v6141_v0  ;;  %v6730_v1 = vmul.f32 %v2258_v26, %v2102_v6  ;;  %v2261_v41 = vld [vmem:[%s10193_s9 + $0x2e0] sm:$0xff] }
 0x141   :  { %10738 = vst [vmem:[#allocation87_spill] sm:$0xff] %v6726_v50  ;;  %v2105_v61 = vand.u32 2147483647, %v1949_v29  ;;  %v1145_v39 = vmax.f32 %v506_v52, 0.0  ;;  %v10740_v13 = vmax.f32 %v6713_v42, 0.0  ;;  %v10741_v6 = vmax.f32 %v6693_v55, 0.0 }
 0x142   :  { %10739 = vst [vmem:[#allocation88_spill] sm:$0xff] %v6730_v1  ;;  %v2106_v19 = vand.u32 2147483647, %v1950_v28  ;;  %v1146_v15 = vmax.f32 %v508_v18, 0.0  ;;  %v511_v25 = vpop.f32.mrb[50].mxu0  ;;  %v10742_v5 = vmax.f32 %v6703_v23, 0.0  ;;  %v6747_v29 = vadd.f32 %v858_v48, %v6213_v40  ;;  %4690 = vmatprep.subr.bf16.mxu0 %v4689_v3 }
 0x143   :  { %v4785_v49 = vpack.c.bf16 %v10740_v13, %v10320_v58  ;;  %v864_v52 = vpop.f32.mrb[50].mxu1  ;;  %v1953_v60 = vsub.f32 %v1145_v39, %v6391_v20  ;;  %v512_v13 = vadd.f32 %v511_v25, %v6135_v62  ;;  %v513_v58 = vpop.f32.mrb[51].mxu0  ;;  %v6752_v42 = vadd.f32 %v860_v63, %v6208_v37  ;;  %4692 = vmatpush1.bf16.msra.mxu0 %v4691_v35  ;;  %v2265_v63 = vld [vmem:[%s10193_s9 + $0x300] sm:$0xff]  ;;  %v7393_v20 = vld [vmem:[%s10194_s5 + $0x1a8] sm:$0xff] }
 0x144   :  { %v4787_v26 = vpack.c.bf16 %v10742_v5, %v10741_v6  ;;  %10743 = vst [vmem:[#allocation89_spill] sm:$0xff] %v6747_v29  ;;  %v6755_v28 = vadd.f32 %v864_v52, %v6213_v40  ;;  %v866_v18 = vpop.f32.mrb[51].mxu1  ;;  %v6757_v23 = vmax.f32 %v670_v45, 0.0  ;;  %v6759_v6 = vmul.f32 %v2262_v57, %v2106_v19  ;;  %v2266_v57 = vld [vmem:[%s10193_s9 + $0x308] sm:$0xff] }
 0x145   :  { %10744 = vst [vmem:[#allocation90_spill] sm:$0xff] %v6752_v42  ;;  %4786 = vmatprep.subr.bf16.mxu1 %v4785_v49  ;;  %v1954_v48 = vsub.f32 %v1146_v15, %v6399_v9  ;;  %v514_v3 = vadd.f32 %v513_v58, %v6141_v0  ;;  %v6763_v25 = vmul.f32 %v2261_v41, %v2105_v61  ;;  %v2109_v5 = vand.u32 2147483647, %v1953_v60 }
 0x146   :  { %10745 = vst [vmem:[#allocation91_spill] sm:$0xff] %v6755_v28  ;;  %10746 = vst [vmem:[#allocation92_spill] sm:$0xff] %v6757_v23  ;;  %4788 = vmatpush1.bf16.msra.mxu1 %v4787_v26  ;;  %v1149_v52 = vmax.f32 %v512_v13, 0.0  ;;  %v517_v55 = vpop.f32.mrb[52].mxu0  ;;  %v6773_v58 = vadd.f32 %v866_v18, %v6208_v37  ;;  %v870_v35 = vpop.f32.mrb[52].mxu1  ;;  %v10754_v56 = vmax.f32 %v6755_v28, 0.0 }
 0x147   :  { %10747 = vst [vmem:[#allocation93_spill] sm:$0xff] %v6759_v6  ;;  %10748 = vst [vmem:[#allocation94_spill] sm:$0xff] %v6763_v25  ;;  %v2110_v45 = vand.u32 2147483647, %v1954_v48  ;;  %v1150_v19 = vmax.f32 %v514_v3, 0.0  ;;  %v6779_v26 = vadd.f32 %v517_v55, %v6135_v62  ;;  %v519_v13 = vpop.f32.mrb[53].mxu0 }
 0x148   :  { %10749 = vst [vmem:[#allocation95_spill] sm:$0xff] %v6773_v58  ;;  %v4695_v61 = vpack.c.bf16 %v1149_v52, %v1145_v39  ;;  %v1957_v41 = vsub.f32 %v1149_v52, %v6705_v16  ;;  %v872_v49 = vpop.f32.mrb[53].mxu1  ;;  %v2269_v3 = vld [vmem:[%s10193_s9 + $0x320] sm:$0xff]  ;;  %v6787_v46 = vadd.f32 %v519_v13, %v6141_v0  ;;  %v6790_v52 = vmul.f32 %v2265_v63, %v2109_v5  ;;  %v2270_v48 = vld [vmem:[%s10193_s9 + $0x328] sm:$0xff] }
 0x149   :  { %v4693_v18 = vpack.c.bf16 %v1150_v19, %v1146_v15  ;;  %v1958_v34 = vsub.f32 %v1150_v19, %v6757_v23  ;;  %v6792_v55 = vmul.f32 %v2266_v57, %v2110_v45  ;;  %v10330_v1 = vmax.f32 %v6773_v58, 0.0 }
 0x14a   :  { %10750 = vst [vmem:[#allocation96_spill] sm:$0xff] %v6787_v46  ;;  %10751 = vst [vmem:[#allocation97_spill] sm:$0xff] %v6790_v52  ;;  %v2113_v60 = vand.u32 2147483647, %v1957_v41  ;;  %v523_v19 = vpop.f32.mrb[54].mxu0  ;;  %v10753_v13 = vmax.f32 %v6747_v29, 0.0  ;;  %v6804_v5 = vadd.f32 %v872_v49, %v6208_v37 }
 0x14b   :  { %10752 = vst [vmem:[#allocation98_spill] sm:$0xff] %v6792_v55  ;;  %v2114_v6 = vand.u32 2147483647, %v1958_v34  ;;  %v876_v63 = vpop.f32.mrb[54].mxu1  ;;  %4694 = vmatprep.subr.bf16.mxu0 %v4693_v18  ;;  %v6809_v57 = vadd.f32 %v523_v19, %v6135_v62  ;;  %v525_v41 = vpop.f32.mrb[55].mxu0  ;;  %v10757_v34 = vmax.f32 %v6752_v42, 0.0 }
 0x14c   :  { %v4791_v39 = vpack.c.bf16 %v10754_v56, %v10753_v13  ;;  %10755 = vst [vmem:[#allocation99_spill] sm:$0xff] %v6804_v5  ;;  %v6806_v45 = vmul.f32 %v2269_v3, %v2113_v60  ;;  %v6816_v29 = vadd.f32 %v876_v63, %v6213_v40  ;;  %v878_v56 = vpop.f32.mrb[55].mxu1  ;;  %4696 = vmatpush1.bf16.msra.mxu0 %v4695_v61  ;;  %v10336_v18 = vmax.f32 %v6787_v46, 0.0 }
 0x14d   :  { %v4789_v15 = vpack.c.bf16 %v10330_v1, %v10757_v34  ;;  %v6818_v49 = vmul.f32 %v2270_v48, %v2114_v6  ;;  %v6822_v60 = vadd.f32 %v525_v41, %v6141_v0  ;;  %v6825_v3 = vadd.f32 %v870_v35, %v6213_v40 }
 0x14e   :  { %10756 = vst [vmem:[#allocation100_spill] sm:$0xff] %v6806_v45  ;;  %10758 = vst [vmem:[#allocation101_spill] sm:$0xff] %v6816_v29  ;;  %v10333_v19 = vmax.f32 %v6809_v57, 0.0  ;;  %v6829_v13 = vadd.f32 %v878_v56, %v6208_v37  ;;  %v529_v61 = vpop.f32.mrb[56].mxu0  ;;  %v882_v34 = vpop.f32.mrb[56].mxu1  ;;  %v10763_v56 = vmax.f32 %v6779_v26, 0.0 }
 0x14f   :  { %10759 = vst [vmem:[#allocation102_spill] sm:$0xff] %v6818_v49  ;;  %10760 = vst [vmem:[#allocation103_spill] sm:$0xff] %v6822_v60  ;;  %4790 = vmatprep.subr.bf16.mxu1 %v4789_v15  ;;  %v6844_v1 = vadd.f32 %v529_v61, %v6135_v62  ;;  %v531_v63 = vpop.f32.mrb[57].mxu0  ;;  %v10339_v6 = vmax.f32 %v6804_v5, 0.0  ;;  %v10764_v35 = vmax.f32 %v6822_v60, 0.0  ;;  %v10341_v58 = vmax.f32 %v6825_v3, 0.0 }
 0x150   :  { %10761 = vst [vmem:[#allocation104_spill] sm:$0xff] %v6825_v3  ;;  %10762 = vst [vmem:[#allocation105_spill] sm:$0xff] %v6829_v13  ;;  %4792 = vmatpush1.bf16.msra.mxu1 %v4791_v39  ;;  %v4699_v15 = vpack.c.bf16 %v10333_v19, %v10763_v56  ;;  %v10340_v48 = vmax.f32 %v6829_v13, 0.0  ;;  %v884_v39 = vpop.f32.mrb[57].mxu1  ;;  %v6853_v41 = vadd.f32 %v531_v63, %v6141_v0  ;;  %v10766_v19 = vmax.f32 %v6816_v29, 0.0 }
 0x151   :  { %v4697_v42 = vpack.c.bf16 %v10764_v35, %v10336_v18  ;;  %v6865_v45 = vadd.f32 %v884_v39, %v6208_v37  ;;  %v6872_v13 = vadd.f32 %v882_v34, %v6213_v40 }
 0x152   :  { %10765 = vst [vmem:[#allocation106_spill] sm:$0xff] %v6853_v41  ;;  %v4793_v61 = vpack.c.bf16 %v10340_v48, %v10339_v6  ;;  %v535_v56 = vpop.f32.mrb[58].mxu0  ;;  %v4795_v52 = vpack.c.bf16 %v10766_v19, %v10341_v58  ;;  %v888_v35 = vpop.f32.mrb[58].mxu1  ;;  %v10772_v19 = vmax.f32 %v6844_v1, 0.0  ;;  %v10773_v58 = vmax.f32 %v6853_v41, 0.0 }
 0x153   :  { %10767 = vst [vmem:[#allocation107_spill] sm:$0xff] %v6865_v45  ;;  %4698 = vmatprep.subr.bf16.mxu0 %v4697_v42  ;;  %v6869_v18 = vadd.f32 %v535_v56, %v6135_v62  ;;  %v537_v5 = vpop.f32.mrb[59].mxu0  ;;  %10768 = vst [vmem:[#allocation108_spill] sm:$0xff] %v6872_v13  ;;  %v6875_v6 = vadd.f32 %v888_v35, %v6213_v40  ;;  %v890_v48 = vpop.f32.mrb[59].mxu1  ;;  %v10350_v55 = vmax.f32 %v6872_v13, 0.0  ;;  %v10776_v50 = vmax.f32 %v6865_v45, 0.0 }
 0x154   :  { %4794 = vmatprep.subr.bf16.mxu1 %v4793_v61  ;;  %4700 = vmatpush1.bf16.msra.mxu0 %v4699_v15  ;;  %v6879_v39 = vadd.f32 %v537_v5, %v6141_v0  ;;  %v6882_v42 = vadd.f32 %v890_v48, %v6208_v37 }
 0x155   :  { %10769 = vst [vmem:[#allocation109_spill] sm:$0xff] %v6875_v6  ;;  %4796 = vmatpush1.bf16.msra.mxu1 %v4795_v52  ;;  %v10346_v56 = vmax.f32 %v6869_v18, 0.0 }
 0x156   :  { %10770 = vst [vmem:[#allocation110_spill] sm:$0xff] %v6879_v39  ;;  %10771 = vst [vmem:[#allocation111_spill] sm:$0xff] %v6882_v42  ;;  %v541_v35 = vpop.f32.mrb[60].mxu0  ;;  %v894_v61 = vpop.f32.mrb[60].mxu1  ;;  %v10774_v49 = vmax.f32 %v6879_v39, 0.0  ;;  %v10777_v25 = vmax.f32 %v6882_v42, 0.0 }
 0x157   :  { %v4703_v5 = vpack.c.bf16 %v10346_v56, %v10772_v19  ;;  %v6894_v48 = vadd.f32 %v541_v35, %v6135_v62  ;;  %v543_v52 = vpop.f32.mrb[61].mxu0  ;;  %v896_v34 = vpop.f32.mrb[61].mxu1  ;;  %v10778_v35 = vmax.f32 %v6875_v6, 0.0  ;;  %v6913_v46 = vadd.f32 %v894_v61, %v6213_v40 }
 0x158   :  { %v4701_v63 = vpack.c.bf16 %v10774_v49, %v10773_v58  ;;  %v6902_v15 = vadd.f32 %v543_v52, %v6141_v0  ;;  %v4797_v19 = vpack.c.bf16 %v10777_v25, %v10776_v50  ;;  %v6916_v39 = vadd.f32 %v896_v34, %v6208_v37 }
 0x159   :  { %v4799_v56 = vpack.c.bf16 %v10778_v35, %v10350_v55 }
 0x15a   :  { %10775 = vst [vmem:[#allocation112_spill] sm:$0xff] %v6902_v15  ;;  %v547_v41 = vpop.f32.mrb[62].mxu0  ;;  %10779 = vst [vmem:[#allocation113_spill] sm:$0xff] %v6916_v39  ;;  %v900_v58 = vpop.f32.mrb[62].mxu1  ;;  %4702 = vmatprep.subr.bf16.mxu0 %v4701_v63  ;;  %4798 = vmatprep.subr.bf16.mxu1 %v4797_v19 }
 0x15b   :  { %v6920_v52 = vadd.f32 %v547_v41, %v6135_v62  ;;  %v549_v50 = vpop.f32.mrb[63].mxu0  ;;  %v6923_v25 = vadd.f32 %v900_v58, %v6213_v40  ;;  %v902_v35 = vpop.f32.mrb[63].mxu1  ;;  %4704 = vmatpush1.bf16.msra.mxu0 %v4703_v5  ;;  %4800 = vmatpush1.bf16.msra.mxu1 %v4799_v56  ;;  %v10360_v41 = vmax.f32 %v6913_v46, 0.0  ;;  %v10783_v5 = vmax.f32 %v6902_v15, 0.0 }
 0x15c   :  { %v6927_v34 = vadd.f32 %v549_v50, %v6141_v0  ;;  %v6930_v63 = vadd.f32 %v902_v35, %v6208_v37  ;;  %v10782_v50 = vmax.f32 %v6894_v48, 0.0 }
 0x15d   :  { %v10356_v19 = vmax.f32 %v6920_v52, 0.0  ;;  %v10359_v55 = vmax.f32 %v6923_v25, 0.0 }
 0x15e   :  { %10780 = vst [vmem:[#allocation114_spill] sm:$0xff] %v6927_v34  ;;  %10781 = vst [vmem:[#allocation115_spill] sm:$0xff] %v6930_v63  ;;  %v553_v49 = vpop.f32.mrb[64].mxu0  ;;  %v906_v61 = vpop.f32.mrb[64].mxu1  ;;  %v10784_v56 = vmax.f32 %v6927_v34, 0.0 }
 0x15f   :  { %v4707_v35 = vpack.c.bf16 %v10356_v19, %v10782_v50  ;;  %v6943_v45 = vadd.f32 %v553_v49, %v6135_v62  ;;  %v555_v42 = vpop.f32.mrb[65].mxu0  ;;  %v4803_v58 = vpack.c.bf16 %v10359_v55, %v10360_v41  ;;  %v908_v60 = vpop.f32.mrb[65].mxu1  ;;  %v10786_v50 = vmax.f32 %v6916_v39, 0.0 }
 0x160   :  { %v4705_v6 = vpack.c.bf16 %v10784_v56, %v10783_v5  ;;  %v6954_v13 = vadd.f32 %v555_v42, %v6141_v0  ;;  %v10787_v49 = vmax.f32 %v6930_v63, 0.0  ;;  %v6961_v29 = vadd.f32 %v906_v61, %v6213_v40  ;;  %v6976_v61 = vld [vmem:[%s10192_s1] sm:$0xff] }
 0x161   :  { %v6964_v55 = vadd.f32 %v908_v60, %v6208_v37  ;;  %v10791_v63 = vmax.f32 %v6943_v45, 0.0 }
 0x162   :  { %10785 = vst [vmem:[#allocation116_spill] sm:$0xff] %v6954_v13  ;;  %v4801_v19 = vpack.c.bf16 %v10787_v49, %v10786_v50  ;;  %v559_v3 = vpop.f32.mrb[66].mxu0  ;;  %v912_v41 = vpop.f32.mrb[66].mxu1  ;;  %4706 = vmatprep.subr.bf16.mxu0 %v4705_v6 }
 0x163   :  { %10788 = vst [vmem:[#allocation117_spill] sm:$0xff] %v6964_v55  ;;  %v6968_v42 = vadd.f32 %v559_v3, %v6135_v62  ;;  %v561_v56 = vpop.f32.mrb[67].mxu0  ;;  %v6971_v39 = vadd.f32 %v912_v41, %v6213_v40  ;;  %v914_v50 = vpop.f32.mrb[67].mxu1  ;;  %4708 = vmatpush1.bf16.msra.mxu0 %v4707_v35 }
 0x164   :  { %4802 = vmatprep.subr.bf16.mxu1 %v4801_v19  ;;  %v6980_v6 = vadd.f32 %v561_v56, %v6141_v0  ;;  %v6983_v3 = vadd.f32 %v914_v50, %v6208_v37  ;;  %v6988_v19 = vld [vmem:[%s10192_s1 + $0x18] sm:$0xff]  ;;  %v10794_v50 = vmax.f32 %v6954_v13, 0.0 }
 0x165   :  { %4804 = vmatpush1.bf16.msra.mxu1 %v4803_v58  ;;  %v10368_v41 = vmax.f32 %v6968_v42, 0.0  ;;  %v10792_v58 = vmax.f32 %v6961_v29, 0.0  ;;  %v10793_v49 = vmax.f32 %v6971_v39, 0.0 }
 0x166   :  { %10789 = vst [vmem:[#allocation118_spill] sm:$0xff] %v6980_v6  ;;  %10790 = vst [vmem:[#allocation119_spill] sm:$0xff] %v6983_v3  ;;  %v565_v60 = vpop.f32.mrb[68].mxu0  ;;  %v918_v5 = vpop.f32.mrb[68].mxu1  ;;  %1330 = vmatmul.mubr.f32.vlgmr.msra.gmra.mrb[96].mxu0 %v6976_v61  ;;  %v10795_v38 = vmax.f32 %v6980_v6, 0.0 }
 0x167   :  { %v4711_v15 = vpack.c.bf16 %v10368_v41, %v10791_v63  ;;  %v7002_v34 = vadd.f32 %v565_v60, %v6135_v62  ;;  %v567_v35 = vpop.f32.mrb[69].mxu0  ;;  %v4807_v28 = vpack.c.bf16 %v10793_v49, %v10792_v58  ;;  %v920_v56 = vpop.f32.mrb[69].mxu1  ;;  %4330 = vmatprep.mubr.msk.f32.mxu0 %vm1261_vm1, %v6988_v19  ;;  %v10797_v60 = vmax.f32 %v6964_v55, 0.0 }
 0x168   :  { %v4709_v33 = vpack.c.bf16 %v10795_v38, %v10794_v50  ;;  %v7015_v63 = vadd.f32 %v567_v35, %v6141_v0  ;;  %v10798_v41 = vmax.f32 %v6983_v3, 0.0  ;;  %v7022_v44 = vadd.f32 %v918_v5, %v6213_v40 }
 0x169   :  { %v7025_v49 = vadd.f32 %v920_v56, %v6208_v37 }
 0x16a   :  { %10796 = vst [vmem:[#allocation120_spill] sm:$0xff] %v7015_v63  ;;  %v4805_v10 = vpack.c.bf16 %v10798_v41, %v10797_v60  ;;  %v571_v58 = vpop.f32.mrb[70].mxu0  ;;  %v924_v7 = vpop.f32.mrb[70].mxu1  ;;  %4710 = vmatprep.subr.bf16.mxu0 %v4709_v33  ;;  %v10383_v60 = vmax.f32 %v7022_v44, 0.0 }
 0x16b   :  { %10799 = vst [vmem:[#allocation121_spill] sm:$0xff] %v7025_v49  ;;  %v7029_v35 = vadd.f32 %v571_v58, %v6135_v62  ;;  %v573_v50 = vpop.f32.mrb[71].mxu0  ;;  %v7032_v55 = vadd.f32 %v924_v7, %v6213_v40  ;;  %v926_v41 = vpop.f32.mrb[71].mxu1  ;;  %4712 = vmatpush1.bf16.msra.mxu0 %v4711_v15  ;;  %v10802_v7 = vmax.f32 %v7015_v63, 0.0  ;;  %v10804_v11 = vmax.f32 %v7025_v49, 0.0 }
 0x16c   :  { %4806 = vmatprep.subr.bf16.mxu1 %v4805_v10  ;;  %v7036_v56 = vadd.f32 %v573_v50, %v6141_v0  ;;  %v7039_v33 = vadd.f32 %v926_v41, %v6208_v37  ;;  %v10801_v50 = vmax.f32 %v7002_v34, 0.0 }
 0x16d   :  { %4808 = vmatpush1.bf16.msra.mxu1 %v4807_v28  ;;  %v10379_v10 = vmax.f32 %v7029_v35, 0.0  ;;  %v10382_v58 = vmax.f32 %v7032_v55, 0.0 }
 0x16e   :  { %10800 = vst [vmem:[#allocation122_spill] sm:$0xff] %v7039_v33  ;;  %v577_v38 = vpop.f32.mrb[72].mxu0  ;;  %v930_v5 = vpop.f32.mrb[72].mxu1  ;;  %v10803_v30 = vmax.f32 %v7036_v56, 0.0  ;;  %v10805_v53 = vmax.f32 %v7039_v33, 0.0 }
 0x16f   :  { %v4715_v41 = vpack.c.bf16 %v10379_v10, %v10801_v50  ;;  %v579_v3 = vpop.f32.mrb[73].mxu0  ;;  %v4811_v6 = vpack.c.bf16 %v10382_v58, %v10383_v60  ;;  %v932_v13 = vpop.f32.mrb[73].mxu1  ;;  %v7060_v28 = vadd.f32 %v577_v38, %v6135_v62 }
 0x170   :  { %v4713_v15 = vpack.c.bf16 %v10803_v30, %v10802_v7  ;;  %v4809_v50 = vpack.c.bf16 %v10805_v53, %v10804_v11  ;;  %v7067_v10 = vadd.f32 %v579_v3, %v6141_v0  ;;  %v7078_v11 = vadd.f32 %v930_v5, %v6213_v40 }
 0x171   :  { %v10389_v38 = vmax.f32 %v7060_v28, 0.0 }
 0x172   :  { %10806 = vst [vmem:[#allocation123_spill] sm:$0xff] %v7067_v10  ;;  %v583_v14 = vpop.f32.mrb[74].mxu0  ;;  %v936_v12 = vpop.f32.mrb[74].mxu1  ;;  %4714 = vmatprep.subr.bf16.mxu0 %v4713_v15  ;;  %4810 = vmatprep.subr.bf16.mxu1 %v4809_v50  ;;  %v10392_v15 = vmax.f32 %v7067_v10, 0.0  ;;  %v7089_v50 = vadd.f32 %v932_v13, %v6208_v37  ;;  %v10399_v13 = vmax.f32 %v7078_v11, 0.0  ;;  %v7388_v10 = vld [vmem:[%s10194_s5 + $0x1a0] sm:$0xff] }
 0x173   :  { %v7070_v58 = vadd.f32 %v583_v14, %v6135_v62  ;;  %v585_v60 = vpop.f32.mrb[75].mxu0  ;;  %v938_v30 = vpop.f32.mrb[75].mxu1  ;;  %4716 = vmatpush1.bf16.msra.mxu0 %v4715_v41  ;;  %4812 = vmatpush1.bf16.msra.mxu1 %v4811_v6  ;;  %v7081_v3 = vadd.f32 %v936_v12, %v6213_v40 }
 0x174   :  { %v7074_v7 = vadd.f32 %v585_v60, %v6141_v0  ;;  %v7084_v14 = vadd.f32 %v938_v30, %v6208_v37  ;;  %10810 = vst [vmem:[#allocation127_spill] sm:$0xff] %v7089_v50  ;;  %v10397_v36 = vmax.f32 %v7089_v50, 0.0 }
 0x175   :  { %10807 = vst [vmem:[#allocation124_spill] sm:$0xff] %v7070_v58  ;;  %v10388_v53 = vmax.f32 %v7070_v58, 0.0  ;;  %v10396_v33 = vmax.f32 %v7081_v3, 0.0 }
 0x176   :  { %10808 = vst [vmem:[#allocation125_spill] sm:$0xff] %v7074_v7  ;;  %10809 = vst [vmem:[#allocation126_spill] sm:$0xff] %v7084_v14  ;;  %v10391_v6 = vmax.f32 %v7074_v7, 0.0  ;;  %v589_v41 = vpop.f32.mrb[76].mxu0  ;;  %v942_v60 = vpop.f32.mrb[76].mxu1  ;;  %1472 = vmatmul.mubr.f32.vlgmr.msra.gmra.mrb[112].mxu1 %v6976_v61  ;;  %v10398_v61 = vmax.f32 %v7084_v14, 0.0 }
 0x177   :  { %v4719_v12 = vpack.c.bf16 %v10388_v53, %v10389_v38  ;;  %v591_v5 = vpop.f32.mrb[77].mxu0  ;;  %v944_v49 = vpop.f32.mrb[77].mxu1  ;;  %4331 = vmatprep.mubr.msk.f32.mxu1 %vm1261_vm1, %v6988_v19  ;;  %v4815_v19 = vpack.c.bf16 %v10396_v33, %v10399_v13 }
 0x178   :  { %v4717_v30 = vpack.c.bf16 %v10391_v6, %v10392_v15  ;;  %v7112_v6 = vadd.f32 %v942_v60, %v6213_v40  ;;  %v4813_v47 = vpack.c.bf16 %v10398_v61, %v10397_v36  ;;  %v10815_v36 = vmax.f32 %v6779_v26, 0.0 }
 0x17a   :  { %v595_v63 = vpop.f32.mrb[78].mxu0  ;;  %v948_v53 = vpop.f32.mrb[78].mxu1  ;;  %4718 = vmatprep.subr.bf16.mxu0 %v4717_v30  ;;  %v7119_v30 = vadd.f32 %v944_v49, %v6208_v37  ;;  %4814 = vmatprep.subr.bf16.mxu1 %v4813_v47  ;;  %v10407_v13 = vmax.f32 %v7112_v6, 0.0 }
 0x17b   :  { %v596_v38 = vadd.f32 %v595_v63, %v6135_v62  ;;  %v597_v24 = vpop.f32.mrb[79].mxu0  ;;  %v950_v15 = vpop.f32.mrb[79].mxu1  ;;  %4720 = vmatpush1.bf16.msra.mxu0 %v4719_v12  ;;  %v7124_v54 = vadd.f32 %v948_v53, %v6213_v40  ;;  %v7130_v12 = vadd.f32 %v591_v5, %v6141_v0  ;;  %4816 = vmatpush1.bf16.msra.mxu1 %v4815_v19 }
 0x17c   :  { %10811 = vst [vmem:[#allocation128_spill] sm:$0xff] %v7119_v30  ;;  %v7127_v33 = vadd.f32 %v950_v15, %v6208_v37  ;;  %v598_v49 = vadd.f32 %v597_v24, %v6141_v0  ;;  %v10408_v50 = vmax.f32 %v7119_v30, 0.0 }
 0x17d   :  { %v7121_v63 = vmax.f32 %v596_v38, 0.0  ;;  %10814 = vst [vmem:[#allocation131_spill] sm:$0xff] %v7130_v12  ;;  %v10406_v47 = vmax.f32 %v7124_v54, 0.0  ;;  %v10410_v31 = vmax.f32 %v7130_v12, 0.0 }
 0x17e   :  { %v601_v7 = vpop.f32.mrb[80].mxu0  ;;  %10813 = vst [vmem:[#allocation130_spill] sm:$0xff] %v7127_v33  ;;  %v954_v60 = vpop.f32.mrb[80].mxu1  ;;  %v10409_v5 = vmax.f32 %v7127_v33, 0.0  ;;  %v7161_v22 = vmax.f32 %v598_v49, 0.0 }
 0x17f   :  { %10812 = vst [vmem:[#allocation129_spill] sm:$0xff] %v7121_v63  ;;  %v7135_v61 = vsub.f32 %v10815_v36, %v7121_v63  ;;  %v603_v38 = vpop.f32.mrb[81].mxu0  ;;  %v956_v53 = vpop.f32.mrb[81].mxu1  ;;  %v602_v15 = vadd.f32 %v601_v7, %v6135_v62  ;;  %v4819_v36 = vpack.c.bf16 %v10406_v47, %v10407_v13  ;;  %v7154_v7 = vadd.f32 %v954_v60, %v6213_v40 }
 0x180   :  { %v4817_v24 = vpack.c.bf16 %v10409_v5, %v10408_v50  ;;  %10820 = vst [vmem:[#allocation136_spill] sm:$0xff] %v7161_v22  ;;  %v10821_v47 = vmax.f32 %v6809_v57, 0.0  ;;  %v7169_v60 = vadd.f32 %v956_v53, %v6208_v37  ;;  %v4721_v57 = vpack.c.bf16 %v7161_v22, %v10410_v31 }
 0x181   :  { %10816 = vst [vmem:[#allocation132_spill] sm:$0xff] %v7135_v61  ;;  %v7143_v14 = vmax.f32 %v602_v15, 0.0  ;;  %10818 = vst [vmem:[#allocation134_spill] sm:$0xff] %v7154_v7  ;;  %v10416_v49 = vmax.f32 %v7154_v7, 0.0  ;;  %v604_v53 = vadd.f32 %v603_v38, %v6141_v0 }
 0x182   :  { %v607_v26 = vpop.f32.mrb[82].mxu0  ;;  %v960_v19 = vpop.f32.mrb[82].mxu1  ;;  %10823 = vst [vmem:[#allocation138_spill] sm:$0xff] %v7169_v60  ;;  %4818 = vmatprep.subr.bf16.mxu1 %v4817_v24  ;;  %4722 = vmatprep.subr.bf16.mxu0 %v4721_v57 }
 0x183   :  { %10817 = vst [vmem:[#allocation133_spill] sm:$0xff] %v7143_v14  ;;  %v608_v61 = vadd.f32 %v607_v26, %v6135_v62  ;;  %v609_v43 = vpop.f32.mrb[83].mxu0  ;;  %v7158_v15 = vadd.f32 %v960_v19, %v6213_v40  ;;  %v962_v58 = vpop.f32.mrb[83].mxu1  ;;  %v7166_v13 = vsub.f32 %v10821_v47, %v7143_v14  ;;  %v7172_v26 = vadd.f32 %v589_v41, %v6135_v62 }
 0x184   :  { %v7178_v5 = vadd.f32 %v962_v58, %v6208_v37  ;;  %4820 = vmatpush1.bf16.msra.mxu1 %v4819_v36  ;;  %v10827_v41 = vmax.f32 %v6844_v1, 0.0  ;;  %v10418_v58 = vmax.f32 %v7169_v60, 0.0 }
 0x185   :  { %10819 = vst [vmem:[#allocation135_spill] sm:$0xff] %v7158_v15  ;;  %10822 = vst [vmem:[#allocation137_spill] sm:$0xff] %v7166_v13  ;;  %v7174_v50 = vmax.f32 %v608_v61, 0.0  ;;  %v610_v61 = vadd.f32 %v609_v43, %v6141_v0  ;;  %v10829_v31 = vmax.f32 %v7158_v15, 0.0  ;;  %v10421_v43 = vmax.f32 %v7172_v26, 0.0 }
 0x186   :  { %10824 = vst [vmem:[#allocation139_spill] sm:$0xff] %v7172_v26  ;;  %10826 = vst [vmem:[#allocation141_spill] sm:$0xff] %v7178_v5  ;;  %v613_v24 = vpop.f32.mrb[84].mxu0  ;;  %v7191_v19 = vpop.f32.mrb[84].mxu1  ;;  %v10419_v33 = vmax.f32 %v7178_v5, 0.0 }
 0x187   :  { %10825 = vst [vmem:[#allocation140_spill] sm:$0xff] %v7174_v50  ;;  %v7188_v47 = vsub.f32 %v10827_v41, %v7174_v50  ;;  %v614_v36 = vadd.f32 %v613_v24, %v6135_v62  ;;  %v4823_v30 = vpack.c.bf16 %v10829_v31, %v10416_v49  ;;  %v615_v38 = vpop.f32.mrb[85].mxu0  ;;  %v7200_v1 = vpop.f32.mrb[85].mxu1  ;;  %v4723_v57 = vpack.c.bf16 %v7121_v63, %v10421_v43  ;;  %v7361_v63 = vld [vmem:[%s10194_s5 + $0x190] sm:$0xff] }
 0x188   :  { %v4821_v24 = vpack.c.bf16 %v10419_v33, %v10418_v58  ;;  %v7218_v15 = vmax.f32 %v610_v61, 0.0  ;;  %v10833_v58 = vmax.f32 %v6869_v18, 0.0  ;;  %v616_v60 = vadd.f32 %v615_v38, %v6141_v0 }
 0x189   :  { %10828 = vst [vmem:[#allocation142_spill] sm:$0xff] %v7188_v47  ;;  %v7203_v41 = vmax.f32 %v614_v36, 0.0  ;;  %v7216_v36 = vmax.f32 %v604_v53, 0.0  ;;  %4724 = vmatpush1.bf16.msra.mxu0 %v4723_v57  ;;  %v10836_v61 = vmax.f32 %v6894_v48, 0.0 }
 0x18a   :  { %v619_v12 = vpop.f32.mrb[86].mxu0  ;;  %v972_v22 = vpop.f32.mrb[86].mxu1  ;;  %10832 = vst [vmem:[#allocation145_spill] sm:$0xff] %v7218_v15  ;;  %4822 = vmatprep.subr.bf16.mxu1 %v4821_v24  ;;  %v7246_v38 = vmax.f32 %v616_v60, 0.0 }
 0x18b   :  { %10830 = vst [vmem:[#allocation143_spill] sm:$0xff] %v7203_v41  ;;  %v620_v47 = vadd.f32 %v619_v12, %v6135_v62  ;;  %v973_v31 = vadd.f32 %v972_v22, %v6213_v40  ;;  %v621_v49 = vpop.f32.mrb[87].mxu0  ;;  %v7211_v13 = vpop.f32.mrb[87].mxu1  ;;  %10831 = vst [vmem:[#allocation144_spill] sm:$0xff] %v7216_v36  ;;  %v7223_v33 = vsub.f32 %v10833_v58, %v7203_v41  ;;  %4824 = vmatpush1.bf16.msra.mxu1 %v4823_v30 }
 0x18c   :  { %v622_v43 = vadd.f32 %v621_v49, %v6141_v0  ;;  %v4725_v53 = vpack.c.bf16 %v7218_v15, %v7216_v36  ;;  %10840 = vst [vmem:[#allocation150_spill] sm:$0xff] %v7246_v38 }
 0x18d   :  { %10834 = vst [vmem:[#allocation146_spill] sm:$0xff] %v7223_v33  ;;  %v7225_v12 = vmax.f32 %v620_v47, 0.0  ;;  %v7227_v22 = vmax.f32 %v973_v31, 0.0  ;;  %v10838_v47 = vmax.f32 %v6913_v46, 0.0  ;;  %v4727_v46 = vpack.c.bf16 %v7174_v50, %v7143_v14  ;;  %v2217_v14 = vld [vmem:[%s10193_s9 + $0x180] sm:$0xff] }
 0x18e   :  { %v625_v58 = vpop.f32.mrb[88].mxu0  ;;  %v978_v24 = vpop.f32.mrb[88].mxu1  ;;  %4726 = vmatprep.subr.bf16.mxu0 %v4725_v53  ;;  %v7248_v5 = vmax.f32 %v622_v43, 0.0  ;;  %v10842_v43 = vmax.f32 %v6920_v52, 0.0  ;;  %v10847_v52 = vmax.f32 %v6343_v21, 0.0  ;;  %v10849_v21 = vmax.f32 %v6943_v45, 0.0 }
 0x18f   :  { %10835 = vst [vmem:[#allocation147_spill] sm:$0xff] %v7225_v12  ;;  %v7236_v18 = vsub.f32 %v10836_v61, %v7225_v12  ;;  %v7241_v31 = vsub.f32 %v10838_v47, %v7227_v22  ;;  %v627_v30 = vpop.f32.mrb[89].mxu0  ;;  %v7243_v57 = vpop.f32.mrb[89].mxu1  ;;  %v626_v49 = vadd.f32 %v625_v58, %v6135_v62  ;;  %v979_v48 = vadd.f32 %v978_v24, %v6213_v40 }
 0x190   :  { %10841 = vst [vmem:[#allocation151_spill] sm:$0xff] %v7248_v5  ;;  %v4729_v60 = vpack.c.bf16 %v7248_v5, %v7246_v38  ;;  %4728 = vmatpush1.bf16.msra.mxu0 %v4727_v46  ;;  %v10846_v5 = vmax.f32 %v6333_v32, 0.0 }
 0x191   :  { %10837 = vst [vmem:[#allocation148_spill] sm:$0xff] %v7236_v18  ;;  %10839 = vst [vmem:[#allocation149_spill] sm:$0xff] %v7241_v31  ;;  %v7251_v61 = vmax.f32 %v626_v49, 0.0  ;;  %v7255_v47 = vmax.f32 %v979_v48, 0.0  ;;  %v10844_v49 = vmax.f32 %v6923_v25, 0.0 }
 0x192   :  { %v631_v26 = vpop.f32.mrb[90].mxu0  ;;  %v984_v15 = vpop.f32.mrb[90].mxu1  ;;  %4730 = vmatprep.subr.bf16.mxu0 %v4729_v60  ;;  %v1893_v38 = vsub.f32 %v10846_v5, %v6686_v27 }
 0x193   :  { %v633_v31 = vpop.f32.mrb[91].mxu0  ;;  %v7257_v36 = vpop.f32.mrb[91].mxu1  ;;  %v7264_v53 = vsub.f32 %v10842_v43, %v7251_v61  ;;  %v632_v58 = vadd.f32 %v631_v26, %v6135_v62  ;;  %v985_v24 = vadd.f32 %v984_v15, %v6213_v40  ;;  %v7271_v48 = vsub.f32 %v10844_v49, %v7255_v47 }
 0x194   :  { %v1894_v43 = vsub.f32 %v10847_v52, %v6695_v51  ;;  %v10848_v15 = vmax.f32 %v6420_v2, 0.0  ;;  %v2049_v8 = vand.u32 2147483647, %v1893_v38  ;;  %v10855_v38 = vmax.f32 %v6968_v42, 0.0  ;;  %v7344_v42 = vld [vmem:[%s10194_s5 + $0x108] sm:$0xff] }
 0x195   :  { %10843 = vst [vmem:[#allocation152_spill] sm:$0xff] %v7264_v53  ;;  %10845 = vst [vmem:[#allocation153_spill] sm:$0xff] %v7271_v48  ;;  %v7282_v46 = vmax.f32 %v632_v58, 0.0  ;;  %v7284_v25 = vmax.f32 %v985_v24, 0.0  ;;  %v2205_v58 = vld [vmem:[%s10193_s9 + $0x120] sm:$0xff] }
 0x196   :  { %v637_v18 = vpop.f32.mrb[92].mxu0  ;;  %v990_v33 = vpop.f32.mrb[92].mxu1  ;;  %v1905_v26 = vsub.f32 %v10848_v15, %v6705_v16  ;;  %v2050_v45 = vand.u32 2147483647, %v1894_v43  ;;  %10859 = vst [vmem:[#allocation161_spill] sm:$0xff] %v7344_v42 }
 0x197   :  { %v638_v49 = vadd.f32 %v637_v18, %v6135_v62  ;;  %v639_v48 = vpop.f32.mrb[93].mxu0  ;;  %v7287_v60 = vpop.f32.mrb[93].mxu1  ;;  %v991_v32 = vadd.f32 %v990_v33, %v6213_v40  ;;  %v7293_v52 = vsub.f32 %v10849_v21, %v7282_v46  ;;  %v10851_v18 = vmax.f32 %v6961_v29, 0.0  ;;  %v7319_v29 = vld [vmem:[%s10194_s5 + $0x180] sm:$0xff] }
 0x198   :  { %v2061_v21 = vand.u32 2147483647, %v1905_v26  ;;  %10854 = vst [vmem:[#allocation157_spill] sm:$0xff] %v7319_v29 }
 0x199   :  { %10850 = vst [vmem:[#allocation154_spill] sm:$0xff] %v7293_v52  ;;  %v7303_v24 = vsub.f32 %v10851_v18, %v7284_v25  ;;  %v7305_v33 = vmax.f32 %v638_v49, 0.0  ;;  %v7307_v50 = vmax.f32 %v991_v32, 0.0  ;;  %v2206_v52 = vld [vmem:[%s10193_s9 + $0x128] sm:$0xff]  ;;  %v628_v49 = vadd.f32 %v627_v30, %v6141_v0  ;;  %v7339_v30 = vld [vmem:[%s10194_s5 + $0x100] sm:$0xff] }
 0x19a   :  { %v643_v5 = vpop.f32.mrb[94].mxu0  ;;  %v996_v53 = vpop.f32.mrb[94].mxu1  ;;  %10858 = vst [vmem:[#allocation160_spill] sm:$0xff] %v7339_v30 }
 0x19b   :  { %v645_v2 = vpop.f32.mrb[95].mxu0  ;;  %v7295_v15 = vpop.f32.mrb[95].mxu1  ;;  %10852 = vst [vmem:[#allocation155_spill] sm:$0xff] %v7303_v24  ;;  %10853 = vst [vmem:[#allocation156_spill] sm:$0xff] %v7307_v50  ;;  %v644_v4 = vadd.f32 %v643_v5, %v6135_v62  ;;  %v7325_v43 = vsub.f32 %v10855_v38, %v7305_v33  ;;  %v7334_v62 = vld [vmem:[%s10194_s5 + $0x188] sm:$0xff]  ;;  %v634_v5 = vadd.f32 %v633_v31, %v6141_v0  ;;  %v10860_v38 = vmax.f32 %v6971_v39, 0.0 }
 0x19c   :  { %10857 = vst [vmem:[#allocation159_spill] sm:$0xff] %v7334_v62  ;;  %v7366_v31 = vld [vmem:[%s10194_s5 + $0x198] sm:$0xff]  ;;  %v7371_v39 = vld [vmem:[%s10194_s5 + $0x110] sm:$0xff]  ;;  %v7380_v24 = vmul.f32 %v2206_v52, %v2050_v45  ;;  %v997_v7 = vadd.f32 %v996_v53, %v6213_v40  ;;  %v646_v53 = vadd.f32 %v645_v2, %v6141_v0  ;;  %v4731_v2 = vpack.c.bf16 %v7225_v12, %v7203_v41  ;;  %v7459_v12 = vld [vmem:[%s10194_s5 + $0x1c8] sm:$0xff] }
 0x19d   :  { %10856 = vst [vmem:[#allocation158_spill] sm:$0xff] %v7325_v43  ;;  %v7350_v18 = vsub.f32 %v10860_v38, %v7307_v50  ;;  %v7376_v38 = vld [vmem:[%s10194_s5 + $0x118] sm:$0xff]  ;;  %v7378_v43 = vmul.f32 %v2205_v58, %v2049_v8  ;;  %v7398_v8 = vld [vmem:[%s10194_s5 + $0x120] sm:$0xff]  ;;  %v7401_v52 = vmax.f32 %v644_v4, 0.0  ;;  %v7446_v29 = vmax.f32 %v634_v5, 0.0  ;;  %10876 = vst [vmem:[#allocation176_spill] sm:$0xff] %v7459_v12 }
 0x19e   :  { %v1002_v26 = vpop.f32.mrb[96].mxu1  ;;  %10863 = vst [vmem:[#allocation164_spill] sm:$0xff] %v7380_v24  ;;  %10865 = vst [vmem:[#allocation166_spill] sm:$0xff] %v7398_v8  ;;  %v7414_v24 = vld [vmem:[%s10194_s5 + $0x1b0] sm:$0xff]  ;;  %v7419_v4 = vld [vmem:[%s10194_s5 + $0x1b8] sm:$0xff]  ;;  %v7453_v42 = vmax.f32 %v646_v53, 0.0  ;;  %4732 = vmatpush1.bf16.msra.mxu0 %v4731_v2  ;;  %v4735_v53 = vpack.c.bf16 %v7282_v46, %v7251_v61 }
 0x19f   :  { %10861 = vst [vmem:[#allocation162_spill] sm:$0xff] %v7350_v18  ;;  %v7352_v32 = vpop.f32.mrb[97].mxu1  ;;  %10862 = vst [vmem:[#allocation163_spill] sm:$0xff] %v7378_v43  ;;  %v7382_v18 = vmul.f32 %v2217_v14, %v2061_v21  ;;  %v640_v14 = vadd.f32 %v639_v48, %v6141_v0  ;;  %v7409_v21 = vld [vmem:[%s10194_s5 + $0x128] sm:$0xff]  ;;  %v7421_v0 = vmax.f32 %v628_v49, 0.0  ;;  %v7423_v48 = vmax.f32 %v997_v7, 0.0 }
 0x1a0   :  { %10866 = vst [vmem:[#allocation167_spill] sm:$0xff] %v7409_v21  ;;  %10867 = vst [vmem:[#allocation168_spill] sm:$0xff] %v7414_v24  ;;  %v7434_v43 = vld [vmem:[%s10194_s5 + $0x130] sm:$0xff]  ;;  %v7439_v49 = vld [vmem:[%s10194_s5 + $0x138] sm:$0xff]  ;;  %v1003_v62 = vadd.f32 %v1002_v26, %v6213_v40 }
 0x1a1   :  { %10864 = vst [vmem:[#allocation165_spill] sm:$0xff] %v7382_v18  ;;  %10868 = vst [vmem:[#allocation169_spill] sm:$0xff] %v7419_v4  ;;  %v7444_v7 = vld [vmem:[%s10194_s5 + $0x1c0] sm:$0xff]  ;;  %v10874_v18 = vmax.f32 %v7002_v34, 0.0  ;;  %v7469_v34 = vld [vmem:[%s10194_s5 + $0x148] sm:$0xff]  ;;  %v7482_v16 = vmax.f32 %v640_v14, 0.0  ;;  %v4733_v50 = vpack.c.bf16 %v7446_v29, %v7421_v0  ;;  %v975_v14 = vadd.f32 %v7211_v13, %v6208_v37 }
 0x1a2   :  { %v1008_v58 = vpop.f32.mrb[98].mxu1  ;;  %10869 = vst [vmem:[#allocation170_spill] sm:$0xff] %v7421_v0  ;;  %10870 = vst [vmem:[#allocation171_spill] sm:$0xff] %v7423_v48  ;;  %v7464_v41 = vld [vmem:[%s10194_s5 + $0x140] sm:$0xff]  ;;  %v7511_v26 = vld [vmem:[%s10194_s5 + $0x150] sm:$0xff]  ;;  %v7518_v13 = vmax.f32 %v1003_v62, 0.0 }
 0x1a3   :  { %v7427_v45 = vpop.f32.mrb[99].mxu1  ;;  %10871 = vst [vmem:[#allocation172_spill] sm:$0xff] %v7434_v43  ;;  %10872 = vst [vmem:[#allocation173_spill] sm:$0xff] %v7439_v49  ;;  %v7451_v30 = vsub.f32 %v10874_v18, %v7401_v52  ;;  %v10879_v18 = vmax.f32 %v7022_v44, 0.0  ;;  %4734 = vmatprep.subr.bf16.mxu0 %v4733_v50  ;;  %v1009_v44 = vadd.f32 %v1008_v58, %v6213_v40  ;;  %v7533_v62 = vld [vmem:[%s10194_s5 + $0x1e8] sm:$0xff]  ;;  %v7549_v49 = vld [vmem:[%s10194_s5 + $0x160] sm:$0xff] }
 0x1a4   :  { %10873 = vst [vmem:[#allocation174_spill] sm:$0xff] %v7444_v7  ;;  %10877 = vst [vmem:[#allocation177_spill] sm:$0xff] %v7464_v41  ;;  %v4737_v2 = vpack.c.bf16 %v7453_v42, %v7482_v16  ;;  %v7537_v50 = vadd.f32 %v7200_v1, %v6208_v37  ;;  %v4739_v58 = vpack.c.bf16 %v7401_v52, %v7305_v33  ;;  %v7554_v1 = vld [vmem:[%s10194_s5 + $0x168] sm:$0xff]  ;;  %v7559_v24 = vld [vmem:[%s10194_s5 + $0x1f0] sm:$0xff]  ;;  %v10892_v43 = vmax.f32 %v7032_v55, 0.0 }
 0x1a5   :  { %10875 = vst [vmem:[#allocation175_spill] sm:$0xff] %v7451_v30  ;;  %10878 = vst [vmem:[#allocation178_spill] sm:$0xff] %v7469_v34  ;;  %v7474_v5 = vsub.f32 %v10879_v18, %v7423_v48  ;;  %v7493_v18 = vld [vmem:[%s10194_s5 + $0x1d0] sm:$0xff]  ;;  %v7498_v30 = vld [vmem:[%s10194_s5 + $0x1d8] sm:$0xff]  ;;  %4736 = vmatpush1.bf16.msra.mxu0 %v4735_v53  ;;  %v7591_v53 = vmax.f32 %v975_v14, 0.0 }
 0x1a6   :  { %10881 = vst [vmem:[#allocation180_spill] sm:$0xff] %v7493_v18  ;;  %10882 = vst [vmem:[#allocation181_spill] sm:$0xff] %v7498_v30  ;;  %v1014_v41 = vpop.f32.mrb[100].mxu1  ;;  %v7528_v34 = vld [vmem:[%s10194_s5 + $0x1e0] sm:$0xff]  ;;  %v7566_v18 = vsub.f32 %v10892_v43, %v7518_v13  ;;  %v7568_v30 = vmax.f32 %v1009_v44, 0.0  ;;  %v7575_v21 = vld [vmem:[%s10194_s5 + $0x1f8] sm:$0xff]  ;;  %v7589_v43 = vadd.f32 %v7191_v19, %v6213_v40  ;;  %4738 = vmatprep.subr.bf16.mxu0 %v4737_v2 }
 0x1a7   :  { %10880 = vst [vmem:[#allocation179_spill] sm:$0xff] %v7474_v5  ;;  %10883 = vst [vmem:[#allocation182_spill] sm:$0xff] %v7511_v26  ;;  %v7516_v5 = vld [vmem:[%s10194_s5 + $0x158] sm:$0xff]  ;;  %v1015_v7 = vadd.f32 %v1014_v41, %v6213_v40  ;;  %v7542_v12 = vpop.f32.mrb[101].mxu1  ;;  %v987_v41 = vadd.f32 %v7257_v36, %v6208_v37  ;;  %v7580_v36 = vld [vmem:[%s10194_s5 + $0x170] sm:$0xff]  ;;  %v981_v26 = vadd.f32 %v7243_v57, %v6208_v37 }
 0x1a8   :  { %10884 = vst [vmem:[#allocation183_spill] sm:$0xff] %v7516_v5  ;;  %10885 = vst [vmem:[#allocation184_spill] sm:$0xff] %v7518_v13  ;;  %v7585_v55 = vld [vmem:[%s10194_s5 + $0x178] sm:$0xff]  ;;  %v999_v5 = vadd.f32 %v7295_v15, %v6208_v37  ;;  %v7617_v15 = vld [vmem:[%s10194_s5 + $0x80] sm:$0xff] }
 0x1a9   :  { %10886 = vst [vmem:[#allocation185_spill] sm:$0xff] %v7528_v34  ;;  %10887 = vst [vmem:[#allocation186_spill] sm:$0xff] %v7533_v62  ;;  %v7593_v44 = vmax.f32 %v1015_v7, 0.0  ;;  %v10899_v7 = vmax.f32 %v7078_v11, 0.0  ;;  %v7622_v19 = vld [vmem:[%s10194_s5 + $0x88] sm:$0xff]  ;;  %v7624_v0 = vmax.f32 %v987_v41, 0.0  ;;  %v993_v11 = vadd.f32 %v7287_v60, %v6208_v37  ;;  %4740 = vmatpush1.bf16.msra.mxu0 %v4739_v58 }
 0x1aa   :  { %10888 = vst [vmem:[#allocation187_spill] sm:$0xff] %v7537_v50  ;;  %10889 = vst [vmem:[#allocation188_spill] sm:$0xff] %v7549_v49  ;;  %v1020_v4 = vpop.f32.mrb[102].mxu1  ;;  %v7643_v41 = vld [vmem:[%s10194_s5 + $0x8] sm:$0xff]  ;;  %v10904_v60 = vmax.f32 %v7029_v35, 0.0  ;;  %v7665_v35 = vld [vmem:[%s10194_s5 + $0x90] sm:$0xff] }
 0x1ab   :  { %10890 = vst [vmem:[#allocation189_spill] sm:$0xff] %v7554_v1  ;;  %10891 = vst [vmem:[#allocation190_spill] sm:$0xff] %v7559_v24  ;;  %v1021_v8 = vadd.f32 %v1020_v4, %v6213_v40  ;;  %v7608_v2 = vsub.f32 %v10899_v7, %v7568_v30  ;;  %v10902_v7 = vmax.f32 %v7081_v3, 0.0  ;;  %v10905_v3 = vmax.f32 %v7036_v56, 0.0  ;;  %v7670_v56 = vld [vmem:[%s10194_s5 + $0x98] sm:$0xff]  ;;  %v10945_v62 = vld [vmem:[#allocation8_spill] sm:$0xff] }
 0x1ac   :  { %10893 = vst [vmem:[#allocation191_spill] sm:$0xff] %v7566_v18  ;;  %10894 = vst [vmem:[#allocation192_spill] sm:$0xff] %v7568_v30  ;;  %v1022_v18 = vpop.f32.mrb[103].mxu1  ;;  %v7648_v58 = vsub.f32 %v10904_v60, %v6686_v27  ;;  %v7672_v60 = vmax.f32 %v981_v26, 0.0 }
 0x1ad   :  { %10895 = vst [vmem:[#allocation193_spill] sm:$0xff] %v7575_v21  ;;  %10896 = vst [vmem:[#allocation194_spill] sm:$0xff] %v7580_v36  ;;  %v7631_v57 = vsub.f32 %v10902_v7, %v7593_v44  ;;  %v7633_v4 = vmax.f32 %v1021_v8, 0.0  ;;  %v7653_v8 = vsub.f32 %v10905_v3, %v6695_v51  ;;  %v10907_v36 = vmax.f32 %v7537_v50, 0.0 }
 0x1ae   :  { %10897 = vst [vmem:[#allocation195_spill] sm:$0xff] %v7585_v55  ;;  %10898 = vst [vmem:[#allocation196_spill] sm:$0xff] %v7591_v53  ;;  %v1026_v14 = vpop.f32.mrb[104].mxu1  ;;  %v7674_v3 = vmax.f32 %v999_v5, 0.0  ;;  %v10910_v7 = vmax.f32 %v7112_v6, 0.0  ;;  %v10914_v6 = vpack.c.bf16 %v6372_v17, %v6686_v27 }
 0x1af   :  { %10900 = vst [vmem:[#allocation197_spill] sm:$0xff] %v7608_v2  ;;  %10901 = vst [vmem:[#allocation198_spill] sm:$0xff] %v7624_v0  ;;  %v7638_v2 = vld [vmem:[%s10194_s5] sm:$0xff]  ;;  %v4825_v55 = vpack.c.bf16 %v7591_v53, %v10907_v36  ;;  %v4853_v36 = vpack.c.bf16 %v7622_v19, %v7617_v15  ;;  %v10912_v53 = vmax.f32 %v7589_v43, 0.0  ;;  %v1027_v5 = vadd.f32 %v1026_v14, %v6213_v40  ;;  %v7705_v14 = vld [vmem:[%s10194_s5 + $0x10] sm:$0xff] }
 0x1b0   :  { %10903 = vst [vmem:[#allocation199_spill] sm:$0xff] %v7631_v57  ;;  %v10906_v57 = vpack.c.bf16 %v6380_v59, %v6695_v51  ;;  %10908 = vst [vmem:[#allocation200_spill] sm:$0xff] %v7672_v60  ;;  %v1011_v51 = vadd.f32 %v7427_v45, %v6208_v37  ;;  %v7683_v50 = vsub.f32 %v10910_v7, %v7633_v4  ;;  %v7691_v45 = vmax.f32 %v993_v11, 0.0 }
 0x1b1   :  { %10909 = vst [vmem:[#allocation201_spill] sm:$0xff] %v7674_v3  ;;  %4826 = vmatprep.subr.bf16.mxu1 %v4825_v55  ;;  %v4827_v26 = vpack.c.bf16 %v7227_v22, %v10912_v53  ;;  %v4855_v24 = vpack.c.bf16 %v7643_v41, %v7638_v2  ;;  %v1005_v19 = vadd.f32 %v7352_v32, %v6208_v37  ;;  %v7710_v32 = vld [vmem:[%s10194_s5 + $0x18] sm:$0xff]  ;;  %v2153_v27 = vand.u32 2147483647, %v7648_v58 }
 0x1b2   :  { %4742 = vmatprep.subr.bf16.mxu0 %v10906_v57  ;;  %v1028_v57 = vpop.f32.mrb[105].mxu1  ;;  %10911 = vst [vmem:[#allocation202_spill] sm:$0xff] %v7683_v50  ;;  %10913 = vst [vmem:[#allocation203_spill] sm:$0xff] %v7691_v45  ;;  %v4829_v55 = vpack.c.bf16 %v7624_v0, %v7672_v60  ;;  %v4857_v53 = vpack.c.bf16 %v7670_v56, %v7665_v35  ;;  %v2154_v2 = vand.u32 2147483647, %v7653_v8  ;;  %v7717_v41 = vmax.f32 %v1027_v5, 0.0 }
 0x1b3   :  { %4744 = vmatpush1.bf16.msra.mxu0 %v10914_v6  ;;  %v1032_v15 = vpop.f32.mrb[106].mxu1  ;;  %v10915_v11 = vpack.c.bf16 %v6757_v23, %v6399_v9  ;;  %4828 = vmatpush1.bf16.msra.mxu1 %v4827_v26  ;;  %v4831_v7 = vpack.c.bf16 %v7284_v25, %v7255_v47  ;;  %v7721_v56 = vmax.f32 %v1011_v51, 0.0  ;;  %v1023_v6 = vadd.f32 %v1022_v18, %v6208_v37  ;;  %v7730_v26 = vld [vmem:[%s10194_s5 + $0xa0] sm:$0xff]  ;;  %v7735_v5 = vld [vmem:[%s10194_s5 + $0xa8] sm:$0xff] }
 0x1b4   :  { %v1034_v35 = vpop.f32.mrb[107].mxu1  ;;  %4830 = vmatprep.subr.bf16.mxu1 %v4829_v55  ;;  %v1033_v58 = vadd.f32 %v1032_v15, %v6213_v40  ;;  %v4833_v8 = vpack.c.bf16 %v7674_v3, %v7691_v45  ;;  %v10917_v51 = vmax.f32 %v7060_v28, 0.0  ;;  %v10918_v55 = vmax.f32 %v7124_v54, 0.0  ;;  %v2309_v45 = vld [vmem:[%s10193_s9 + $0x460] sm:$0xff]  ;;  %v2310_v28 = vld [vmem:[%s10193_s9 + $0x468] sm:$0xff] }
 0x1b5   :  { %4746 = vmatprep.subr.bf16.mxu0 %v10915_v11  ;;  %10916 = vst [vmem:[#allocation204_spill] sm:$0xff] %v7721_v56  ;;  %v10920_v11 = vld [vmem:[#allocation156_spill] sm:$0xff]  ;;  %v4859_v0 = vpack.c.bf16 %v7710_v32, %v7705_v14  ;;  %v1017_v54 = vadd.f32 %v7542_v12, %v6208_v37  ;;  %v7765_v14 = vld [vmem:[%s10192_s1 + $0x10] sm:$0xff]  ;;  %v1035_v34 = vadd.f32 %v1034_v35, %v6208_v37 }
 0x1b6   :  { %v2001_v18 = vsub.f32 %v10917_v51, %v6372_v17  ;;  %v7743_v15 = vsub.f32 %v10918_v55, %v7717_v41  ;;  %v4835_v3 = vpack.c.bf16 %v7423_v48, %v10920_v11  ;;  %v7755_v17 = vmax.f32 %v1005_v19, 0.0  ;;  %v10922_v51 = vld [vmem:[#allocation85_spill] sm:$0xff]  ;;  %v10923_v55 = vld [vmem:[#allocation35_spill] sm:$0xff]  ;;  %v1038_v60 = vpop.f32.mrb[108].mxu1  ;;  %v1554_v35 = vld [vmem:[%s10194_s5 + $0x28] sm:$0xff] }
 0x1b7   :  { %v10924_v23 = vpack.c.bf16 %v10922_v51, %v10923_v55  ;;  %v7767_v32 = vmax.f32 %v1033_v58, 0.0  ;;  %v10925_v19 = vld [vmem:[#allocation123_spill] sm:$0xff]  ;;  %4832 = vmatpush1.bf16.msra.mxu1 %v4831_v7  ;;  %v1039_v12 = vadd.f32 %v1038_v60, %v6213_v40  ;;  %v7779_v51 = vmax.f32 %v1023_v6, 0.0  ;;  %v10928_v58 = vld [vmem:[#allocation134_spill] sm:$0xff] }
 0x1b8   :  { %10919 = vst [vmem:[#allocation205_spill] sm:$0xff] %v7743_v15  ;;  %10921 = vst [vmem:[#allocation156_spill] sm:$0xff] %v7755_v17  ;;  %v4839_v15 = vpack.c.bf16 %v7568_v30, %v7518_v13  ;;  %v10926_v50 = vmax.f32 %v10925_v19, 0.0  ;;  %v10929_v49 = vmax.f32 %v10928_v58, 0.0  ;;  %4834 = vmatprep.subr.bf16.mxu1 %v4833_v8  ;;  %v7789_v7 = vmul.f32 %v2309_v45, %v2153_v27  ;;  %v10938_v58 = vld [vmem:[#allocation6_spill] sm:$0xff]  ;;  %v10947_v13 = vld [vmem:[#allocation143_spill] sm:$0xff] }
 0x1b9   :  { %4748 = vmatpush1.bf16.msra.mxu0 %v10924_v23  ;;  %v4861_v23 = vpack.c.bf16 %v7735_v5, %v7730_v26  ;;  %10927 = vst [vmem:[#allocation35_spill] sm:$0xff] %v7779_v51  ;;  %v7791_v60 = vmul.f32 %v2310_v28, %v2154_v2  ;;  %v2157_v8 = vand.u32 2147483647, %v2001_v18  ;;  %v7804_v45 = vmax.f32 %v1017_v54, 0.0  ;;  %v1571_v26 = vld [vmem:[%s10194_s5 + $0xb0] sm:$0xff]  ;;  %v1572_v5 = vld [vmem:[%s10194_s5 + $0xb8] sm:$0xff] }
 0x1ba   :  { %v7774_v21 = vsub.f32 %v10926_v50, %v6380_v59  ;;  %4854 = vmatprep.subr.bf16.mxu0 %v4853_v36  ;;  %v7784_v1 = vsub.f32 %v10929_v49, %v7767_v32  ;;  %v4837_v59 = vpack.c.bf16 %v7721_v56, %v7755_v17  ;;  %v1040_v50 = vpop.f32.mrb[109].mxu1  ;;  %10931 = vst [vmem:[#allocation134_spill] sm:$0xff] %v7789_v7  ;;  %v7794_v36 = vmax.f32 %v1039_v12, 0.0  ;;  %v1553_v49 = vld [vmem:[%s10194_s5 + $0x20] sm:$0xff]  ;;  %v10934_v54 = vld [vmem:[#allocation129_spill] sm:$0xff] }
 0x1bb   :  { %10932 = vst [vmem:[#allocation206_spill] sm:$0xff] %v7791_v60  ;;  %10933 = vst [vmem:[#allocation207_spill] sm:$0xff] %v7804_v45  ;;  %v1029_v27 = vadd.f32 %v1028_v57, %v6208_v37  ;;  %v2313_v18 = vld [vmem:[%s10193_s9 + $0x480] sm:$0xff]  ;;  %v10935_v57 = vld [vmem:[#allocation4_spill] sm:$0xff]  ;;  %v10939_v2 = vmax.f32 %v10938_v58, 0.0  ;;  %4836 = vmatpush1.bf16.msra.mxu1 %v4835_v3  ;;  %v1044_v60 = vpop.f32.mrb[110].mxu1  ;;  %v4863_v58 = vpack.c.bf16 %v1554_v35, %v1553_v49 }
 0x1bc   :  { %10930 = vst [vmem:[#allocation123_spill] sm:$0xff] %v7784_v1  ;;  %1401 = vmatmul.mubr.f32.vlgmr.msra.gmra.mrb[96].mxu0 %v7765_v14  ;;  %v2158_v28 = vand.u32 2147483647, %v7774_v21  ;;  %v10936_v19 = vmax.f32 %v10935_v57, 0.0  ;;  %v10940_v56 = vld [vmem:[#allocation135_spill] sm:$0xff]  ;;  %v7834_v7 = vmax.f32 %v1035_v34, 0.0  ;;  %4838 = vmatprep.subr.bf16.mxu1 %v4837_v59  ;;  %v1045_v21 = vadd.f32 %v1044_v60, %v6213_v40 }
 0x1bd   :  { %4856 = vmatpush3.bf16.msra.mxu0 %v4855_v24  ;;  %v10937_v24 = vld [vmem:[#allocation133_spill] sm:$0xff]  ;;  %v10941_v17 = vmax.f32 %v10940_v56, 0.0  ;;  %v4841_v57 = vpack.c.bf16 %v7779_v51, %v7804_v45  ;;  %v10946_v3 = vmax.f32 %v10945_v62, 0.0  ;;  %v10948_v56 = vld [vmem:[#allocation10_spill] sm:$0xff]  ;;  %v4865_v34 = vpack.c.bf16 %v1572_v5, %v1571_v26  ;;  %v2314_v40 = vld [vmem:[%s10193_s9 + $0x488] sm:$0xff] }
 0x1be   :  { %v7822_v12 = vsub.f32 %v10936_v19, %v10934_v54  ;;  %v7827_v6 = vsub.f32 %v10939_v2, %v10937_v24  ;;  %4858 = vmatprep.subr.bf16.mxu0 %v4857_v53  ;;  %10943 = vst [vmem:[#allocation4_spill] sm:$0xff] %v7834_v7  ;;  %v1046_v19 = vpop.f32.mrb[111].mxu1  ;;  %v10944_v2 = vld [vmem:[#allocation140_spill] sm:$0xff]  ;;  %v7846_v48 = vmul.f32 %v2313_v18, %v2157_v8  ;;  %v7851_v59 = vmax.f32 %v1029_v27, 0.0  ;;  %v10954_v5 = vld [vmem:[#allocation147_spill] sm:$0xff] }
 0x1bf   :  { %v7832_v1 = vsub.f32 %v10941_v17, %v7794_v36  ;;  %v1865_v30 = vsub.f32 %v10946_v3, %v10944_v2  ;;  %v10949_v17 = vmax.f32 %v10948_v56, 0.0  ;;  %v1047_v53 = vadd.f32 %v1046_v19, %v6208_v37  ;;  %v10952_v62 = vld [vmem:[#allocation124_spill] sm:$0xff]  ;;  %4840 = vmatpush1.bf16.msra.mxu1 %v4839_v15  ;;  %v1573_v27 = vld [vmem:[%s10194_s5 + $0xc0] sm:$0xff] }
 0x1c0   :  { %10950 = vst [vmem:[#allocation133_spill] sm:$0xff] %v7846_v48  ;;  %10951 = vst [vmem:[#allocation6_spill] sm:$0xff] %v7851_v59  ;;  %v1041_v60 = vadd.f32 %v1040_v50, %v6208_v37  ;;  %v7854_v49 = vmax.f32 %v1045_v21, 0.0  ;;  %v10953_v35 = vmax.f32 %v10952_v62, 0.0  ;;  %v2013_v26 = vand.u32 2147483647, %v7822_v12  ;;  %4842 = vmatprep.subr.bf16.mxu1 %v4841_v57 }
 0x1c1   :  { %10942 = vst [vmem:[#allocation129_spill] sm:$0xff] %v7832_v1  ;;  %v1869_v1 = vsub.f32 %v10949_v17, %v10947_v13  ;;  %4860 = vmatpush3.bf16.msra.mxu0 %v4859_v0  ;;  %v2017_v8 = vand.u32 2147483647, %v7827_v6  ;;  %v10955_v18 = vld [vmem:[#allocation12_spill] sm:$0xff]  ;;  %v1555_v37 = vld [vmem:[%s10194_s5 + $0x30] sm:$0xff]  ;;  %v1556_v0 = vld [vmem:[%s10194_s5 + $0x38] sm:$0xff]  ;;  %v4845_v15 = vpack.c.bf16 %v7834_v7, %v7851_v59 }
 0x1c2   :  { %v7859_v3 = vsub.f32 %v10953_v35, %v10923_v55  ;;  %v10956_v19 = vmax.f32 %v10955_v18, 0.0  ;;  %4862 = vmatprep.subr.bf16.mxu0 %v4861_v23  ;;  %v10957_v55 = vmax.f32 %v7589_v43, 0.0  ;;  %v7879_v6 = vmax.f32 %v1047_v53, 0.0  ;;  %v1574_v12 = vld [vmem:[%s10194_s5 + $0xc8] sm:$0xff]  ;;  %v10961_v17 = vld [vmem:[#allocation17_spill] sm:$0xff]  ;;  %v2169_v35 = vld [vmem:[%s10193_s9] sm:$0xff] }
 0x1c3   :  { %v7891_v43 = vmul.f32 %v2314_v40, %v2158_v28  ;;  %v2021_v21 = vand.u32 2147483647, %v1865_v30  ;;  %v2025_v57 = vand.u32 2147483647, %v1869_v1  ;;  %v10962_v53 = vmax.f32 %v10961_v17, 0.0  ;;  %v2173_v18 = vld [vmem:[%s10193_s9 + $0x20] sm:$0xff] }
 0x1c4   :  { %v7866_v56 = vsub.f32 %v10956_v19, %v10954_v5  ;;  %v7877_v50 = vsub.f32 %v10957_v55, %v7854_v49  ;;  %10959 = vst [vmem:[#allocation140_spill] sm:$0xff] %v7879_v6  ;;  %v10963_v19 = vld [vmem:[#allocation125_spill] sm:$0xff]  ;;  %v10965_v30 = vld [vmem:[#allocation48_spill] sm:$0xff]  ;;  %v7912_v40 = vmax.f32 %v1041_v60, 0.0  ;;  %v4867_v17 = vpack.c.bf16 %v1556_v0, %v1555_v37  ;;  %v2317_v45 = vld [vmem:[%s10193_s9 + $0x4a0] sm:$0xff] }
 0x1c5   :  { %10960 = vst [vmem:[#allocation8_spill] sm:$0xff] %v7891_v43  ;;  %v1877_v62 = vsub.f32 %v10962_v53, %v7251_v61  ;;  %v10964_v55 = vmax.f32 %v10963_v19, 0.0  ;;  %v10966_v1 = vmax.f32 %v10965_v30, 0.0  ;;  %4864 = vmatpush3.bf16.msra.mxu0 %v4863_v58  ;;  %v2177_v53 = vld [vmem:[%s10193_s9 + $0x40] sm:$0xff]  ;;  %v10970_v60 = vld [vmem:[#allocation20_spill] sm:$0xff]  ;;  %v10972_v37 = vpack.c.bf16 %v7633_v4, %v7593_v44 }
 0x1c6   :  { %10958 = vst [vmem:[#allocation135_spill] sm:$0xff] %v7877_v50  ;;  %10967 = vst [vmem:[#allocation143_spill] sm:$0xff] %v7912_v40  ;;  %v2181_v50 = vld [vmem:[%s10193_s9 + $0x60] sm:$0xff]  ;;  %v10971_v30 = vmax.f32 %v10970_v60, 0.0  ;;  %4866 = vmatprep.subr.bf16.mxu0 %v4865_v34  ;;  %v4869_v0 = vpack.c.bf16 %v1574_v12, %v1573_v27  ;;  %v4849_v60 = vpack.c.bf16 %v7879_v6, %v7912_v40  ;;  %v1575_v34 = vld [vmem:[%s10194_s5 + $0xd0] sm:$0xff] }
 0x1c7   :  { %v7905_v23 = vsub.f32 %v10964_v55, %v6399_v9  ;;  %v7910_v28 = vsub.f32 %v10966_v1, %v10934_v54  ;;  %v10968_v9 = vld [vmem:[#allocation50_spill] sm:$0xff]  ;;  %v2029_v54 = vand.u32 2147483647, %v7866_v56  ;;  %4844 = vmatpush1.bf16.msra.mxu1 %v10972_v37  ;;  %v1557_v1 = vld [vmem:[%s10194_s5 + $0x40] sm:$0xff]  ;;  %v10973_v56 = vld [vmem:[#allocation25_spill] sm:$0xff]  ;;  %v7953_v12 = vmul.f32 %v2169_v35, %v2013_v26 }
 0x1c8   :  { %v10969_v19 = vmax.f32 %v10968_v9, 0.0  ;;  %v7929_v58 = vsub.f32 %v10971_v30, %v7282_v46  ;;  %v10974_v9 = vmax.f32 %v10973_v56, 0.0  ;;  %4846 = vmatprep.subr.bf16.mxu1 %v4845_v15  ;;  %v1576_v27 = vld [vmem:[%s10194_s5 + $0xd8] sm:$0xff]  ;;  %v7955_v30 = vmul.f32 %v2173_v18, %v2017_v8  ;;  %v10975_v56 = vld [vmem:[#allocation28_spill] sm:$0xff]  ;;  %v2185_v40 = vld [vmem:[%s10193_s9 + $0x80] sm:$0xff] }
 0x1c9   :  { %v2033_v37 = vand.u32 2147483647, %v1877_v62  ;;  %v7960_v7 = vmul.f32 %v2177_v53, %v2021_v21  ;;  %v7962_v6 = vmul.f32 %v2181_v50, %v2025_v57  ;;  %4868 = vmatpush3.bf16.msra.mxu0 %v4867_v17  ;;  %v1559_v62 = vld [vmem:[%s10194_s5 + $0x50] sm:$0xff]  ;;  %v2189_v50 = vld [vmem:[%s10193_s9 + $0xa0] sm:$0xff]  ;;  %v2065_v57 = vand.u32 2147483647, %v7910_v28 }
 0x1ca   :  { %v7923_v55 = vsub.f32 %v10969_v19, %v10937_v24  ;;  %v1558_v24 = vld [vmem:[%s10194_s5 + $0x48] sm:$0xff]  ;;  %v7943_v19 = vsub.f32 %v10974_v9, %v7305_v33  ;;  %v10976_v9 = vmax.f32 %v10975_v56, 0.0  ;;  %v10978_v35 = vld [vmem:[#allocation53_spill] sm:$0xff]  ;;  %v10980_v17 = vpack.c.bf16 %v7767_v32, %v7717_v41  ;;  %4870 = vmatprep.subr.bf16.mxu0 %v4869_v0  ;;  %v1577_v56 = vld [vmem:[%s10194_s5 + $0xe0] sm:$0xff] }
 0x1cb   :  { %10977 = vst [vmem:[#allocation10_spill] sm:$0xff] %v7960_v7  ;;  %v4871_v8 = vpack.c.bf16 %v1558_v24, %v1557_v1  ;;  %v10979_v18 = vmax.f32 %v10978_v35, 0.0  ;;  %v4873_v1 = vpack.c.bf16 %v1576_v27, %v1575_v34  ;;  %v1560_v24 = vld [vmem:[%s10194_s5 + $0x58] sm:$0xff]  ;;  %v1578_v28 = vld [vmem:[%s10194_s5 + $0xe8] sm:$0xff]  ;;  %v2037_v35 = vand.u32 2147483647, %v7929_v58 }
 0x1cc   :  { %v1889_v15 = vsub.f32 %v10976_v9, %v7401_v52  ;;  %4848 = vmatpush1.bf16.msra.mxu1 %v10980_v17  ;;  %v10981_v0 = vld [vmem:[#allocation58_spill] sm:$0xff]  ;;  %v10983_v17 = vld [vmem:[#allocation61_spill] sm:$0xff]  ;;  %v8010_v59 = vmul.f32 %v2185_v40, %v2029_v54  ;;  %v2197_v58 = vld [vmem:[%s10193_s9 + $0xe0] sm:$0xff]  ;;  %v4875_v40 = vpack.c.bf16 %v1560_v24, %v1559_v62  ;;  %v10995_v9 = vpack.c.bf16 %v7854_v49, %v7794_v36 }
 0x1cd   :  { %v7981_v53 = vsub.f32 %v10979_v18, %v10944_v2  ;;  %v10982_v34 = vmax.f32 %v10981_v0, 0.0  ;;  %v2041_v18 = vand.u32 2147483647, %v7943_v19  ;;  %4850 = vmatprep.subr.bf16.mxu1 %v4849_v60  ;;  %v10984_v21 = vmax.f32 %v10983_v17, 0.0  ;;  %v2221_v19 = vld [vmem:[%s10193_s9 + $0x1a0] sm:$0xff]  ;;  %4872 = vmatpush3.bf16.msra.mxu0 %v4871_v8  ;;  %v10993_v62 = vld [vmem:[#allocation69_spill] sm:$0xff] }
 0x1ce   :  { %v2045_v51 = vand.u32 2147483647, %v1889_v15  ;;  %10985 = vst [vmem:[#allocation124_spill] sm:$0xff] %v8010_v59  ;;  %v8012_v2 = vmul.f32 %v2189_v50, %v2033_v37  ;;  %v1561_v54 = vld [vmem:[%s10194_s5 + $0x60] sm:$0xff]  ;;  %v1562_v37 = vld [vmem:[%s10194_s5 + $0x68] sm:$0xff]  ;;  %v10994_v24 = vmax.f32 %v10993_v62, 0.0  ;;  %4874 = vmatprep.subr.bf16.mxu0 %v4873_v1  ;;  %v8081_v7 = vmul.f32 %v2221_v19, %v2065_v57 }
 0x1cf   :  { %v8001_v27 = vsub.f32 %v10982_v34, %v10947_v13  ;;  %v8008_v26 = vsub.f32 %v10984_v21, %v10954_v5  ;;  %v2193_v13 = vld [vmem:[%s10193_s9 + $0xc0] sm:$0xff]  ;;  %v10987_v5 = vld [vmem:[#allocation66_spill] sm:$0xff]  ;;  %v10989_v21 = vld [vmem:[#allocation21_spill] sm:$0xff]  ;;  %v2073_v8 = vand.u32 2147483647, %v7981_v53 }
 0x1d0   :  { %10986 = vst [vmem:[#allocation147_spill] sm:$0xff] %v8012_v2  ;;  %v10988_v60 = vmax.f32 %v10987_v5, 0.0  ;;  %v10990_v50 = vmax.f32 %v10989_v21, 0.0  ;;  %v10991_v34 = vld [vmem:[#allocation27_spill] sm:$0xff]  ;;  %4852 = vmatpush1.bf16.msra.mxu1 %v10995_v9  ;;  %v4877_v21 = vpack.c.bf16 %v1578_v28, %v1577_v56  ;;  %v2198_v53 = vld [vmem:[%s10193_s9 + $0xe8] sm:$0xff]  ;;  %v1579_v1 = vld [vmem:[%s10194_s5 + $0xf0] sm:$0xff] }
 0x1d1   :  { %v10992_v17 = vmax.f32 %v10991_v34, 0.0  ;;  %v2194_v34 = vld [vmem:[%s10193_s9 + $0xc8] sm:$0xff]  ;;  %v1580_v56 = vld [vmem:[%s10194_s5 + $0xf8] sm:$0xff]  ;;  %11002 = vst [vmem:[#allocation17_spill] sm:$0xff] %v8081_v7  ;;  %4876 = vmatpush3.bf16.msra.mxu0 %v4875_v40  ;;  %v11106_v7 = vld [vmem:[#allocation185_spill] sm:$0xff] }
 0x1d2   :  { %v8026_v15 = vsub.f32 %v10988_v60, %v7251_v61  ;;  %v1882_v0 = vsub.f32 %v10990_v50, %v7446_v29  ;;  %v2201_v61 = vld [vmem:[%s10193_s9 + $0x100] sm:$0xff]  ;;  %v8047_v60 = vsub.f32 %v10994_v24, %v7282_v46  ;;  %v10997_v46 = vld [vmem:[#allocation157_spill] sm:$0xff]  ;;  %v8069_v24 = vmul.f32 %v2193_v13, %v2037_v35  ;;  %v2318_v57 = vld [vmem:[%s10193_s9 + $0x4a8] sm:$0xff]  ;;  %4878 = vmatprep.subr.bf16.mxu0 %v4877_v21 }
 0x1d3   :  { %v1886_v5 = vsub.f32 %v10992_v17, %v7482_v16  ;;  %v10996_v17 = vld [vmem:[#allocation159_spill] sm:$0xff]  ;;  %v8071_v50 = vmul.f32 %v2197_v58, %v2041_v18  ;;  %v8079_v2 = vmul.f32 %v2201_v61, %v2045_v51  ;;  %1543 = vmatmul.mubr.f32.vlgmr.msra.gmra.mrb[112].mxu1 %v7765_v14  ;;  %v2202_v58 = vld [vmem:[%s10193_s9 + $0x108] sm:$0xff]  ;;  %v11008_v21 = vld [vmem:[#allocation74_spill] sm:$0xff] }
 0x1d4   :  { %v10998_v62 = vpack.c.bf16 %v10996_v17, %v10997_v46  ;;  %v2038_v28 = vand.u32 2147483647, %v1882_v0  ;;  %v4879_v17 = vpack.c.bf16 %v1562_v37, %v1561_v54  ;;  %v10999_v46 = vld [vmem:[#allocation29_spill] sm:$0xff]  ;;  %v2077_v0 = vand.u32 2147483647, %v8001_v27  ;;  %v2225_v51 = vld [vmem:[%s10193_s9 + $0x1c0] sm:$0xff] }
 0x1d5   :  { %v2042_v9 = vand.u32 2147483647, %v1886_v5  ;;  %11001 = vst [vmem:[#allocation12_spill] sm:$0xff] %v8079_v2  ;;  %v2229_v14 = vld [vmem:[%s10193_s9 + $0x1e0] sm:$0xff]  ;;  %v11003_v27 = vld [vmem:[#allocation161_spill] sm:$0xff]  ;;  %v11004_v19 = vld [vmem:[#allocation160_spill] sm:$0xff]  ;;  %v4881_v54 = vpack.c.bf16 %v1580_v56, %v1579_v1 }
 0x1d6   :  { %4886 = vmatprep.subr.bf16.mxu1 %v10998_v62  ;;  %v11000_v62 = vmax.f32 %v10999_v46, 0.0  ;;  %v8085_v35 = vmul.f32 %v2194_v34, %v2038_v28  ;;  %v11005_v40 = vpack.c.bf16 %v11003_v27, %v11004_v19  ;;  %v1563_v37 = vld [vmem:[%s10194_s5 + $0x70] sm:$0xff]  ;;  %v1564_v5 = vld [vmem:[%s10194_s5 + $0x78] sm:$0xff]  ;;  %v11006_v34 = vld [vmem:[#allocation163_spill] sm:$0xff]  ;;  %v2081_v46 = vand.u32 2147483647, %v8008_v26  ;;  %4880 = vmatpush3.bf16.msra.mxu0 %v4879_v17 }
 0x1d7   :  { %v8087_v18 = vmul.f32 %v2198_v53, %v2042_v9  ;;  %v11009_v1 = vmax.f32 %v11008_v21, 0.0  ;;  %v11013_v53 = vand.u32 2147483647, %v7859_v3  ;;  %v11015_v21 = vand.u32 2147483647, %v7923_v55  ;;  %4882 = vmatprep.subr.bf16.mxu0 %v4881_v54  ;;  %v11043_v13 = vld [vmem:[#allocation80_spill] sm:$0xff] }
 0x1d8   :  { %v1890_v59 = vsub.f32 %v11000_v62, %v7453_v42  ;;  %4888 = vmatpush3.bf16.msra.mxu1 %v11005_v40  ;;  %v11010_v62 = vld [vmem:[#allocation77_spill] sm:$0xff]  ;;  %v11012_v40 = vpack.c.bf16 %v7366_v31, %v7361_v63  ;;  %v2233_v63 = vld [vmem:[%s10193_s9 + $0x200] sm:$0xff]  ;;  %v2085_v3 = vand.u32 2147483647, %v8026_v15  ;;  %v2089_v55 = vand.u32 2147483647, %v8047_v60 }
 0x1d9   :  { %v1937_v56 = vsub.f32 %v11009_v1, %v7305_v33  ;;  %v11011_v27 = vmax.f32 %v11010_v62, 0.0  ;;  %v8130_v9 = vmul.f32 %v2317_v45, %v11013_v53  ;;  %v8136_v33 = vmul.f32 %v2225_v51, %v11015_v21  ;;  %v2237_v31 = vld [vmem:[%s10193_s9 + $0x220] sm:$0xff]  ;;  %v11023_v62 = vld [vmem:[#allocation164_spill] sm:$0xff] }
 0x1da   :  { %v2046_v61 = vand.u32 2147483647, %v1890_v59  ;;  %4890 = vmatprep.subr.bf16.mxu1 %v11012_v40  ;;  %v8138_v1 = vmul.f32 %v2229_v14, %v2073_v8  ;;  %v11020_v8 = vld [vmem:[#allocation132_spill] sm:$0xff]  ;;  %v11021_v14 = vld [vmem:[#allocation137_spill] sm:$0xff]  ;;  %v11022_v53 = vpack.c.bf16 %v7376_v38, %v7371_v39  ;;  %v2241_v15 = vld [vmem:[%s10193_s9 + $0x240] sm:$0xff]  ;;  %v11024_v39 = vpack.c.bf16 %v7393_v20, %v7388_v10 }
 0x1db   :  { %v1941_v19 = vsub.f32 %v11011_v27, %v7401_v52  ;;  %11014 = vst [vmem:[#allocation125_spill] sm:$0xff] %v8130_v9  ;;  %11016 = vst [vmem:[#allocation48_spill] sm:$0xff] %v8136_v33  ;;  %v11018_v52 = vand.u32 2147483647, %v7905_v23  ;;  %v2117_v51 = vand.u32 2147483647, %v11020_v8  ;;  %v8170_v38 = vmul.f32 %v2233_v63, %v2077_v0 }
 0x1dc   :  { %v8132_v26 = vmul.f32 %v2202_v58, %v2046_v61  ;;  %11017 = vst [vmem:[#allocation50_spill] sm:$0xff] %v8138_v1  ;;  %v4883_v58 = vpack.c.bf16 %v1564_v5, %v1563_v37  ;;  %v2121_v61 = vand.u32 2147483647, %v11021_v14  ;;  %4892 = vmatpush3.bf16.msra.mxu1 %v11022_v53  ;;  %v2245_v60 = vld [vmem:[%s10193_s9 + $0x260] sm:$0xff]  ;;  %v2093_v17 = vand.u32 2147483647, %v1937_v56 }
 0x1dd   :  { %v8148_v45 = vmul.f32 %v2318_v57, %v11018_v52  ;;  %v2097_v37 = vand.u32 2147483647, %v1941_v19  ;;  %4894 = vmatprep.subr.bf16.mxu1 %v11024_v39  ;;  %11025 = vst [vmem:[#allocation25_spill] sm:$0xff] %v8170_v38  ;;  %v8172_v54 = vmul.f32 %v2237_v31, %v2081_v46  ;;  %v11027_v5 = vld [vmem:[#allocation142_spill] sm:$0xff]  ;;  %v11030_v8 = vld [vmem:[#allocation67_spill] sm:$0xff]  ;;  %v11032_v57 = vld [vmem:[#allocation72_spill] sm:$0xff] }
 0x1de   :  { %v2125_v27 = vand.u32 2147483647, %v11027_v5  ;;  %v11028_v40 = vld [vmem:[#allocation146_spill] sm:$0xff]  ;;  %v11031_v14 = vmax.f32 %v11030_v8, 0.0  ;;  %v11033_v56 = vmax.f32 %v11032_v57, 0.0  ;;  %v2249_v20 = vld [vmem:[%s10193_s9 + $0x280] sm:$0xff]  ;;  %4884 = vmatpush3.bf16.msra.mxu0 %v4883_v58  ;;  %v8201_v5 = vmul.f32 %v2241_v15, %v2085_v3 }
 0x1df   :  { %11019 = vst [vmem:[#allocation20_spill] sm:$0xff] %v8148_v45  ;;  %11026 = vst [vmem:[#allocation28_spill] sm:$0xff] %v8172_v54  ;;  %v2129_v21 = vand.u32 2147483647, %v11028_v40  ;;  %v11029_v52 = vld [vmem:[#allocation170_spill] sm:$0xff]  ;;  %v2253_v10 = vld [vmem:[%s10193_s9 + $0x2a0] sm:$0xff]  ;;  %v8203_v40 = vmul.f32 %v2245_v60, %v2089_v55 }
 0x1e0   :  { %v1930_v53 = vsub.f32 %v11031_v14, %v11029_v52  ;;  %v1934_v19 = vsub.f32 %v11033_v56, %v7446_v29  ;;  %v11034_v0 = vld [vmem:[#allocation15_spill] sm:$0xff]  ;;  %v2242_v57 = vld [vmem:[%s10193_s9 + $0x248] sm:$0xff]  ;;  %11036 = vst [vmem:[#allocation53_spill] sm:$0xff] %v8201_v5  ;;  %v11039_v14 = vld [vmem:[#allocation166_spill] sm:$0xff]  ;;  %v11044_v59 = vmax.f32 %v11043_v13, 0.0 }
 0x1e1   :  { %v11035_v46 = vmax.f32 %v11034_v0, 0.0  ;;  %v2246_v39 = vld [vmem:[%s10193_s9 + $0x268] sm:$0xff]  ;;  %11037 = vst [vmem:[#allocation58_spill] sm:$0xff] %v8203_v40  ;;  %v11038_v8 = vld [vmem:[#allocation167_spill] sm:$0xff]  ;;  %v11046_v60 = vld [vmem:[#allocation169_spill] sm:$0xff] }
 0x1e2   :  { %v11040_v56 = vpack.c.bf16 %v11038_v8, %v11039_v14  ;;  %v2086_v58 = vand.u32 2147483647, %v1930_v53  ;;  %v2090_v0 = vand.u32 2147483647, %v1934_v19  ;;  %v1942_v38 = vsub.f32 %v11044_v59, %v7453_v42  ;;  %v2273_v3 = vld [vmem:[%s10193_s9 + $0x340] sm:$0xff]  ;;  %v11045_v55 = vld [vmem:[#allocation148_spill] sm:$0xff] }
 0x1e3   :  { %v8191_v63 = vsub.f32 %v11035_v46, %v7227_v22  ;;  %v11041_v46 = vld [vmem:[#allocation75_spill] sm:$0xff]  ;;  %v2133_v15 = vand.u32 2147483647, %v11045_v55  ;;  %v11047_v54 = vld [vmem:[#allocation168_spill] sm:$0xff]  ;;  %v8229_v59 = vmul.f32 %v2249_v20, %v2093_v17  ;;  %v8252_v5 = vmul.f32 %v2273_v3, %v2117_v51 }
 0x1e4   :  { %4896 = vmatpush3.bf16.msra.mxu1 %v11040_v56  ;;  %v11042_v31 = vmax.f32 %v11041_v46, 0.0  ;;  %v11048_v8 = vpack.c.bf16 %v11046_v60, %v11047_v54  ;;  %v2250_v19 = vld [vmem:[%s10193_s9 + $0x288] sm:$0xff]  ;;  %v2277_v54 = vld [vmem:[%s10193_s9 + $0x360] sm:$0xff]  ;;  %v8236_v14 = vmul.f32 %v2242_v57, %v2086_v58  ;;  %v8238_v56 = vmul.f32 %v2246_v39, %v2090_v0  ;;  %v11058_v57 = vld [vmem:[#allocation173_spill] sm:$0xff] }
 0x1e5   :  { %v2254_v13 = vld [vmem:[%s10193_s9 + $0x2a8] sm:$0xff]  ;;  %11049 = vst [vmem:[#allocation61_spill] sm:$0xff] %v8229_v59  ;;  %v2098_v55 = vand.u32 2147483647, %v1942_v38  ;;  %v11055_v17 = vld [vmem:[#allocation23_spill] sm:$0xff]  ;;  %11057 = vst [vmem:[#allocation69_spill] sm:$0xff] %v8252_v5  ;;  %v8269_v51 = vmul.f32 %v2277_v54, %v2121_v61 }
 0x1e6   :  { %v1938_v23 = vsub.f32 %v11042_v31, %v7482_v16  ;;  %4898 = vmatprep.subr.bf16.mxu1 %v11048_v8  ;;  %v8231_v31 = vmul.f32 %v2253_v10, %v2097_v37  ;;  %11051 = vst [vmem:[#allocation21_spill] sm:$0xff] %v8236_v14  ;;  %11052 = vst [vmem:[#allocation27_spill] sm:$0xff] %v8238_v56  ;;  %v11053_v60 = vld [vmem:[#allocation16_spill] sm:$0xff]  ;;  %v11056_v20 = vmax.f32 %v11055_v17, 0.0  ;;  %v2285_v38 = vld [vmem:[%s10193_s9 + $0x3a0] sm:$0xff] }
 0x1e7   :  { %v11054_v8 = vmax.f32 %v11053_v60, 0.0  ;;  %v11059_v39 = vld [vmem:[#allocation172_spill] sm:$0xff]  ;;  %11063 = vst [vmem:[#allocation29_spill] sm:$0xff] %v8269_v51  ;;  %v11068_v40 = vld [vmem:[#allocation31_spill] sm:$0xff]  ;;  %v11074_v61 = vld [vmem:[#allocation174_spill] sm:$0xff] }
 0x1e8   :  { %11050 = vst [vmem:[#allocation66_spill] sm:$0xff] %v8231_v31  ;;  %v2094_v46 = vand.u32 2147483647, %v1938_v23  ;;  %v8248_v37 = vsub.f32 %v11056_v20, %v7284_v25  ;;  %v2281_v23 = vld [vmem:[%s10193_s9 + $0x380] sm:$0xff]  ;;  %v11060_v58 = vpack.c.bf16 %v11058_v57, %v11059_v39  ;;  %v11064_v3 = vld [vmem:[#allocation152_spill] sm:$0xff]  ;;  %v11069_v57 = vmax.f32 %v11068_v40, 0.0 }
 0x1e9   :  { %v8243_v53 = vsub.f32 %v11054_v8, %v7255_v47  ;;  %v8267_v8 = vmul.f32 %v2254_v13, %v2098_v55  ;;  %v2137_v17 = vand.u32 2147483647, %v11064_v3  ;;  %v11065_v20 = vld [vmem:[#allocation24_spill] sm:$0xff]  ;;  %v11067_v31 = vld [vmem:[#allocation171_spill] sm:$0xff]  ;;  %v8294_v3 = vmul.f32 %v2281_v23, %v2125_v27  ;;  %v11083_v5 = vld [vmem:[#allocation178_spill] sm:$0xff] }
 0x1ea   :  { %4900 = vmatpush3.bf16.msra.mxu1 %v11060_v58  ;;  %v8265_v60 = vmul.f32 %v2250_v19, %v2094_v46  ;;  %v11066_v10 = vmax.f32 %v11065_v20, 0.0  ;;  %v8280_v39 = vsub.f32 %v11069_v57, %v11067_v31  ;;  %v11070_v58 = vld [vmem:[#allocation184_spill] sm:$0xff]  ;;  %v8296_v40 = vmul.f32 %v2285_v38, %v2129_v21  ;;  %v2293_v20 = vld [vmem:[%s10193_s9 + $0x3e0] sm:$0xff]  ;;  %v11084_v51 = vld [vmem:[#allocation177_spill] sm:$0xff] }
 0x1eb   :  { %11062 = vst [vmem:[#allocation157_spill] sm:$0xff] %v8267_v8  ;;  %v11071_v0 = vld [vmem:[#allocation32_spill] sm:$0xff]  ;;  %11076 = vst [vmem:[#allocation161_spill] sm:$0xff] %v8294_v3  ;;  %v2015_v57 = vand.u32 2147483647, %v8191_v63  ;;  %v11087_v14 = vld [vmem:[#allocation5_spill] sm:$0xff] }
 0x1ec   :  { %11061 = vst [vmem:[#allocation159_spill] sm:$0xff] %v8265_v60  ;;  %v8275_v59 = vsub.f32 %v11066_v10, %v10920_v11  ;;  %v11072_v19 = vmax.f32 %v11071_v0, 0.0  ;;  %v11073_v13 = vld [vmem:[#allocation176_spill] sm:$0xff]  ;;  %11077 = vst [vmem:[#allocation160_spill] sm:$0xff] %v8296_v40  ;;  %v2289_v0 = vld [vmem:[%s10193_s9 + $0x3c0] sm:$0xff]  ;;  %v11085_v60 = vpack.c.bf16 %v11083_v5, %v11084_v51  ;;  %v11088_v56 = vmax.f32 %v11087_v14, 0.0 }
 0x1ed   :  { %v11075_v54 = vpack.c.bf16 %v11073_v13, %v11074_v61  ;;  %v11079_v61 = vld [vmem:[#allocation158_spill] sm:$0xff]  ;;  %v11080_v55 = vld [vmem:[#allocation144_spill] sm:$0xff]  ;;  %v11081_v10 = vld [vmem:[#allocation7_spill] sm:$0xff]  ;;  %v2019_v21 = vand.u32 2147483647, %v8243_v53  ;;  %v8331_v14 = vmul.f32 %v2289_v0, %v2133_v15 }
 0x1ee   :  { %v8285_v46 = vsub.f32 %v11072_v19, %v11070_v58  ;;  %v11078_v19 = vld [vmem:[#allocation154_spill] sm:$0xff]  ;;  %v11082_v27 = vmax.f32 %v11081_v10, 0.0  ;;  %v2023_v38 = vand.u32 2147483647, %v8248_v37  ;;  %v11086_v8 = vld [vmem:[#allocation136_spill] sm:$0xff]  ;;  %v2297_v10 = vld [vmem:[%s10193_s9 + $0x400] sm:$0xff] }
 0x1ef   :  { %4902 = vmatprep.subr.bf16.mxu1 %v11075_v54  ;;  %v2141_v13 = vand.u32 2147483647, %v11078_v19  ;;  %v2145_v54 = vand.u32 2147483647, %v11079_v61  ;;  %v1858_v63 = vsub.f32 %v11088_v56, %v11086_v8  ;;  %v2301_v53 = vld [vmem:[%s10193_s9 + $0x420] sm:$0xff]  ;;  %v11091_v51 = vld [vmem:[#allocation180_spill] sm:$0xff]  ;;  %v8333_v56 = vmul.f32 %v2293_v20, %v2137_v17 }
 0x1f0   :  { %v1862_v23 = vsub.f32 %v11082_v27, %v11080_v55  ;;  %4904 = vmatpush3.bf16.msra.mxu1 %v11085_v60  ;;  %v2027_v37 = vand.u32 2147483647, %v8275_v59  ;;  %v11089_v61 = vld [vmem:[#allocation175_spill] sm:$0xff]  ;;  %v11090_v60 = vld [vmem:[#allocation181_spill] sm:$0xff]  ;;  %11093 = vst [vmem:[#allocation163_spill] sm:$0xff] %v8331_v14  ;;  %v11095_v40 = vld [vmem:[#allocation116_spill] sm:$0xff] }
 0x1f1   :  { %v2149_v5 = vand.u32 2147483647, %v11089_v61  ;;  %v11092_v27 = vpack.c.bf16 %v11090_v60, %v11091_v51  ;;  %11094 = vst [vmem:[#allocation74_spill] sm:$0xff] %v8333_v56  ;;  %v2031_v19 = vand.u32 2147483647, %v8280_v39  ;;  %v11096_v33 = vmax.f32 %v11095_v40, 0.0 }
 0x1f2   :  { %v2035_v3 = vand.u32 2147483647, %v8285_v46  ;;  %v11097_v59 = vld [vmem:[#allocation118_spill] sm:$0xff]  ;;  %v2305_v60 = vld [vmem:[%s10193_s9 + $0x440] sm:$0xff]  ;;  %v2018_v15 = vand.u32 2147483647, %v1862_v23 }
 0x1f3   :  { %4906 = vmatprep.subr.bf16.mxu1 %v11092_v27  ;;  %v1986_v1 = vsub.f32 %v11096_v33, %v7446_v29  ;;  %v11098_v28 = vmax.f32 %v11097_v59, 0.0  ;;  %v2174_v17 = vld [vmem:[%s10193_s9 + $0x28] sm:$0xff]  ;;  %v8359_v33 = vmul.f32 %v2301_v53, %v2145_v54  ;;  %v11100_v40 = vld [vmem:[#allocation38_spill] sm:$0xff]  ;;  %v11102_v23 = vld [vmem:[#allocation183_spill] sm:$0xff]  ;;  %v2014_v59 = vand.u32 2147483647, %v1858_v63 }
 0x1f4   :  { %v2298_v29 = vld [vmem:[%s10193_s9 + $0x408] sm:$0xff]  ;;  %v11101_v0 = vmax.f32 %v11100_v40, 0.0  ;;  %v11103_v51 = vld [vmem:[#allocation182_spill] sm:$0xff]  ;;  %v11117_v54 = vld [vmem:[#allocation189_spill] sm:$0xff] }
 0x1f5   :  { %v1990_v61 = vsub.f32 %v11098_v28, %v7482_v16  ;;  %v2302_v16 = vld [vmem:[%s10193_s9 + $0x428] sm:$0xff]  ;;  %v8357_v28 = vmul.f32 %v2297_v10, %v2141_v13  ;;  %v11104_v27 = vpack.c.bf16 %v11102_v23, %v11103_v51  ;;  %v2142_v39 = vand.u32 2147483647, %v1986_v1  ;;  %v11105_v56 = vld [vmem:[#allocation186_spill] sm:$0xff]  ;;  %v2179_v51 = vld [vmem:[%s10193_s9 + $0x50] sm:$0xff] }
 0x1f6   :  { %v11099_v46 = vld [vmem:[#allocation192_spill] sm:$0xff]  ;;  %v11107_v2 = vpack.c.bf16 %v11105_v56, %v11106_v7  ;;  %v2171_v7 = vld [vmem:[%s10193_s9 + $0x10] sm:$0xff] }
 0x1f7   :  { %v1883_v20 = vsub.f32 %v11101_v0, %v11099_v46  ;;  %4908 = vmatpush3.bf16.msra.mxu1 %v11104_v27  ;;  %v2146_v14 = vand.u32 2147483647, %v1990_v61  ;;  %v2170_v13 = vld [vmem:[%s10193_s9 + $0x8] sm:$0xff]  ;;  %v8378_v0 = vmul.f32 %v2305_v60, %v2149_v5  ;;  %v8391_v23 = vmul.f32 %v2298_v29, %v2142_v39  ;;  %v2183_v27 = vld [vmem:[%s10193_s9 + $0x70] sm:$0xff] }
 0x1f8   :  { %4910 = vmatprep.subr.bf16.mxu1 %v11107_v2  ;;  %v11108_v10 = vld [vmem:[#allocation120_spill] sm:$0xff]  ;;  %v2175_v2 = vld [vmem:[%s10193_s9 + $0x30] sm:$0xff]  ;;  %v8419_v45 = vmul.f32 %v2171_v7, %v2015_v57 }
 0x1f9   :  { %v11109_v53 = vmax.f32 %v11108_v10, 0.0  ;;  %v11110_v63 = vld [vmem:[#allocation36_spill] sm:$0xff]  ;;  %v11112_v39 = vld [vmem:[#allocation45_spill] sm:$0xff]  ;;  %v2039_v57 = vand.u32 2147483647, %v1883_v20 }
 0x1fa   :  { %v11111_v56 = vmax.f32 %v11110_v63, 0.0  ;;  %v2306_v5 = vld [vmem:[%s10193_s9 + $0x448] sm:$0xff]  ;;  %v11113_v29 = vmax.f32 %v11112_v39, 0.0  ;;  %v8421_v39 = vmul.f32 %v2175_v2, %v2019_v21  ;;  %v2195_v20 = vld [vmem:[%s10193_s9 + $0xd0] sm:$0xff] }
 0x1fb   :  { %v1994_v40 = vsub.f32 %v11109_v53, %v7453_v42  ;;  %v8393_v42 = vmul.f32 %v2302_v16, %v2146_v14  ;;  %v2330_v16 = vmul.f32 %v2174_v17, %v2018_v15  ;;  %v11114_v53 = vld [vmem:[#allocation134_spill] sm:$0xff]  ;;  %v11118_v48 = vld [vmem:[#allocation188_spill] sm:$0xff]  ;;  %v11120_v15 = vld [vmem:[#allocation193_spill] sm:$0xff] }
 0x1fc   :  { %v1887_v61 = vsub.f32 %v11111_v56, %v7593_v44  ;;  %v1891_v14 = vsub.f32 %v11113_v29, %v7633_v4  ;;  %v11115_v56 = vld [vmem:[#allocation46_spill] sm:$0xff]  ;;  %v11119_v9 = vpack.c.bf16 %v11117_v54, %v11118_v48  ;;  %v2326_v29 = vmul.f32 %v2170_v13, %v2014_v59  ;;  %v2187_v48 = vld [vmem:[%s10193_s9 + $0x90] sm:$0xff] }
 0x1fd   :  { %v2150_v10 = vand.u32 2147483647, %v1994_v40  ;;  %v11116_v60 = vmax.f32 %v11115_v56, 0.0  ;;  %v11121_v17 = vld [vmem:[#allocation190_spill] sm:$0xff]  ;;  %v8428_v56 = vmul.f32 %v2179_v51, %v2023_v38 }
 0x1fe   :  { %4912 = vmatpush3.bf16.msra.mxu1 %v11119_v9  ;;  %v11122_v40 = vpack.c.bf16 %v11120_v15, %v11121_v17  ;;  %v2191_v9 = vld [vmem:[%s10193_s9 + $0xb0] sm:$0xff]  ;;  %v2043_v21 = vand.u32 2147483647, %v1887_v61  ;;  %v11123_v54 = vld [vmem:[#allocation54_spill] sm:$0xff]  ;;  %v2047_v15 = vand.u32 2147483647, %v1891_v14  ;;  %v8477_v14 = vmul.f32 %v2195_v20, %v2039_v57 }
 0x1ff   :  { %v1895_v1 = vsub.f32 %v11116_v60, %v7717_v41  ;;  %v8426_v63 = vmul.f32 %v2306_v5, %v2150_v10  ;;  %v8430_v60 = vmul.f32 %v2183_v27, %v2027_v37  ;;  %v11124_v7 = vmax.f32 %v11123_v54, 0.0  ;;  %v11125_v37 = vld [vmem:[#allocation55_spill] sm:$0xff]  ;;  %v11127_v51 = vld [vmem:[#allocation206_spill] sm:$0xff]  ;;  %v2199_v61 = vld [vmem:[%s10193_s9 + $0xf0] sm:$0xff] }
 0x200   :  { %4914 = vmatprep.subr.bf16.mxu1 %v11122_v40  ;;  %v11126_v13 = vmax.f32 %v11125_v37, 0.0  ;;  %v4941_v5 = vpack.c.bf16 %v2330_v16, %v2326_v29  ;;  %v11128_v40 = vld [vmem:[#allocation195_spill] sm:$0xff]  ;;  %v11129_v54 = vld [vmem:[#allocation194_spill] sm:$0xff]  ;;  %v8459_v16 = vmul.f32 %v2187_v48, %v2031_v19  ;;  %v8461_v29 = vmul.f32 %v2191_v9, %v2035_v3  ;;  %v2207_v19 = vld [vmem:[%s10193_s9 + $0x130] sm:$0xff] }
 0x201   :  { %v1899_v59 = vsub.f32 %v11124_v7, %v7767_v32  ;;  %v2051_v17 = vand.u32 2147483647, %v1895_v1  ;;  %v11130_v7 = vpack.c.bf16 %v11128_v40, %v11129_v54  ;;  %v11131_v37 = vld [vmem:[#allocation63_spill] sm:$0xff]  ;;  %v11133_v38 = vld [vmem:[#allocation62_spill] sm:$0xff]  ;;  %v2203_v1 = vld [vmem:[%s10193_s9 + $0x110] sm:$0xff]  ;;  %v8479_v48 = vmul.f32 %v2199_v61, %v2043_v21 }
 0x202   :  { %v1903_v2 = vsub.f32 %v11126_v13, %v7794_v36  ;;  %v11132_v13 = vmax.f32 %v11131_v37, 0.0  ;;  %v11134_v27 = vmax.f32 %v11133_v38, 0.0  ;;  %v11137_v40 = vld [vmem:[#allocation71_spill] sm:$0xff]  ;;  %v2211_v57 = vld [vmem:[%s10193_s9 + $0x150] sm:$0xff] }
 0x203   :  { %4916 = vmatpush3.bf16.msra.mxu1 %v11130_v7  ;;  %v11138_v54 = vmax.f32 %v11137_v40, 0.0  ;;  %v8491_v3 = vmul.f32 %v2207_v19, %v2051_v17  ;;  %v11141_v61 = vld [vmem:[#allocation79_spill] sm:$0xff]  ;;  %v2219_v19 = vld [vmem:[%s10193_s9 + $0x190] sm:$0xff]  ;;  %v11143_v40 = vld [vmem:[#allocation82_spill] sm:$0xff] }
 0x204   :  { %v1911_v10 = vsub.f32 %v11132_v13, %v7227_v22  ;;  %v1907_v43 = vsub.f32 %v11134_v27, %v7854_v49  ;;  %4942 = vmatprep.subr.bf16.mxu1 %v4941_v5  ;;  %v11135_v22 = vld [vmem:[#allocation70_spill] sm:$0xff]  ;;  %v2055_v5 = vand.u32 2147483647, %v1899_v59  ;;  %v2059_v27 = vand.u32 2147483647, %v1903_v2 }
 0x205   :  { %v11136_v9 = vmax.f32 %v11135_v22, 0.0  ;;  %v1919_v7 = vsub.f32 %v11138_v54, %v7284_v25  ;;  %v8489_v13 = vmul.f32 %v2203_v1, %v2047_v15  ;;  %v11139_v2 = vld [vmem:[#allocation78_spill] sm:$0xff]  ;;  %v11142_v15 = vmax.f32 %v11141_v61, 0.0 }
 0x206   :  { %v2067_v21 = vand.u32 2147483647, %v1911_v10  ;;  %v2063_v59 = vand.u32 2147483647, %v1907_v43  ;;  %v11140_v25 = vmax.f32 %v11139_v2, 0.0  ;;  %v2223_v10 = vld [vmem:[%s10193_s9 + $0x1b0] sm:$0xff]  ;;  %v8513_v43 = vmul.f32 %v2211_v57, %v2055_v5 }
 0x207   :  { %v1915_v38 = vsub.f32 %v11136_v9, %v7255_v47  ;;  %v2215_v47 = vld [vmem:[%s10193_s9 + $0x170] sm:$0xff]  ;;  %v1927_v1 = vsub.f32 %v11142_v15, %v11067_v31  ;;  %v2075_v9 = vand.u32 2147483647, %v1919_v7  ;;  %v11144_v31 = vmax.f32 %v11143_v40, 0.0  ;;  %v11145_v2 = vld [vmem:[#allocation84_spill] sm:$0xff] }
 0x208   :  { %v1923_v20 = vsub.f32 %v11140_v25, %v10920_v11  ;;  %v8515_v22 = vmul.f32 %v2215_v47, %v2059_v27  ;;  %v11146_v25 = vmax.f32 %v11145_v2, 0.0  ;;  %v8525_v17 = vmul.f32 %v2219_v19, %v2063_v59  ;;  %v2231_v5 = vld [vmem:[%s10193_s9 + $0x1f0] sm:$0xff]  ;;  %v11149_v47 = vld [vmem:[#allocation91_spill] sm:$0xff]  ;;  %v11152_v2 = vld [vmem:[#allocation104_spill] sm:$0xff] }
 0x209   :  { %v2071_v11 = vand.u32 2147483647, %v1915_v38  ;;  %v1931_v54 = vsub.f32 %v11144_v31, %v11070_v58  ;;  %v8527_v37 = vmul.f32 %v2223_v10, %v2067_v21  ;;  %v2227_v38 = vld [vmem:[%s10193_s9 + $0x1d0] sm:$0xff]  ;;  %v2083_v27 = vand.u32 2147483647, %v1927_v1 }
 0x20a   :  { %v1935_v61 = vsub.f32 %v11146_v25, %v11099_v46  ;;  %v2079_v58 = vand.u32 2147483647, %v1923_v20  ;;  %v11147_v7 = vld [vmem:[#allocation89_spill] sm:$0xff]  ;;  %v11150_v59 = vmax.f32 %v11149_v47, 0.0  ;;  %v8551_v40 = vmul.f32 %v2231_v5, %v2075_v9 }
 0x20b   :  { %v11148_v46 = vmax.f32 %v11147_v7, 0.0  ;;  %v2235_v10 = vld [vmem:[%s10193_s9 + $0x210] sm:$0xff]  ;;  %v8549_v1 = vmul.f32 %v2227_v38, %v2071_v11 }
 0x20c   :  { %v1943_v19 = vsub.f32 %v11150_v59, %v7633_v4  ;;  %v2239_v20 = vld [vmem:[%s10193_s9 + $0x230] sm:$0xff]  ;;  %v2091_v31 = vand.u32 2147483647, %v1935_v61  ;;  %v11153_v4 = vmax.f32 %v11152_v2, 0.0  ;;  %v8561_v21 = vmul.f32 %v2235_v10, %v2079_v58  ;;  %v11158_v61 = vld [vmem:[#allocation108_spill] sm:$0xff] }
 0x20d   :  { %v1939_v57 = vsub.f32 %v11148_v46, %v7593_v44  ;;  %11151 = vst [vmem:[#allocation77_spill] sm:$0xff] %v8549_v1  ;;  %v2087_v44 = vand.u32 2147483647, %v1931_v54  ;;  %v11154_v7 = vld [vmem:[#allocation101_spill] sm:$0xff]  ;;  %v8563_v15 = vmul.f32 %v2239_v20, %v2083_v27 }
 0x20e   :  { %v1947_v25 = vsub.f32 %v11153_v4, %v7717_v41  ;;  %v11155_v46 = vmax.f32 %v11154_v7, 0.0  ;;  %11156 = vst [vmem:[#allocation132_spill] sm:$0xff] %v8561_v21  ;;  %v2243_v11 = vld [vmem:[%s10193_s9 + $0x250] sm:$0xff]  ;;  %v2099_v54 = vand.u32 2147483647, %v1943_v19 }
 0x20f   :  { %11157 = vst [vmem:[#allocation137_spill] sm:$0xff] %v8563_v15  ;;  %v2247_v9 = vld [vmem:[%s10193_s9 + $0x270] sm:$0xff]  ;;  %v2095_v41 = vand.u32 2147483647, %v1939_v57  ;;  %v8585_v19 = vmul.f32 %v2243_v11, %v2087_v44  ;;  %v8786_v21 = vld [vmem:[%s10196_s2 + $0x8] sm:$0x3f] }
 0x210   :  { %v1951_v47 = vsub.f32 %v11155_v46, %v7767_v32  ;;  %v11159_v32 = vmax.f32 %v11158_v61, 0.0  ;;  %v11160_v5 = vld [vmem:[#allocation109_spill] sm:$0xff]  ;;  %v8587_v2 = vmul.f32 %v2247_v9, %v2091_v31 }
 0x211   :  { %v11161_v58 = vmax.f32 %v11160_v5, 0.0  ;;  %v2251_v20 = vld [vmem:[%s10193_s9 + $0x290] sm:$0xff]  ;;  %11162 = vst [vmem:[#allocation164_spill] sm:$0xff] %v8585_v19 }
 0x212   :  { %v1955_v38 = vsub.f32 %v11159_v32, %v7794_v36  ;;  %v2255_v57 = vld [vmem:[%s10193_s9 + $0x2b0] sm:$0xff]  ;;  %11163 = vst [vmem:[#allocation142_spill] sm:$0xff] %v8587_v2  ;;  %v2103_v36 = vand.u32 2147483647, %v1947_v25  ;;  %v2107_v4 = vand.u32 2147483647, %v1951_v47  ;;  %v8591_v7 = vmul.f32 %v2251_v20, %v2095_v41 }
 0x213   :  { %v1959_v10 = vsub.f32 %v11161_v58, %v7854_v49  ;;  %v8593_v46 = vmul.f32 %v2255_v57, %v2099_v54  ;;  %v2259_v61 = vld [vmem:[%s10193_s9 + $0x2d0] sm:$0xff] }
 0x214   :  { %11164 = vst [vmem:[#allocation146_spill] sm:$0xff] %v8591_v7  ;;  %v2263_v44 = vld [vmem:[%s10193_s9 + $0x2f0] sm:$0xff]  ;;  %v2111_v11 = vand.u32 2147483647, %v1955_v38  ;;  %v8609_v41 = vmul.f32 %v2259_v61, %v2103_v36 }
 0x215   :  { %11165 = vst [vmem:[#allocation170_spill] sm:$0xff] %v8593_v46  ;;  %v2115_v31 = vand.u32 2147483647, %v1959_v10  ;;  %v2267_v47 = vld [vmem:[%s10193_s9 + $0x310] sm:$0xff]  ;;  %v8611_v54 = vmul.f32 %v2263_v44, %v2107_v4  ;;  %v11172_v4 = vld [vmem:[#allocation155_spill] sm:$0xff]  ;;  %v11173_v44 = vld [vmem:[#allocation162_spill] sm:$0xff] }
 0x216   :  { %v2271_v9 = vld [vmem:[%s10193_s9 + $0x330] sm:$0xff]  ;;  %11166 = vst [vmem:[#allocation67_spill] sm:$0xff] %v8609_v41  ;;  %v8617_v20 = vmul.f32 %v2267_v47, %v2111_v11  ;;  %v2127_v61 = vand.u32 2147483647, %v11172_v4  ;;  %v11176_v10 = vld [vmem:[#allocation179_spill] sm:$0xff] }
 0x217   :  { %11167 = vst [vmem:[#allocation72_spill] sm:$0xff] %v8611_v54  ;;  %v11168_v32 = vld [vmem:[#allocation149_spill] sm:$0xff]  ;;  %v8619_v57 = vmul.f32 %v2271_v9, %v2115_v31  ;;  %v2135_v49 = vand.u32 2147483647, %v11176_v10  ;;  %v11177_v4 = vld [vmem:[#allocation191_spill] sm:$0xff] }
 0x218   :  { %v2119_v5 = vand.u32 2147483647, %v11168_v32  ;;  %v11169_v58 = vld [vmem:[#allocation153_spill] sm:$0xff]  ;;  %11170 = vst [vmem:[#allocation15_spill] sm:$0xff] %v8617_v20  ;;  %v2131_v32 = vand.u32 2147483647, %v11173_v44 }
 0x219   :  { %v2123_v38 = vand.u32 2147483647, %v11169_v58  ;;  %11171 = vst [vmem:[#allocation167_spill] sm:$0xff] %v8619_v57  ;;  %v2275_v25 = vld [vmem:[%s10193_s9 + $0x350] sm:$0xff]  ;;  %v2139_v27 = vand.u32 2147483647, %v11177_v4 }
 0x21a   :  { %v2279_v36 = vld [vmem:[%s10193_s9 + $0x370] sm:$0xff]  ;;  %v8637_v47 = vmul.f32 %v2275_v25, %v2119_v5  ;;  %v11181_v10 = vld [vmem:[#allocation199_spill] sm:$0xff]  ;;  %v11184_v44 = vld [vmem:[#allocation202_spill] sm:$0xff] }
 0x21b   :  { %v2283_v11 = vld [vmem:[%s10193_s9 + $0x390] sm:$0xff]  ;;  %v8639_v9 = vmul.f32 %v2279_v36, %v2123_v38  ;;  %v2147_v36 = vand.u32 2147483647, %v11181_v10 }
 0x21c   :  { %v2287_v31 = vld [vmem:[%s10193_s9 + $0x3b0] sm:$0xff]  ;;  %11174 = vst [vmem:[#allocation166_spill] sm:$0xff] %v8637_v47  ;;  %v8645_v58 = vmul.f32 %v2283_v11, %v2127_v61  ;;  %v2151_v47 = vand.u32 2147483647, %v11184_v44  ;;  %v11188_v44 = vld [vmem:[#allocation123_spill] sm:$0xff] }
 0x21d   :  { %11175 = vst [vmem:[#allocation75_spill] sm:$0xff] %v8639_v9  ;;  %v8647_v59 = vmul.f32 %v2287_v31, %v2131_v32  ;;  %v2291_v20 = vld [vmem:[%s10193_s9 + $0x3d0] sm:$0xff] }
 0x21e   :  { %11178 = vst [vmem:[#allocation80_spill] sm:$0xff] %v8645_v58  ;;  %v2295_v25 = vld [vmem:[%s10193_s9 + $0x3f0] sm:$0xff]  ;;  %v8665_v11 = vmul.f32 %v2291_v20, %v2135_v49  ;;  %v10552_v49 = vmov 0.0|0.0  }
 0x21f   :  { %11179 = vst [vmem:[#allocation148_spill] sm:$0xff] %v8647_v59  ;;  %v11180_v5 = vld [vmem:[#allocation197_spill] sm:$0xff]  ;;  %v8667_v31 = vmul.f32 %v2295_v25, %v2139_v27  ;;  %4917 = vmatprep.subr.bf16.mxu0 %v10552_v49  ;;  %v2159_v25 = vand.u32 2147483647, %v11188_v44 }
 0x220   :  { %v2143_v38 = vand.u32 2147483647, %v11180_v5  ;;  %v2299_v61 = vld [vmem:[%s10193_s9 + $0x410] sm:$0xff]  ;;  %11182 = vst [vmem:[#allocation169_spill] sm:$0xff] %v8665_v11  ;;  %v1771_v11 = vld [vmem:[%s10195_s7 + $0x58] sm:$0xff] }
 0x221   :  { %v2303_v32 = vld [vmem:[%s10193_s9 + $0x430] sm:$0xff]  ;;  %11183 = vst [vmem:[#allocation168_spill] sm:$0xff] %v8667_v31  ;;  %v11207_v31 = vld [vmem:[#allocation18_spill] sm:$0xff] }
 0x222   :  { %v11185_v5 = vld [vmem:[#allocation205_spill] sm:$0xff]  ;;  %v8673_v4 = vmul.f32 %v2299_v61, %v2143_v38  ;;  %v8675_v58 = vmul.f32 %v2303_v32, %v2147_v36  ;;  %v11208_v57 = vmax.f32 %v11207_v31, 0.0  ;;  %v2190_v31 = vld [vmem:[%s10193_s9 + $0xa8] sm:$0xff] }
 0x223   :  { %v2155_v9 = vand.u32 2147483647, %v11185_v5  ;;  %v2307_v59 = vld [vmem:[%s10193_s9 + $0x450] sm:$0xff] }
 0x224   :  { %11186 = vst [vmem:[#allocation16_spill] sm:$0xff] %v8673_v4  ;;  %11187 = vst [vmem:[#allocation23_spill] sm:$0xff] %v8675_v58  ;;  %v2311_v27 = vld [vmem:[%s10193_s9 + $0x470] sm:$0xff]  ;;  %v8688_v36 = vmul.f32 %v2307_v59, %v2151_v47  ;;  %v1760_v47 = vld [vmem:[%s10195_s7] sm:$0xff] }
 0x225   :  { %v11189_v38 = vld [vmem:[#allocation129_spill] sm:$0xff]  ;;  %v8690_v32 = vmul.f32 %v2311_v27, %v2155_v9  ;;  %v1761_v9 = vld [vmem:[%s10195_s7 + $0x8] sm:$0xff]  ;;  %v1764_v59 = vld [vmem:[%s10195_s7 + $0x20] sm:$0xff] }
 0x226   :  { %v2163_v61 = vand.u32 2147483647, %v11189_v38  ;;  %11190 = vst [vmem:[#allocation173_spill] sm:$0xff] %v8688_v36  ;;  %v2315_v5 = vld [vmem:[%s10193_s9 + $0x490] sm:$0xff]  ;;  %v4918_v38 = vpack.c.bf16 %v1761_v9, %v1760_v47  ;;  %v1765_v47 = vld [vmem:[%s10195_s7 + $0x28] sm:$0xff] }
 0x227   :  { %11191 = vst [vmem:[#allocation172_spill] sm:$0xff] %v8690_v32  ;;  %v2319_v10 = vld [vmem:[%s10193_s9 + $0x4b0] sm:$0xff]  ;;  %v8700_v20 = vmul.f32 %v2315_v5, %v2159_v25  ;;  %v11194_v5 = vmov 0.0|0.0   ;;  %v4924_v9 = vpack.c.bf16 %v1765_v47, %v1764_v59  ;;  %v1768_v59 = vld [vmem:[%s10195_s7 + $0x40] sm:$0xff] }
 0x228   :  { %v8702_v44 = vmul.f32 %v2319_v10, %v2163_v61  ;;  %v1762_v25 = vld [vmem:[%s10195_s7 + $0x10] sm:$0xff]  ;;  %v1763_v10 = vld [vmem:[%s10195_s7 + $0x18] sm:$0xff] }
 0x229   :  { %11192 = vst [vmem:[#allocation152_spill] sm:$0xff] %v8700_v20  ;;  %v4921_v61 = vpack.c.bf16 %v1763_v10, %v1762_v25  ;;  %v11195_v25 = vld [vmem:[#allocation150_spill] sm:$0xff]  ;;  %v11196_v10 = vld [vmem:[#allocation11_spill] sm:$0xff]  ;;  %v11198_v47 = vld [vmem:[#allocation145_spill] sm:$0xff] }
 0x22a   :  { %11193 = vst [vmem:[#allocation24_spill] sm:$0xff] %v8702_v44  ;;  %v11197_v49 = vmax.f32 %v11196_v10, 0.0  ;;  %v11199_v44 = vld [vmem:[#allocation9_spill] sm:$0xff] }
 0x22b   :  { %v11200_v36 = vmax.f32 %v11199_v44, 0.0  ;;  %v1770_v58 = vld [vmem:[%s10195_s7 + $0x50] sm:$0xff] }
 0x22c   :  { %v1870_v20 = vsub.f32 %v11197_v49, %v11195_v25  ;;  %v4933_v54 = vpack.c.bf16 %v1771_v11, %v1770_v58 }
 0x22d   :  { %v1866_v32 = vsub.f32 %v11200_v36, %v11198_v47  ;;  %v2182_v36 = vld [vmem:[%s10193_s9 + $0x68] sm:$0xff] }
 0x22f   :  { %v2022_v44 = vand.u32 2147483647, %v1866_v32  ;;  %v1772_v32 = vld [vmem:[%s10195_s7 + $0x60] sm:$0xff] }
 0x28f   :  { %v1402_v27 = vpop.f32.mrb[96].mxu0 }
 0x290   :  { %v1404_v4 = vpop.f32.mrb[97].mxu0 }
 0x291   :  { %1684 = vmatprep.mubr.f32.mxu0 %v1404_v4  ;;  %v1766_v4 = vld [vmem:[%s10195_s7 + $0x30] sm:$0xff] }
 0x292   :  { %1685 = vmatmul.mubr.f32.vlgmr.msra.gmra.mrb[98].mxu0 %v1402_v27  ;;  %v1767_v27 = vld [vmem:[%s10195_s7 + $0x38] sm:$0xff] }
 0x293   :  { %4919 = vmatpush3.bf16.msra.mxu0 %v4918_v38  ;;  %v4927_v38 = vpack.c.bf16 %v1767_v27, %v1766_v4  ;;  %v2026_v4 = vand.u32 2147483647, %v1870_v20  ;;  %v11201_v27 = vld [vmem:[#allocation19_spill] sm:$0xff] }
 0x294   :  { %4920 = vmatprep.subr.bf16.mxu0 %v11194_v5  ;;  %v11202_v49 = vmax.f32 %v11201_v27, 0.0  ;;  %v11203_v20 = vld [vmem:[#allocation151_spill] sm:$0xff]  ;;  %v2178_v27 = vld [vmem:[%s10193_s9 + $0x48] sm:$0xff] }
 0x295   :  { %v2338_v7 = vmul.f32 %v2182_v36, %v2026_v4 }
 0x296   :  { %v1878_v10 = vsub.f32 %v11202_v49, %v11029_v52  ;;  %v11206_v49 = vld [vmem:[#allocation200_spill] sm:$0xff] }
 0x297   :  { %4922 = vmatpush3.bf16.msra.mxu0 %v4921_v61  ;;  %v1769_v61 = vld [vmem:[%s10195_s7 + $0x48] sm:$0xff]  ;;  %v1864_v41 = vsub.f32 %v11208_v57, %v11206_v49 }
 0x298   :  { %4923 = vmatprep.subr.bf16.mxu0 %v11194_v5  ;;  %v2034_v46 = vand.u32 2147483647, %v1878_v10  ;;  %v11209_v57 = vld [vmem:[#allocation196_spill] sm:$0xff]  ;;  %v2334_v10 = vmul.f32 %v2178_v27, %v2022_v44  ;;  %v2176_v44 = vld [vmem:[%s10193_s9 + $0x38] sm:$0xff] }
 0x299   :  { %v2020_v2 = vand.u32 2147483647, %v1864_v41  ;;  %v1774_v41 = vld [vmem:[%s10195_s7 + $0x70] sm:$0xff] }
 0x29a   :  { %v4945_v1 = vpack.c.bf16 %v2338_v7, %v2334_v10  ;;  %v11217_v10 = vld [vmem:[#allocation147_spill] sm:$0xff] }
 0x29b   :  { %4925 = vmatpush3.bf16.msra.mxu0 %v4924_v9  ;;  %v4930_v9 = vpack.c.bf16 %v1769_v61, %v1768_v59  ;;  %v2332_v27 = vmul.f32 %v2176_v44, %v2020_v2  ;;  %v11218_v2 = vld [vmem:[#allocation124_spill] sm:$0xff] }
 0x29c   :  { %4926 = vmatprep.subr.bf16.mxu0 %v11194_v5 }
 0x29f   :  { %4928 = vmatpush3.bf16.msra.mxu0 %v4927_v38  ;;  %v11204_v38 = vld [vmem:[#allocation13_spill] sm:$0xff] }
 0x2a0   :  { %4929 = vmatprep.subr.bf16.mxu0 %v11194_v5  ;;  %v11205_v59 = vmax.f32 %v11204_v38, 0.0  ;;  %v1773_v38 = vld [vmem:[%s10195_s7 + $0x68] sm:$0xff] }
 0x2a1   :  { %v4936_v15 = vpack.c.bf16 %v1773_v38, %v1772_v32  ;;  %v11213_v32 = vld [vmem:[#allocation10_spill] sm:$0xff] }
 0x2a2   :  { %v1874_v61 = vsub.f32 %v11205_v59, %v11203_v20  ;;  %v2186_v59 = vld [vmem:[%s10193_s9 + $0x88] sm:$0xff]  ;;  %v11214_v38 = vpack.c.bf16 %v7962_v6, %v11213_v32  ;;  %v11223_v6 = vpack.c.bf16 %v8087_v18, %v8085_v35  ;;  %v11228_v35 = vld [vmem:[#allocation51_spill] sm:$0xff] }
 0x2a3   :  { %4931 = vmatpush3.bf16.msra.mxu0 %v4930_v9  ;;  %v11210_v9 = vld [vmem:[#allocation14_spill] sm:$0xff]  ;;  %v11229_v18 = vmax.f32 %v11228_v35, 0.0  ;;  %v2218_v32 = vld [vmem:[%s10193_s9 + $0x188] sm:$0xff] }
 0x2a4   :  { %4932 = vmatprep.subr.bf16.mxu0 %v11194_v5  ;;  %v11211_v58 = vmax.f32 %v11210_v9, 0.0  ;;  %v2030_v36 = vand.u32 2147483647, %v1874_v61  ;;  %v2346_v9 = vmul.f32 %v2190_v31, %v2034_v46  ;;  %v11212_v61 = vpack.c.bf16 %v7955_v30, %v7953_v12  ;;  %v2234_v35 = vld [vmem:[%s10193_s9 + $0x208] sm:$0xff] }
 0x2a6   :  { %v1544_v19 = vpop.f32.mrb[112].mxu1  ;;  %v1860_v11 = vsub.f32 %v11211_v58, %v11209_v57  ;;  %v2342_v46 = vmul.f32 %v2186_v59, %v2030_v36  ;;  %v11215_v58 = vld [vmem:[#allocation49_spill] sm:$0xff]  ;;  %v11220_v36 = vld [vmem:[#allocation92_spill] sm:$0xff]  ;;  %v11221_v59 = vld [vmem:[#allocation39_spill] sm:$0xff] }
 0x2a7   :  { %v1546_v4 = vpop.f32.mrb[113].mxu1  ;;  %4934 = vmatpush3.bf16.msra.mxu0 %v4933_v54  ;;  %v2172_v54 = vld [vmem:[%s10193_s9 + $0x18] sm:$0xff] }
 0x2a8   :  { %1754 = vmatprep.mubr.f32.mxu1 %v1546_v4  ;;  %4935 = vmatprep.subr.bf16.mxu0 %v11194_v5  ;;  %v2016_v7 = vand.u32 2147483647, %v1860_v11  ;;  %v4949_v30 = vpack.c.bf16 %v2346_v9, %v2342_v46  ;;  %v11216_v11 = vmax.f32 %v11215_v58, 0.0  ;;  %v11222_v9 = vmax.f32 %v11221_v59, 0.0  ;;  %v11232_v58 = vld [vmem:[#allocation12_spill] sm:$0xff]  ;;  %v11237_v59 = vld [vmem:[#allocation59_spill] sm:$0xff] }
 0x2a9   :  { %1755 = vmatmul.mubr.f32.vlgmr.msra.gmra.mrb[114].mxu1 %v1544_v19  ;;  %v1775_v19 = vld [vmem:[%s10195_s7 + $0x78] sm:$0xff]  ;;  %v11226_v46 = vpack.c.bf16 %v8071_v50, %v8069_v24  ;;  %v11230_v24 = vld [vmem:[#allocation64_spill] sm:$0xff] }
 0x2aa   :  { %4944 = vmatpush1.bf16.msra.mxu1 %v11212_v61  ;;  %2552 = vmatprep.mubr.f32.mxu1 %v8786_v21  ;;  %v4939_v12 = vpack.c.bf16 %v1775_v19, %v1774_v41  ;;  %v2328_v31 = vmul.f32 %v2172_v54, %v2016_v7  ;;  %v1910_v4 = vsub.f32 %v11216_v11, %v11086_v8  ;;  %v11224_v41 = vld [vmem:[#allocation56_spill] sm:$0xff] }
 0x2ab   :  { %4946 = vmatprep.subr.bf16.mxu1 %v4945_v1  ;;  %4937 = vmatpush3.bf16.msra.mxu0 %v4936_v15  ;;  %v11219_v15 = vpack.c.bf16 %v11217_v10, %v11218_v2  ;;  %v1906_v44 = vsub.f32 %v11222_v9, %v11220_v36  ;;  %v11225_v19 = vmax.f32 %v11224_v41, 0.0  ;;  %v2222_v54 = vld [vmem:[%s10193_s9 + $0x1a8] sm:$0xff]  ;;  %v11233_v11 = vpack.c.bf16 %v11006_v34, %v11232_v58  ;;  %v11235_v10 = vld [vmem:[#allocation43_spill] sm:$0xff] }
 0x2ac   :  { %4938 = vmatprep.subr.bf16.mxu0 %v11194_v5  ;;  %v5017_v1 = vpack.c.bf16 %v2332_v27, %v2328_v31  ;;  %v2066_v61 = vand.u32 2147483647, %v1910_v4  ;;  %v11231_v31 = vmax.f32 %v11230_v24, 0.0  ;;  %v11234_v4 = vld [vmem:[#allocation44_spill] sm:$0xff]  ;;  %v11238_v9 = vmax.f32 %v11237_v59, 0.0  ;;  %v11254_v59 = vld [vmem:[#allocation103_spill] sm:$0xff] }
 0x2ad   :  { %v1918_v7 = vsub.f32 %v11225_v19, %v11198_v47  ;;  %v2062_v27 = vand.u32 2147483647, %v1906_v44  ;;  %v11236_v2 = vpack.c.bf16 %v11234_v4, %v11235_v10  ;;  %v11239_v19 = vld [vmem:[#allocation41_spill] sm:$0xff]  ;;  %v11246_v58 = vld [vmem:[#allocation48_spill] sm:$0xff]  ;;  %v11251_v10 = vld [vmem:[#allocation27_spill] sm:$0xff] }
 0x2ae   :  { %4948 = vmatpush1.bf16.msra.mxu1 %v11214_v38  ;;  %v2378_v38 = vmul.f32 %v2222_v54, %v2066_v61  ;;  %v1922_v44 = vsub.f32 %v11238_v9, %v11195_v25  ;;  %v2238_v54 = vld [vmem:[%s10193_s9 + $0x228] sm:$0xff]  ;;  %v11255_v9 = vmax.f32 %v11254_v59, 0.0  ;;  %v11276_v59 = vld [vmem:[#allocation94_spill] sm:$0xff] }
 0x2af   :  { %4950 = vmatprep.subr.bf16.mxu1 %v4949_v30  ;;  %4940 = vmatpush3.bf16.msra.mxu0 %v4939_v12  ;;  %v11227_v12 = vpack.c.bf16 %v11023_v62, %v8132_v26  ;;  %v1914_v30 = vsub.f32 %v11229_v18, %v11080_v55  ;;  %v2074_v50 = vand.u32 2147483647, %v1918_v7  ;;  %v2230_v26 = vld [vmem:[%s10193_s9 + $0x1e8] sm:$0xff]  ;;  %v2374_v62 = vmul.f32 %v2218_v32, %v2062_v27  ;;  %v11242_v32 = vld [vmem:[#allocation17_spill] sm:$0xff] }
 0x2b0   :  { %5018 = vmatprep.subr.bf16.mxu0 %v5017_v1  ;;  %v1926_v1 = vsub.f32 %v11231_v31, %v11203_v20  ;;  %v11240_v7 = vld [vmem:[#allocation40_spill] sm:$0xff] }
 0x2b1   :  { %v4965_v34 = vpack.c.bf16 %v2378_v38, %v2374_v62  ;;  %v2386_v61 = vmul.f32 %v2230_v26, %v2074_v50  ;;  %v11243_v38 = vld [vmem:[#allocation165_spill] sm:$0xff]  ;;  %v11248_v26 = vld [vmem:[#allocation28_spill] sm:$0xff] }
 0x2b2   :  { %4952 = vmatpush1.bf16.msra.mxu1 %v11219_v15  ;;  %v2070_v15 = vand.u32 2147483647, %v1914_v30  ;;  %v2082_v41 = vand.u32 2147483647, %v1926_v1  ;;  %v11244_v50 = vpack.c.bf16 %v11242_v32, %v11243_v38  ;;  %v11245_v1 = vld [vmem:[#allocation50_spill] sm:$0xff]  ;;  %v11249_v62 = vld [vmem:[#allocation25_spill] sm:$0xff] }
 0x2b3   :  { %4954 = vmatprep.subr.bf16.mxu1 %v11223_v6  ;;  %v2226_v6 = vld [vmem:[%s10193_s9 + $0x1c8] sm:$0xff]  ;;  %v11250_v4 = vpack.c.bf16 %v11248_v26, %v11249_v62  ;;  %v11266_v32 = vld [vmem:[#allocation66_spill] sm:$0xff]  ;;  %v11267_v38 = vld [vmem:[#allocation61_spill] sm:$0xff] }
 0x2b4   :  { %v2382_v27 = vmul.f32 %v2226_v6, %v2070_v15  ;;  %v2394_v30 = vmul.f32 %v2238_v54, %v2082_v41  ;;  %v11256_v6 = vld [vmem:[#allocation58_spill] sm:$0xff]  ;;  %v11259_v41 = vld [vmem:[#allocation157_spill] sm:$0xff] }
 0x2b6   :  { %4956 = vmatpush1.bf16.msra.mxu1 %v11226_v46  ;;  %v11241_v46 = vpack.c.bf16 %v11239_v19, %v11240_v7  ;;  %v4969_v18 = vpack.c.bf16 %v2386_v61, %v2382_v27  ;;  %v11260_v19 = vld [vmem:[#allocation159_spill] sm:$0xff] }
 0x2b7   :  { %4958 = vmatprep.subr.bf16.mxu1 %v11227_v12  ;;  %v2078_v12 = vand.u32 2147483647, %v1922_v44  ;;  %v1966_v44 = vsub.f32 %v11255_v9, %v11080_v55  ;;  %v11261_v7 = vpack.c.bf16 %v11259_v41, %v11260_v19  ;;  %v11268_v55 = vpack.c.bf16 %v11266_v32, %v11267_v38  ;;  %v11277_v9 = vld [vmem:[#allocation87_spill] sm:$0xff]  ;;  %v2294_v38 = vld [vmem:[%s10193_s9 + $0x3e8] sm:$0xff] }
 0x2b9   :  { %v2390_v24 = vmul.f32 %v2234_v35, %v2078_v12  ;;  %v2122_v12 = vand.u32 2147483647, %v1966_v44  ;;  %v11264_v35 = vld [vmem:[#allocation110_spill] sm:$0xff]  ;;  %v11278_v44 = vpack.c.bf16 %v11276_v59, %v11277_v9  ;;  %v8947_v59 = vld [vmem:[%s10196_s2] sm:$0x3f]  ;;  %v11296_v9 = vpack.c.bf16 %v8393_v42, %v8391_v23 }
 0x2ba   :  { %4960 = vmatpush1.bf16.msra.mxu1 %v11233_v11  ;;  %v11247_v11 = vpack.c.bf16 %v11245_v1, %v11246_v58 }
 0x2bb   :  { %4962 = vmatprep.subr.bf16.mxu1 %v11236_v2  ;;  %v4973_v31 = vpack.c.bf16 %v2394_v30, %v2390_v24  ;;  %v11252_v2 = vld [vmem:[#allocation21_spill] sm:$0xff] }
 0x2bc   :  { %v11253_v15 = vpack.c.bf16 %v11251_v10, %v11252_v2  ;;  %v11269_v24 = vld [vmem:[#allocation93_spill] sm:$0xff]  ;;  %v11274_v10 = vld [vmem:[#allocation114_spill] sm:$0xff] }
 0x2bd   :  { %v11275_v2 = vmax.f32 %v11274_v10, 0.0  ;;  %v11293_v10 = vld [vmem:[#allocation74_spill] sm:$0xff] }
 0x2be   :  { %4964 = vmatpush1.bf16.msra.mxu1 %v11241_v46  ;;  %v11262_v46 = vld [vmem:[#allocation96_spill] sm:$0xff] }
 0x2bf   :  { %4966 = vmatprep.subr.bf16.mxu1 %v4965_v34  ;;  %v11257_v34 = vld [vmem:[#allocation53_spill] sm:$0xff]  ;;  %v11263_v54 = vmax.f32 %v11262_v46, 0.0 }
 0x2c0   :  { %v11258_v61 = vpack.c.bf16 %v11256_v6, %v11257_v34  ;;  %v2286_v6 = vld [vmem:[%s10193_s9 + $0x3a8] sm:$0xff]  ;;  %v11279_v34 = vld [vmem:[#allocation102_spill] sm:$0xff] }
 0x2c1   :  { %v1962_v27 = vsub.f32 %v11263_v54, %v11086_v8  ;;  %v11272_v8 = vld [vmem:[#allocation106_spill] sm:$0xff] }
 0x2c2   :  { %4968 = vmatpush1.bf16.msra.mxu1 %v11244_v50  ;;  %v2278_v50 = vld [vmem:[%s10193_s9 + $0x368] sm:$0xff] }
 0x2c3   :  { %4970 = vmatprep.subr.bf16.mxu1 %v4969_v18  ;;  %v11265_v18 = vmax.f32 %v11264_v35, 0.0  ;;  %v2118_v58 = vand.u32 2147483647, %v1962_v27  ;;  %v2434_v62 = vmul.f32 %v2278_v50, %v2122_v12 }
 0x2c5   :  { %v1974_v30 = vsub.f32 %v11265_v18, %v11195_v25  ;;  %v2274_v25 = vld [vmem:[%s10193_s9 + $0x348] sm:$0xff] }
 0x2c6   :  { %4972 = vmatpush1.bf16.msra.mxu1 %v11247_v11  ;;  %v11273_v11 = vmax.f32 %v11272_v8, 0.0  ;;  %v2430_v41 = vmul.f32 %v2274_v25, %v2118_v58  ;;  %v11284_v18 = vld [vmem:[#allocation100_spill] sm:$0xff]  ;;  %v11288_v58 = vld [vmem:[#allocation69_spill] sm:$0xff] }
 0x2c7   :  { %4974 = vmatprep.subr.bf16.mxu1 %v4973_v31  ;;  %v11270_v31 = vld [vmem:[#allocation88_spill] sm:$0xff] }
 0x2c8   :  { %v11271_v1 = vpack.c.bf16 %v11269_v24, %v11270_v31  ;;  %v1970_v26 = vsub.f32 %v11273_v11, %v11198_v47  ;;  %v11280_v47 = vld [vmem:[#allocation98_spill] sm:$0xff]  ;;  %v4993_v27 = vpack.c.bf16 %v2434_v62, %v2430_v41  ;;  %v11290_v25 = vld [vmem:[#allocation160_spill] sm:$0xff]  ;;  %v11291_v62 = vld [vmem:[#allocation161_spill] sm:$0xff]  ;;  %v11301_v41 = vpack.c.bf16 %v11127_v51, %v8426_v63 }
 0x2c9   :  { %v2321_v63 = vld [vmem:[%s10193_s9 + $0x4c0] sm:$0xff] }
 0x2ca   :  { %4976 = vmatpush1.bf16.msra.mxu1 %v11250_v4  ;;  %v2130_v4 = vand.u32 2147483647, %v1974_v30  ;;  %v2126_v19 = vand.u32 2147483647, %v1970_v26  ;;  %v11285_v30 = vld [vmem:[#allocation97_spill] sm:$0xff] }
 0x2cb   :  { %4978 = vmatprep.subr.bf16.mxu1 %v11253_v15  ;;  %v1982_v15 = vsub.f32 %v11275_v2, %v11029_v52  ;;  %v2282_v52 = vld [vmem:[%s10193_s9 + $0x388] sm:$0xff]  ;;  %v11286_v32 = vpack.c.bf16 %v11284_v18, %v11285_v30  ;;  %v11294_v2 = vld [vmem:[#allocation163_spill] sm:$0xff] }
 0x2cc   :  { %v2442_v12 = vmul.f32 %v2286_v6, %v2130_v4  ;;  %v11292_v4 = vpack.c.bf16 %v11290_v25, %v11291_v62  ;;  %v11318_v62 = vld [vmem:[#allocation156_spill] sm:$0xff] }
 0x2cd   :  { %v2138_v35 = vand.u32 2147483647, %v1982_v15  ;;  %v11295_v15 = vpack.c.bf16 %v11293_v10, %v11294_v2 }
 0x2ce   :  { %4980 = vmatpush1.bf16.msra.mxu1 %v11258_v61  ;;  %v11281_v61 = vpack.c.bf16 %v11279_v34, %v11280_v47  ;;  %v11299_v47 = vpack.c.bf16 %v8359_v33, %v8357_v28  ;;  %v2322_v28 = vld [vmem:[%s10193_s9 + $0x4c8] sm:$0xff] }
 0x2cf   :  { %4982 = vmatprep.subr.bf16.mxu1 %v11261_v7  ;;  %v11282_v7 = vld [vmem:[#allocation112_spill] sm:$0xff]  ;;  %v2450_v31 = vmul.f32 %v2294_v38, %v2138_v35  ;;  %v11310_v35 = vld [vmem:[#allocation133_spill] sm:$0xff] }
 0x2d0   :  { %v11283_v46 = vmax.f32 %v11282_v7, 0.0  ;;  %v11303_v7 = vld [vmem:[#allocation139_spill] sm:$0xff]  ;;  %v11306_v33 = vld [vmem:[#allocation20_spill] sm:$0xff] }
 0x2d1   :  { %v11304_v23 = vmax.f32 %v11303_v7, 0.0 }
 0x2d2   :  { %4984 = vmatpush1.bf16.msra.mxu1 %v11268_v55  ;;  %v1978_v54 = vsub.f32 %v11283_v46, %v11203_v20  ;;  %v2438_v55 = vmul.f32 %v2282_v52, %v2126_v19  ;;  %v2290_v20 = vld [vmem:[%s10193_s9 + $0x3c8] sm:$0xff]  ;;  %v11302_v19 = vld [vmem:[#allocation85_spill] sm:$0xff] }
 0x2d3   :  { %4986 = vmatprep.subr.bf16.mxu1 %v11271_v1  ;;  %v11287_v1 = vld [vmem:[#allocation29_spill] sm:$0xff]  ;;  %v2009_v42 = vsub.f32 %v11304_v23, %v11302_v19  ;;  %v2180_v23 = vld [vmem:[%s10193_s9 + $0x58] sm:$0xff] }
 0x2d4   :  { %v2134_v50 = vand.u32 2147483647, %v1978_v54  ;;  %v4997_v24 = vpack.c.bf16 %v2442_v12, %v2438_v55  ;;  %v11289_v8 = vpack.c.bf16 %v11287_v1, %v11288_v58  ;;  %v11307_v54 = vld [vmem:[#allocation8_spill] sm:$0xff]  ;;  %v11309_v12 = vld [vmem:[#allocation125_spill] sm:$0xff]  ;;  %v11312_v55 = vld [vmem:[#allocation203_spill] sm:$0xff] }
 0x2d5   :  { %v11308_v52 = vpack.c.bf16 %v11306_v33, %v11307_v54  ;;  %v11311_v18 = vpack.c.bf16 %v11309_v12, %v11310_v35  ;;  %v11316_v1 = vld [vmem:[#allocation22_spill] sm:$0xff]  ;;  %v11325_v33 = vld [vmem:[#allocation37_spill] sm:$0xff]  ;;  %v11327_v35 = vld [vmem:[#allocation204_spill] sm:$0xff] }
 0x2d6   :  { %4988 = vmatpush1.bf16.msra.mxu1 %v11278_v44  ;;  %v2446_v11 = vmul.f32 %v2290_v20, %v2134_v50  ;;  %v11297_v44 = vld [vmem:[#allocation131_spill] sm:$0xff]  ;;  %v11313_v50 = vld [vmem:[#allocation26_spill] sm:$0xff]  ;;  %v11317_v58 = vmax.f32 %v11316_v1, 0.0  ;;  %v11326_v54 = vmax.f32 %v11325_v33, 0.0  ;;  %v11341_v33 = vld [vmem:[#allocation4_spill] sm:$0xff] }
 0x2d7   :  { %4990 = vmatprep.subr.bf16.mxu1 %v11281_v61  ;;  %v11298_v6 = vmax.f32 %v11297_v44, 0.0  ;;  %v11300_v61 = vmov 0.0   ;;  %v11314_v20 = vmax.f32 %v11313_v50, 0.0  ;;  %v11331_v1 = vld [vmem:[#allocation47_spill] sm:$0xff] }
 0x2d8   :  { %v5001_v26 = vpack.c.bf16 %v2450_v31, %v2446_v11  ;;  %4572 = vmatprep.mubr.msk.f32.mxu0 %vm5645_vm2, %v11300_v61  ;;  %v11315_v31 = vld [vmem:[#allocation198_spill] sm:$0xff]  ;;  %v4332_v11 = vld [vmem:[%s10197_s6] ss:$0 sm:$0xff] }
 0x2d9   :  { %v2010_v34 = vsub.f32 %v11298_v6, %v11220_v36  ;;  %v11305_v36 = vpack.c.bf16 %v11114_v53, %v8378_v0  ;;  %v8986_v53 = vld [vmem:[%s10196_s2 + $0x10] sm:$0x3f] }
 0x2da   :  { %4992 = vmatpush1.bf16.msra.mxu1 %v11286_v32 }
 0x2db   :  { %4994 = vmatprep.subr.bf16.mxu1 %v4993_v27  ;;  %v2166_v46 = vand.u32 2147483647, %v2010_v34  ;;  %v2165_v27 = vand.u32 2147483647, %v2009_v42 }
 0x2dd   :  { %v2478_v51 = vmul.f32 %v2322_v28, %v2166_v46  ;;  %v2477_v0 = vmul.f32 %v2321_v63, %v2165_v27  ;;  %v11324_v28 = vld [vmem:[#allocation207_spill] sm:$0xff]  ;;  %v2192_v27 = vld [vmem:[%s10193_s9 + $0xb8] sm:$0xff] }
 0x2de   :  { %4996 = vmatpush1.bf16.msra.mxu1 %v11289_v8  ;;  %v1868_v8 = vsub.f32 %v11317_v58, %v11315_v31  ;;  %v11332_v58 = vmax.f32 %v11331_v1, 0.0  ;;  %v11348_v1 = vld [vmem:[#allocation65_spill] sm:$0xff] }
 0x2df   :  { %4998 = vmatprep.subr.bf16.mxu1 %v4997_v24  ;;  %v1872_v24 = vsub.f32 %v11314_v20, %v11312_v55 }
 0x2e0   :  { %v2024_v34 = vand.u32 2147483647, %v1868_v8 }
 0x2e1   :  { %v2028_v25 = vand.u32 2147483647, %v1872_v24  ;;  %v11330_v24 = vld [vmem:[#allocation6_spill] sm:$0xff] }
 0x2e2   :  { %5000 = vmatpush1.bf16.msra.mxu1 %v11292_v4  ;;  %v11319_v4 = vld [vmem:[#allocation33_spill] sm:$0xff]  ;;  %v1896_v8 = vsub.f32 %v11332_v58, %v11330_v24  ;;  %v11349_v58 = vmax.f32 %v11348_v1, 0.0 }
 0x2e3   :  { %5002 = vmatprep.subr.bf16.mxu1 %v5001_v26  ;;  %v11320_v10 = vmax.f32 %v11319_v4, 0.0 }
 0x2e5   :  { %v1880_v2 = vsub.f32 %v11320_v10, %v11318_v62  ;;  %v11334_v10 = vld [vmem:[#allocation35_spill] sm:$0xff] }
 0x2e6   :  { %5004 = vmatpush1.bf16.msra.mxu1 %v11295_v15 }
 0x2e7   :  { %5006 = vmatprep.subr.bf16.mxu1 %v11296_v9  ;;  %v2184_v9 = vld [vmem:[%s10193_s9 + $0x78] sm:$0xff] }
 0x2e8   :  { %v2340_v46 = vmul.f32 %v2184_v9, %v2028_v25 }
 0x2e9   :  { %2553 = vmatmul.mubr.f32.vlgmr.msra.gmra.mrb[116].mxu1 %v8947_v59 }
 0x2ea   :  { %5008 = vmatpush1.bf16.msra.mxu1 %v11299_v47  ;;  %2623 = vmatprep.mubr.f32.mxu1 %v11300_v61  ;;  %v11321_v47 = vld [vmem:[#allocation201_spill] sm:$0xff] }
 0x2eb   :  { %5010 = vmatprep.subr.bf16.mxu1 %v11301_v41  ;;  %v11322_v41 = vld [vmem:[#allocation30_spill] sm:$0xff] }
 0x2ec   :  { %v11323_v19 = vmax.f32 %v11322_v41, 0.0  ;;  %v11338_v41 = vld [vmem:[#allocation57_spill] sm:$0xff] }
 0x2ee   :  { %5012 = vmatpush1.bf16.msra.mxu1 %v11305_v36  ;;  %v1876_v7 = vsub.f32 %v11323_v19, %v11321_v47  ;;  %v2036_v36 = vand.u32 2147483647, %v1880_v2  ;;  %v11335_v2 = vld [vmem:[#allocation42_spill] sm:$0xff]  ;;  %v11339_v19 = vmax.f32 %v11338_v41, 0.0 }
 0x2ef   :  { %5014 = vmatprep.subr.bf16.mxu1 %v11308_v52  ;;  %v1888_v52 = vsub.f32 %v11326_v54, %v11324_v28  ;;  %v11342_v54 = vld [vmem:[#allocation52_spill] sm:$0xff] }
 0x2f0   :  { %v2032_v12 = vand.u32 2147483647, %v1876_v7  ;;  %v2348_v50 = vmul.f32 %v2192_v27, %v2036_v36 }
 0x2f1   :  { %v2044_v20 = vand.u32 2147483647, %v1888_v52  ;;  %v11343_v52 = vmax.f32 %v11342_v54, 0.0  ;;  %v2232_v54 = vld [vmem:[%s10193_s9 + $0x1f8] sm:$0xff] }
 0x2f2   :  { %5016 = vmatpush1.bf16.msra.mxu1 %v11311_v18  ;;  %v11328_v18 = vld [vmem:[#allocation34_spill] sm:$0xff] }
 0x2f3   :  { %2571 = vmatprep.subr.mxu1 %v2478_v51  ;;  %v2336_v51 = vmul.f32 %v2180_v23, %v2024_v34  ;;  %v11337_v34 = vld [vmem:[#allocation143_spill] sm:$0xff]  ;;  %v2208_v23 = vld [vmem:[%s10193_s9 + $0x138] sm:$0xff]  ;;  %v1900_v27 = vsub.f32 %v11343_v52, %v11341_v33 }
 0x2f4   :  { %v1904_v7 = vsub.f32 %v11339_v19, %v11337_v34  ;;  %v2224_v19 = vld [vmem:[%s10193_s9 + $0x1b8] sm:$0xff] }
 0x2f6   :  { %2572 = vmatpush1.msra.mxu1 %v2477_v0  ;;  %v11329_v0 = vmax.f32 %v11328_v18, 0.0  ;;  %v2060_v18 = vand.u32 2147483647, %v1904_v7 }
 0x2f7   :  { %4334 = vmatmul.mubr.msk.f32.vlgmr.msra.gmra.mrb[116].mxu1 %vm2484_vm3, %v8986_v53 }
 0x365   :  { %v4381_v30 = vpop.f32.mrb[98].mxu0 }
 0x366   :  { %v4382_v32 = vpop.f32.mrb[99].mxu0 }
 0x367   :  { %v4383_v38 = vadd.f32 %v4382_v32, %v4381_v30  ;;  %v1884_v30 = vsub.f32 %v11329_v0, %v11327_v35  ;;  %v2188_v32 = vld [vmem:[%s10193_s9 + $0x98] sm:$0xff] }
 0x368   :  { %v2344_v25 = vmul.f32 %v2188_v32, %v2032_v12  ;;  %v11347_v32 = vpack.c.bf16 %v8461_v29, %v8459_v16  ;;  %v11350_v16 = vld [vmem:[#allocation73_spill] sm:$0xff] }
 0x369   :  { %v1687_v44 = vadd.f32 %v4383_v38, %v4332_v11  ;;  %v5021_v38 = vpack.c.bf16 %v2340_v46, %v2336_v51  ;;  %v11333_v11 = vpack.c.bf16 %v8421_v39, %v8419_v45  ;;  %v2040_v4 = vand.u32 2147483647, %v1884_v30 }
 0x36a   :  { %v2052_v39 = vand.u32 2147483647, %v1896_v8  ;;  %v1912_v8 = vsub.f32 %v11349_v58, %v11209_v57  ;;  %v11351_v29 = vmax.f32 %v11350_v16, 0.0  ;;  %v11363_v58 = vld [vmem:[#allocation83_spill] sm:$0xff] }
 0x36c   :  { %v2364_v12 = vmul.f32 %v2208_v23, %v2052_v39 }
 0x37c   :  { %v4416_v26 = vpop.f32.mrb[114].mxu1 }
 0x37d   :  { %v4417_v15 = vpop.f32.mrb[115].mxu1 }
 0x37e   :  { %v4418_v6 = vadd.f32 %v4417_v15, %v4416_v26  ;;  %v2200_v26 = vld [vmem:[%s10193_s9 + $0xf8] sm:$0xff]  ;;  %v11336_v15 = vmax.f32 %v11335_v2, 0.0  ;;  %v1920_v2 = vsub.f32 %v11351_v29, %v11315_v31 }
 0x37f   :  { %v2356_v45 = vmul.f32 %v2200_v26, %v2044_v20  ;;  %v2056_v20 = vand.u32 2147483647, %v1900_v27 }
 0x380   :  { %v9011_v42 = vadd.f32 %v4418_v6, %v1687_v44  ;;  %v1892_v9 = vsub.f32 %v11336_v15, %v11334_v10  ;;  %v2196_v44 = vld [vmem:[%s10193_s9 + $0xd8] sm:$0xff]  ;;  %v5025_v6 = vpack.c.bf16 %v2348_v50, %v2344_v25  ;;  %v11352_v15 = vpack.c.bf16 %v8479_v48, %v8477_v14  ;;  %v11355_v14 = vld [vmem:[#allocation81_spill] sm:$0xff] }
 0x381   :  { %v2352_v46 = vmul.f32 %v2196_v44, %v2040_v4  ;;  %v2076_v23 = vand.u32 2147483647, %v1920_v2  ;;  %v11356_v48 = vmax.f32 %v11355_v14, 0.0  ;;  %v11367_v2 = vpack.c.bf16 %v8527_v37, %v8525_v17  ;;  %v11370_v37 = vld [vmem:[#allocation105_spill] sm:$0xff] }
 0x382   :  { %v1784_v63 = vrot.slane %v9011_v42, 6  ;;  %v2048_v36 = vand.u32 2147483647, %v1892_v9  ;;  %v2220_v9 = vld [vmem:[%s10193_s9 + $0x198] sm:$0xff]  ;;  %v11371_v17 = vmax.f32 %v11370_v37, 0.0  ;;  %v11372_v14 = vld [vmem:[#allocation77_spill] sm:$0xff] }
 0x383   :  { %v5029_v51 = vpack.c.bf16 %v2356_v45, %v2352_v46  ;;  %v11353_v45 = vld [vmem:[#allocation68_spill] sm:$0xff]  ;;  %v1928_v46 = vsub.f32 %v11356_v48, %v11321_v47  ;;  %v11373_v48 = vpack.c.bf16 %v8551_v40, %v11372_v14  ;;  %v11376_v40 = vld [vmem:[#allocation111_spill] sm:$0xff]  ;;  %v11392_v14 = vld [vmem:[#allocation170_spill] sm:$0xff] }
 0x384   :  { %4573 = vmatmul.mubr.f32.vlgmr.msra.gmra.mrb[100].mxu0 %v1784_v63  ;;  %v2204_v63 = vld [vmem:[%s10193_s9 + $0x118] sm:$0xff]  ;;  %v11354_v39 = vmax.f32 %v11353_v45, 0.0  ;;  %v11390_v37 = vld [vmem:[#allocation119_spill] sm:$0xff] }
 0x385   :  { %5020 = vmatpush1.bf16.msra.mxu0 %v11333_v11  ;;  %2694 = vmatprep.mubr.f32.mxu0 %v8786_v21  ;;  %v11340_v21 = vpack.c.bf16 %v8430_v60, %v8428_v56  ;;  %v11344_v56 = vld [vmem:[#allocation140_spill] sm:$0xff]  ;;  %v2360_v50 = vmul.f32 %v2204_v63, %v2048_v36  ;;  %v2212_v11 = vld [vmem:[%s10193_s9 + $0x158] sm:$0xff]  ;;  %v11357_v36 = vpack.c.bf16 %v8491_v3, %v8489_v13 }
 0x386   :  { %5022 = vmatprep.subr.bf16.mxu0 %v5021_v38  ;;  %v11345_v60 = vld [vmem:[#allocation60_spill] sm:$0xff]  ;;  %v2216_v38 = vld [vmem:[%s10193_s9 + $0x178] sm:$0xff]  ;;  %v2368_v44 = vmul.f32 %v2212_v11, %v2056_v20  ;;  %v1916_v41 = vsub.f32 %v11354_v39, %v11206_v49 }
 0x387   :  { %v11346_v0 = vmax.f32 %v11345_v60, 0.0  ;;  %v5033_v26 = vpack.c.bf16 %v2364_v12, %v2360_v50  ;;  %v2372_v25 = vmul.f32 %v2216_v38, %v2060_v18  ;;  %v11358_v63 = vld [vmem:[#allocation76_spill] sm:$0xff]  ;;  %v2228_v18 = vld [vmem:[%s10193_s9 + $0x1d8] sm:$0xff]  ;;  %v11362_v38 = vpack.c.bf16 %v8515_v22, %v8513_v43  ;;  %v11365_v43 = vld [vmem:[#allocation95_spill] sm:$0xff] }
 0x388   :  { %v2072_v27 = vand.u32 2147483647, %v1916_v41  ;;  %v11360_v3 = vld [vmem:[#allocation86_spill] sm:$0xff]  ;;  %v11366_v22 = vmax.f32 %v11365_v43, 0.0 }
 0x389   :  { %5024 = vmatpush1.bf16.msra.mxu0 %v11340_v21  ;;  %v1908_v30 = vsub.f32 %v11346_v0, %v11344_v56  ;;  %v5037_v7 = vpack.c.bf16 %v2372_v25, %v2368_v44  ;;  %v2388_v0 = vmul.f32 %v2232_v54, %v2076_v23  ;;  %v11361_v13 = vmax.f32 %v11360_v3, 0.0  ;;  %v2240_v50 = vld [vmem:[%s10193_s9 + $0x238] sm:$0xff]  ;;  %v11378_v3 = vld [vmem:[#allocation137_spill] sm:$0xff] }
 0x38a   :  { %5026 = vmatprep.subr.bf16.mxu0 %v5025_v6  ;;  %v2068_v6 = vand.u32 2147483647, %v1912_v8  ;;  %v2384_v20 = vmul.f32 %v2228_v18, %v2072_v27  ;;  %v11364_v8 = vmax.f32 %v11363_v58, 0.0  ;;  %v1944_v29 = vsub.f32 %v11366_v22, %v11334_v10  ;;  %v2244_v41 = vld [vmem:[%s10193_s9 + $0x258] sm:$0xff] }
 0x38b   :  { %v2064_v4 = vand.u32 2147483647, %v1908_v30  ;;  %v2084_v30 = vand.u32 2147483647, %v1928_v46  ;;  %v1952_v23 = vsub.f32 %v11371_v17, %v11341_v33  ;;  %v2256_v46 = vld [vmem:[%s10193_s9 + $0x2b8] sm:$0xff]  ;;  %v11391_v17 = vmax.f32 %v11390_v37, 0.0 }
 0x38c   :  { %v2380_v52 = vmul.f32 %v2224_v19, %v2068_v6  ;;  %v1932_v11 = vsub.f32 %v11364_v8, %v11318_v62  ;;  %v5045_v25 = vpack.c.bf16 %v2388_v0, %v2384_v20  ;;  %v11368_v6 = vld [vmem:[#allocation90_spill] sm:$0xff]  ;;  %v11377_v0 = vmax.f32 %v11376_v40, 0.0 }
 0x38d   :  { %5028 = vmatpush1.bf16.msra.mxu0 %v11347_v32  ;;  %v2376_v21 = vmul.f32 %v2220_v9, %v2064_v4  ;;  %v1936_v32 = vsub.f32 %v11361_v13, %v11327_v35  ;;  %v2396_v4 = vmul.f32 %v2240_v50, %v2084_v30  ;;  %v11369_v45 = vmax.f32 %v11368_v6, 0.0  ;;  %v11379_v13 = vld [vmem:[#allocation132_spill] sm:$0xff] }
 0x38e   :  { %5030 = vmatprep.subr.bf16.mxu0 %v5029_v51  ;;  %v11359_v51 = vmax.f32 %v11358_v63, 0.0  ;;  %v2088_v44 = vand.u32 2147483647, %v1932_v11  ;;  %v1960_v30 = vsub.f32 %v11377_v0, %v11344_v56  ;;  %v2260_v11 = vld [vmem:[%s10193_s9 + $0x2d8] sm:$0xff] }
 0x38f   :  { %v5041_v60 = vpack.c.bf16 %v2380_v52, %v2376_v21  ;;  %v2092_v16 = vand.u32 2147483647, %v1936_v32  ;;  %v1940_v39 = vsub.f32 %v11369_v45, %v11324_v28  ;;  %v2100_v21 = vand.u32 2147483647, %v1944_v29  ;;  %v11374_v52 = vld [vmem:[#allocation99_spill] sm:$0xff]  ;;  %v11385_v29 = vld [vmem:[#allocation142_spill] sm:$0xff] }
 0x390   :  { %v1924_v12 = vsub.f32 %v11359_v51, %v11312_v55  ;;  %v11375_v27 = vmax.f32 %v11374_v52, 0.0  ;;  %v2252_v51 = vld [vmem:[%s10193_s9 + $0x298] sm:$0xff]  ;;  %v11380_v32 = vpack.c.bf16 %v11378_v3, %v11379_v13  ;;  %v11388_v45 = vld [vmem:[#allocation113_spill] sm:$0xff]  ;;  %v11400_v3 = vld [vmem:[#allocation67_spill] sm:$0xff] }
 0x391   :  { %5032 = vmatpush1.bf16.msra.mxu0 %v11352_v15  ;;  %v2248_v15 = vld [vmem:[%s10193_s9 + $0x278] sm:$0xff]  ;;  %v2096_v54 = vand.u32 2147483647, %v1940_v39  ;;  %v2412_v18 = vmul.f32 %v2256_v46, %v2100_v21  ;;  %v11389_v39 = vmax.f32 %v11388_v45, 0.0  ;;  %v11395_v52 = vld [vmem:[#allocation117_spill] sm:$0xff] }
 0x392   :  { %5034 = vmatprep.subr.bf16.mxu0 %v5033_v26  ;;  %v2080_v1 = vand.u32 2147483647, %v1924_v12  ;;  %v2236_v26 = vld [vmem:[%s10193_s9 + $0x218] sm:$0xff]  ;;  %v1948_v63 = vsub.f32 %v11375_v27, %v11330_v24  ;;  %v11396_v27 = vmax.f32 %v11395_v52, 0.0  ;;  %v11418_v52 = vld [vmem:[#allocation141_spill] sm:$0xff] }
 0x393   :  { %v2408_v50 = vmul.f32 %v2252_v51, %v2096_v54  ;;  %v2276_v51 = vld [vmem:[%s10193_s9 + $0x358] sm:$0xff] }
 0x394   :  { %v2392_v9 = vmul.f32 %v2236_v26, %v2080_v1  ;;  %v2104_v20 = vand.u32 2147483647, %v1948_v63  ;;  %v11381_v1 = vld [vmem:[#allocation107_spill] sm:$0xff]  ;;  %v1972_v63 = vsub.f32 %v11396_v27, %v11315_v31  ;;  %v11419_v27 = vmax.f32 %v11418_v52, 0.0 }
 0x395   :  { %5036 = vmatpush1.bf16.msra.mxu0 %v11357_v36  ;;  %v2400_v36 = vmul.f32 %v2244_v41, %v2088_v44  ;;  %v11382_v58 = vmax.f32 %v11381_v1, 0.0  ;;  %v5057_v26 = vpack.c.bf16 %v2412_v18, %v2408_v50  ;;  %v1964_v41 = vsub.f32 %v11389_v39, %v11209_v57  ;;  %v11402_v50 = vld [vmem:[#allocation121_spill] sm:$0xff]  ;;  %v2992_v52 = vld [vmem:[%s10198_s12 + $0x40] sm:$0xff] }
 0x396   :  { %5038 = vmatprep.subr.bf16.mxu0 %v5037_v7  ;;  %v5049_v19 = vpack.c.bf16 %v2396_v4, %v2392_v9  ;;  %v2404_v7 = vmul.f32 %v2248_v15, %v2092_v16  ;;  %v2116_v4 = vand.u32 2147483647, %v1960_v30  ;;  %v11383_v16 = vld [vmem:[#allocation115_spill] sm:$0xff]  ;;  %v2272_v9 = vld [vmem:[%s10193_s9 + $0x338] sm:$0xff]  ;;  %v2416_v44 = vmul.f32 %v2260_v11, %v2104_v20  ;;  %v11399_v30 = vld [vmem:[#allocation72_spill] sm:$0xff] }
 0x397   :  { %v1956_v8 = vsub.f32 %v11382_v58, %v11337_v34  ;;  %v11384_v43 = vmax.f32 %v11383_v16, 0.0  ;;  %v2120_v54 = vand.u32 2147483647, %v1964_v41  ;;  %v11401_v13 = vpack.c.bf16 %v11399_v30, %v11400_v3  ;;  %v2284_v58 = vld [vmem:[%s10193_s9 + $0x398] sm:$0xff]  ;;  %v11406_v16 = vld [vmem:[#allocation167_spill] sm:$0xff] }
 0x398   :  { %v5053_v12 = vpack.c.bf16 %v2404_v7, %v2400_v36  ;;  %v2428_v7 = vmul.f32 %v2272_v9, %v2116_v4  ;;  %v2280_v36 = vld [vmem:[%s10193_s9 + $0x378] sm:$0xff]  ;;  %v11403_v20 = vmax.f32 %v11402_v50, 0.0 }
 0x399   :  { %5040 = vmatpush1.bf16.msra.mxu0 %v11362_v38  ;;  %v2264_v38 = vld [vmem:[%s10193_s9 + $0x2f8] sm:$0xff]  ;;  %v1968_v22 = vsub.f32 %v11384_v43, %v11206_v49  ;;  %v2112_v6 = vand.u32 2147483647, %v1956_v8  ;;  %v2432_v31 = vmul.f32 %v2276_v51, %v2120_v54  ;;  %v11407_v43 = vld [vmem:[#allocation15_spill] sm:$0xff]  ;;  %v11420_v51 = vld [vmem:[#allocation148_spill] sm:$0xff] }
 0x39a   :  { %5042 = vmatprep.subr.bf16.mxu0 %v5041_v60  ;;  %v2108_v60 = vand.u32 2147483647, %v1952_v23  ;;  %v1976_v23 = vsub.f32 %v11391_v17, %v11312_v55  ;;  %v1980_v1 = vsub.f32 %v11403_v20, %v11321_v47  ;;  %v11411_v41 = vld [vmem:[#allocation130_spill] sm:$0xff] }
 0x39b   :  { %v2124_v21 = vand.u32 2147483647, %v1968_v22  ;;  %v11408_v22 = vpack.c.bf16 %v11406_v16, %v11407_v43  ;;  %v2304_v17 = vld [vmem:[%s10193_s9 + $0x438] sm:$0xff]  ;;  %v11431_v16 = vld [vmem:[#allocation16_spill] sm:$0xff] }
 0x39c   :  { %v2132_v18 = vand.u32 2147483647, %v1976_v23  ;;  %v2308_v3 = vld [vmem:[%s10193_s9 + $0x458] sm:$0xff] }
 0x39d   :  { %5044 = vmatpush1.bf16.msra.mxu0 %v11367_v2  ;;  %v11386_v2 = vld [vmem:[#allocation164_spill] sm:$0xff]  ;;  %v2320_v20 = vld [vmem:[%s10193_s9 + $0x4b8] sm:$0xff] }
 0x39e   :  { %5046 = vmatprep.subr.bf16.mxu0 %v5045_v25  ;;  %v2420_v25 = vmul.f32 %v2264_v38, %v2108_v60  ;;  %v11387_v15 = vpack.c.bf16 %v11385_v29, %v11386_v2  ;;  %v11397_v60 = vld [vmem:[#allocation122_spill] sm:$0xff]  ;;  %v2128_v38 = vand.u32 2147483647, %v1972_v63  ;;  %v2136_v2 = vand.u32 2147483647, %v1980_v1 }
 0x39f   :  { %v11398_v40 = vmax.f32 %v11397_v60, 0.0  ;;  %v2296_v29 = vld [vmem:[%s10193_s9 + $0x3f8] sm:$0xff]  ;;  %v2008_v63 = vsub.f32 %v11419_v27, %v11337_v34  ;;  %v2996_v27 = vld [vmem:[%s10198_s12 + $0x60] sm:$0xff] }
 0x3a0   :  { %v5061_v49 = vpack.c.bf16 %v2420_v25, %v2416_v44  ;;  %v2440_v47 = vmul.f32 %v2284_v58, %v2128_v38  ;;  %v11426_v38 = vld [vmem:[#allocation169_spill] sm:$0xff] }
 0x3a1   :  { %5048 = vmatpush1.bf16.msra.mxu0 %v11373_v48  ;;  %v11393_v48 = vld [vmem:[#allocation146_spill] sm:$0xff]  ;;  %v1984_v0 = vsub.f32 %v11398_v40, %v11318_v62 }
 0x3a2   :  { %5050 = vmatprep.subr.bf16.mxu0 %v5049_v19  ;;  %v2268_v19 = vld [vmem:[%s10193_s9 + $0x318] sm:$0xff]  ;;  %v11394_v46 = vpack.c.bf16 %v11392_v14, %v11393_v48  ;;  %v11416_v14 = vld [vmem:[#allocation128_spill] sm:$0xff] }
 0x3a3   :  { %v2424_v57 = vmul.f32 %v2268_v19, %v2112_v6  ;;  %v2140_v11 = vand.u32 2147483647, %v1984_v0  ;;  %v2292_v6 = vld [vmem:[%s10193_s9 + $0x3d8] sm:$0xff]  ;;  %v11412_v19 = vmax.f32 %v11411_v41, 0.0  ;;  %v11417_v48 = vmax.f32 %v11416_v14, 0.0  ;;  %v2984_v14 = vld [vmem:[%s10198_s12] sm:$0xff] }
 0x3a4   :  { %v11423_v40 = vld [vmem:[#allocation138_spill] sm:$0xff] }
 0x3a5   :  { %5052 = vmatpush1.bf16.msra.mxu0 %v11380_v32  ;;  %v5065_v55 = vpack.c.bf16 %v2428_v7, %v2424_v57  ;;  %v2288_v32 = vld [vmem:[%s10193_s9 + $0x3b8] sm:$0xff]  ;;  %v2452_v45 = vmul.f32 %v2296_v29, %v2140_v11  ;;  %v11413_v7 = vld [vmem:[#allocation75_spill] sm:$0xff]  ;;  %v11424_v0 = vmax.f32 %v11423_v40, 0.0  ;;  %v3009_v40 = vld [vmem:[%s10198_s12 + $0xc8] sm:$0xff] }
 0x3a6   :  { %5054 = vmatprep.subr.bf16.mxu0 %v5053_v12  ;;  %v2436_v12 = vmul.f32 %v2280_v36, %v2124_v21  ;;  %v2444_v8 = vmul.f32 %v2288_v32, %v2132_v18  ;;  %v11414_v21 = vld [vmem:[#allocation166_spill] sm:$0xff]  ;;  %v2164_v32 = vand.u32 2147483647, %v2008_v63  ;;  %v11428_v11 = vld [vmem:[#allocation187_spill] sm:$0xff]  ;;  %v9326_v63 = vpack.c.bf16 %v2996_v27, %v2992_v52 }
 0x3a7   :  { %v11415_v37 = vpack.c.bf16 %v11413_v7, %v11414_v21  ;;  %v2300_v36 = vld [vmem:[%s10193_s9 + $0x418] sm:$0xff]  ;;  %v2004_v30 = vsub.f32 %v11424_v0, %v11341_v33  ;;  %v2985_v21 = vld [vmem:[%s10198_s12 + $0x8] sm:$0xff] }
 0x3a8   :  { %v5069_v62 = vpack.c.bf16 %v2436_v12, %v2432_v31  ;;  %v2312_v18 = vld [vmem:[%s10193_s9 + $0x478] sm:$0xff]  ;;  %v11425_v31 = vld [vmem:[#allocation168_spill] sm:$0xff] }
 0x3a9   :  { %5056 = vmatpush1.bf16.msra.mxu0 %v11387_v15  ;;  %v11409_v15 = vld [vmem:[#allocation127_spill] sm:$0xff]  ;;  %v11427_v50 = vpack.c.bf16 %v11425_v31, %v11426_v38  ;;  %v2160_v58 = vand.u32 2147483647, %v2004_v30  ;;  %v2316_v33 = vld [vmem:[%s10193_s9 + $0x498] sm:$0xff]  ;;  %v3013_v0 = vld [vmem:[%s10198_s12 + $0xe8] sm:$0xff] }
 0x3aa   :  { %5058 = vmatprep.subr.bf16.mxu0 %v5057_v26  ;;  %v11404_v26 = vld [vmem:[#allocation126_spill] sm:$0xff]  ;;  %v11410_v9 = vmax.f32 %v11409_v15, 0.0  ;;  %v11434_v15 = vld [vmem:[#allocation173_spill] sm:$0xff]  ;;  %v9353_v30 = vpack.c.bf16 %v3013_v0, %v3009_v40  ;;  %v3021_v31 = vld [vmem:[%s10198_s12 + $0x128] sm:$0xff] }
 0x3ab   :  { %v11405_v25 = vmax.f32 %v11404_v26, 0.0  ;;  %v11429_v26 = vmax.f32 %v11428_v11, 0.0  ;;  %v3028_v11 = vld [vmem:[%s10198_s12 + $0x160] sm:$0xff]  ;;  %v3019_v52 = vld [vmem:[%s10198_s12 + $0x118] sm:$0xff] }
 0x3ac   :  { %v1988_v44 = vsub.f32 %v11410_v9, %v11327_v35  ;;  %v2448_v35 = vmul.f32 %v2292_v6, %v2136_v2  ;;  %v11433_v2 = vld [vmem:[#allocation172_spill] sm:$0xff]  ;;  %v3023_v27 = vld [vmem:[%s10198_s12 + $0x138] sm:$0xff] }
 0x3ad   :  { %5060 = vmatpush1.bf16.msra.mxu0 %v11394_v46  ;;  %v1992_v4 = vsub.f32 %v11405_v25, %v11324_v28  ;;  %v5073_v28 = vpack.c.bf16 %v2444_v8, %v2440_v47  ;;  %v1996_v46 = vsub.f32 %v11417_v48, %v11334_v10  ;;  %v2476_v8 = vmul.f32 %v2320_v20, %v2164_v32  ;;  %v2988_v48 = vld [vmem:[%s10198_s12 + $0x20] sm:$0xff]  ;;  %v3017_v32 = vld [vmem:[%s10198_s12 + $0x108] sm:$0xff]  ;;  %v3027_v40 = vld [vmem:[%s10198_s12 + $0x158] sm:$0xff] }
 0x3ae   :  { %5062 = vmatprep.subr.bf16.mxu0 %v5061_v49  ;;  %v2000_v49 = vsub.f32 %v11412_v19, %v11330_v24  ;;  %v2144_v23 = vand.u32 2147483647, %v1988_v44  ;;  %v5077_v24 = vpack.c.bf16 %v2452_v45, %v2448_v35  ;;  %v2012_v25 = vsub.f32 %v11429_v26, %v11344_v56  ;;  %v11436_v56 = vld [vmem:[#allocation135_spill] sm:$0xff]  ;;  %v11437_v45 = vld [vmem:[#allocation24_spill] sm:$0xff]  ;;  %v3031_v0 = vld [vmem:[%s10198_s12 + $0x178] sm:$0xff] }
 0x3af   :  { %v2148_v39 = vand.u32 2147483647, %v1992_v4  ;;  %v2152_v60 = vand.u32 2147483647, %v1996_v46  ;;  %v11430_v4 = vld [vmem:[#allocation23_spill] sm:$0xff]  ;;  %v11435_v9 = vpack.c.bf16 %v11433_v2, %v11434_v15  ;;  %v9371_v38 = vpack.c.bf16 %v3021_v31, %v3017_v32  ;;  %v2986_v15 = vld [vmem:[%s10198_s12 + $0x10] sm:$0xff] }
 0x3b0   :  { %v2156_v54 = vand.u32 2147483647, %v2000_v49  ;;  %v2456_v10 = vmul.f32 %v2300_v36, %v2144_v23  ;;  %v11432_v43 = vpack.c.bf16 %v11430_v4, %v11431_v16  ;;  %v2168_v47 = vand.u32 2147483647, %v2012_v25  ;;  %v2991_v23 = vld [vmem:[%s10198_s12 + $0x38] sm:$0xff]  ;;  %v3020_v20 = vld [vmem:[%s10198_s12 + $0x120] sm:$0xff] }
 0x3b1   :  { %5064 = vmatpush1.bf16.msra.mxu0 %v11401_v13  ;;  %v2460_v57 = vmul.f32 %v2304_v17, %v2148_v39  ;;  %v2464_v1 = vmul.f32 %v2308_v3, %v2152_v60  ;;  %v2167_v44 = vand.u32 2147483647, %v11436_v56  ;;  %v11438_v39 = vld [vmem:[#allocation152_spill] sm:$0xff]  ;;  %v5646_v49 = vmov 1.0|1.0   ;;  %v2987_v17 = vld [vmem:[%s10198_s12 + $0x18] sm:$0xff] }
 0x3b2   :  { %5066 = vmatprep.subr.bf16.mxu0 %v5065_v55  ;;  %v11421_v55 = vld [vmem:[#allocation80_spill] sm:$0xff]  ;;  %v2468_v13 = vmul.f32 %v2312_v18, %v2156_v54  ;;  %v11439_v41 = vpack.c.bf16 %v11437_v45, %v11438_v39  ;;  %5093 = vmatprep.subr.bf16.mxu1 %v5646_v49  ;;  %v9305_v46 = vpack.c.bf16 %v2991_v23, %v2987_v17  ;;  %v3000_v18 = vld [vmem:[%s10198_s12 + $0x80] sm:$0xff]  ;;  %v2999_v56 = vld [vmem:[%s10198_s12 + $0x78] sm:$0xff] }
 0x3b3   :  { %v11422_v12 = vpack.c.bf16 %v11420_v51, %v11421_v55  ;;  %v5081_v34 = vpack.c.bf16 %v2460_v57, %v2456_v10  ;;  %5094 = vmatpush3.bf16.msra.mxu1 %v5646_v49  ;;  %v9307_v36 = vpack.c.bf16 %v2988_v48, %v2984_v14  ;;  %v2997_v57 = vld [vmem:[%s10198_s12 + $0x68] sm:$0xff]  ;;  %v3004_v10 = vld [vmem:[%s10198_s12 + $0xa0] sm:$0xff]  ;;  %v2994_v39 = vld [vmem:[%s10198_s12 + $0x50] sm:$0xff] }
 0x3b4   :  { %5095 = vmatprep.subr.bf16.mxu1 %v5646_v49  ;;  %11441 = vst [vmem:[#allocation31_spill] sm:$0xff] %v9305_v46  ;;  %v3001_v51 = vld [vmem:[%s10198_s12 + $0x88] sm:$0xff]  ;;  %v9344_v60 = vpack.c.bf16 %v3004_v10, %v3000_v18  ;;  %v3008_v3 = vld [vmem:[%s10198_s12 + $0xc0] sm:$0xff]  ;;  %v3011_v17 = vld [vmem:[%s10198_s12 + $0xd8] sm:$0xff] }
 0x3b5   :  { %5068 = vmatpush1.bf16.msra.mxu0 %v11408_v22  ;;  %v2472_v22 = vmul.f32 %v2316_v33, %v2160_v58  ;;  %v3005_v55 = vld [vmem:[%s10198_s12 + $0xa8] sm:$0xff]  ;;  %v3015_v23 = vld [vmem:[%s10198_s12 + $0xf8] sm:$0xff]  ;;  %v3018_v18 = vld [vmem:[%s10198_s12 + $0x110] sm:$0xff] }
 0x3b6   :  { %5070 = vmatprep.subr.bf16.mxu0 %v5069_v62  ;;  %v5085_v62 = vpack.c.bf16 %v2468_v13, %v2464_v1  ;;  %v3025_v58 = vld [vmem:[%s10198_s12 + $0x148] sm:$0xff]  ;;  %v9473_v48 = vpack.c.bf16 %v3015_v23, %v3011_v17  ;;  %v3022_v10 = vld [vmem:[%s10198_s12 + $0x130] sm:$0xff]  ;;  %v2923_v23 = vld [vmem:[%s10199_s11 + $0x18] sm:$0xff] }
 0x3b7   :  { %v5089_v29 = vpack.c.bf16 %v2476_v8, %v2472_v22  ;;  %5096 = vmatpush3.bf16.msra.mxu1 %v5646_v49  ;;  %v3029_v33 = vld [vmem:[%s10198_s12 + $0x168] sm:$0xff]  ;;  %v3024_v8 = vld [vmem:[%s10198_s12 + $0x140] sm:$0xff]  ;;  %v3026_v32 = vld [vmem:[%s10198_s12 + $0x150] sm:$0xff] }
 0x3b8   :  { %5097 = vmatprep.subr.bf16.mxu1 %v5646_v49  ;;  %v9398_v26 = vpack.c.bf16 %v3028_v11, %v3024_v8  ;;  %v3033_v16 = vld [vmem:[%s10198_s12 + $0x188] sm:$0xff]  ;;  %v3030_v31 = vld [vmem:[%s10198_s12 + $0x170] sm:$0xff] }
 0x3b9   :  { %5072 = vmatpush1.bf16.msra.mxu0 %v11415_v37  ;;  %v2989_v37 = vld [vmem:[%s10198_s12 + $0x28] sm:$0xff]  ;;  %v3034_v8 = vld [vmem:[%s10198_s12 + $0x190] sm:$0xff] }
 0x3ba   :  { %5074 = vmatprep.subr.bf16.mxu0 %v5073_v28  ;;  %v2323_v28 = vld [vmem:[%s10193_s9 + $0x4d0] sm:$0xff]  ;;  %v9294_v35 = vpack.c.bf16 %v2989_v37, %v2985_v21  ;;  %v2925_v17 = vld [vmem:[%s10199_s11 + $0x28] sm:$0xff] }
 0x3bb   :  { %v2479_v19 = vmul.f32 %v2323_v28, %v2167_v44  ;;  %5098 = vmatpush3.bf16.msra.mxu1 %v5646_v49  ;;  %v3002_v21 = vld [vmem:[%s10198_s12 + $0x90] sm:$0xff] }
 0x3bc   :  { %5099 = vmatprep.subr.bf16.mxu1 %v5646_v49  ;;  %11440 = vst [vmem:[#allocation171_spill] sm:$0xff] %v9294_v35  ;;  %v3006_v37 = vld [vmem:[%s10198_s12 + $0xb0] sm:$0xff] }
 0x3bd   :  { %5076 = vmatpush1.bf16.msra.mxu0 %v11422_v12  ;;  %v9335_v12 = vpack.c.bf16 %v3005_v55, %v3001_v51  ;;  %v9470_v14 = vpack.c.bf16 %v3006_v37, %v3002_v21  ;;  %v9491_v55 = vpack.c.bf16 %v3023_v27, %v3019_v52  ;;  %v3038_v11 = vld [vmem:[%s10198_s12 + $0x1b0] sm:$0xff]  ;;  %v2921_v21 = vld [vmem:[%s10199_s11 + $0x8] sm:$0xff]  ;;  %v2920_v27 = vld [vmem:[%s10199_s11] sm:$0xff] }
 0x3be   :  { %5078 = vmatprep.subr.bf16.mxu0 %v5077_v24  ;;  %v2993_v24 = vld [vmem:[%s10198_s12 + $0x48] sm:$0xff] }
 0x3bf   :  { %5100 = vmatpush3.bf16.msra.mxu1 %v5646_v49  ;;  %v9318_v54 = vpack.c.bf16 %v2997_v57, %v2993_v24  ;;  %v3010_v24 = vld [vmem:[%s10198_s12 + $0xd0] sm:$0xff] }
 0x3c0   :  { %5101 = vmatprep.subr.bf16.mxu1 %v5646_v49  ;;  %v3014_v57 = vld [vmem:[%s10198_s12 + $0xf0] sm:$0xff] }
 0x3c1   :  { %5080 = vmatpush1.bf16.msra.mxu0 %v11427_v50  ;;  %v3016_v50 = vld [vmem:[%s10198_s12 + $0x100] sm:$0xff]  ;;  %v9488_v51 = vpack.c.bf16 %v3014_v57, %v3010_v24  ;;  %v2927_v24 = vld [vmem:[%s10199_s11 + $0x38] sm:$0xff]  ;;  %v9589_v57 = vpack.c.bf16 %v2925_v17, %v2921_v21 }
 0x3c2   :  { %5082 = vmatprep.subr.bf16.mxu0 %v5081_v34  ;;  %v3012_v34 = vld [vmem:[%s10198_s12 + $0xe0] sm:$0xff]  ;;  %v9380_v1 = vpack.c.bf16 %v3020_v20, %v3016_v50  ;;  %v3035_v50 = vld [vmem:[%s10198_s12 + $0x198] sm:$0xff]  ;;  %v9591_v52 = vpack.c.bf16 %v2927_v24, %v2923_v23 }
 0x3c3   :  { %5102 = vmatpush3.bf16.msra.mxu1 %v5646_v49  ;;  %v9362_v13 = vpack.c.bf16 %v3012_v34, %v3008_v3  ;;  %v9506_v3 = vpack.c.bf16 %v3022_v10, %v3018_v18  ;;  %v9509_v34 = vpack.c.bf16 %v3031_v0, %v3027_v40  ;;  %v3039_v20 = vld [vmem:[%s10198_s12 + $0x1b8] sm:$0xff]  ;;  %11446 = vst [vmem:[#allocation154_spill] sm:$0xff] %v9589_v57  ;;  %v2924_v18 = vld [vmem:[%s10199_s11 + $0x20] sm:$0xff]  ;;  %v2922_v10 = vld [vmem:[%s10199_s11 + $0x10] sm:$0xff] }
 0x3c4   :  { %2695 = vmatmul.mubr.f32.vlgmr.msra.gmra.mrb[102].mxu0 %v8947_v59  ;;  %v2324_v59 = vld [vmem:[%s10193_s9 + $0x4d8] sm:$0xff]  ;;  %5103 = vmatprep.subr.bf16.mxu1 %v5646_v49  ;;  %11447 = vst [vmem:[#allocation158_spill] sm:$0xff] %v9591_v52  ;;  %v9603_v40 = vpack.c.bf16 %v2924_v18, %v2920_v27  ;;  %v2926_v0 = vld [vmem:[%s10199_s11 + $0x30] sm:$0xff]  ;;  %v2936_v23 = vld [vmem:[%s10199_s11 + $0x80] sm:$0xff] }
 0x3c5   :  { %5084 = vmatpush1.bf16.msra.mxu0 %v11432_v43  ;;  %2765 = vmatprep.mubr.f32.mxu0 %v11300_v61  ;;  %v2480_v6 = vmul.f32 %v2324_v59, %v2168_v47  ;;  %v3037_v43 = vld [vmem:[%s10198_s12 + $0x1a8] sm:$0xff]  ;;  %v3036_v47 = vld [vmem:[%s10198_s12 + $0x1a0] sm:$0xff]  ;;  %v2995_v59 = vld [vmem:[%s10198_s12 + $0x58] sm:$0xff] }
 0x3c6   :  { %5086 = vmatprep.subr.bf16.mxu0 %v5085_v62  ;;  %v9389_v62 = vpack.c.bf16 %v3029_v33, %v3025_v58  ;;  %v9410_v22 = vpack.c.bf16 %v3037_v43, %v3033_v16  ;;  %v9436_v45 = vpack.c.bf16 %v2999_v56, %v2995_v59  ;;  %v9524_v58 = vpack.c.bf16 %v3030_v31, %v3026_v32  ;;  %v3047_v56 = vld [vmem:[%s10198_s12 + $0x1f8] sm:$0xff]  ;;  %v2929_v32 = vld [vmem:[%s10199_s11 + $0x48] sm:$0xff]  ;;  %v2940_v24 = vld [vmem:[%s10199_s11 + $0xa0] sm:$0xff] }
 0x3c7   :  { %5104 = vmatpush3.bf16.msra.mxu1 %v5646_v49  ;;  %v9527_v33 = vpack.c.bf16 %v3039_v20, %v3035_v50  ;;  %v2933_v31 = vld [vmem:[%s10199_s11 + $0x68] sm:$0xff]  ;;  %v9616_v50 = vpack.c.bf16 %v2926_v0, %v2922_v10  ;;  %v2943_v17 = vld [vmem:[%s10199_s11 + $0xb8] sm:$0xff]  ;;  %v2938_v18 = vld [vmem:[%s10199_s11 + $0x90] sm:$0xff] }
 0x3c8   :  { %5105 = vmatprep.subr.bf16.mxu1 %v5646_v49  ;;  %v9618_v20 = vpack.c.bf16 %v2933_v31, %v2929_v32  ;;  %v2942_v10 = vld [vmem:[%s10199_s11 + $0xb0] sm:$0xff]  ;;  %v2945_v0 = vld [vmem:[%s10199_s11 + $0xc8] sm:$0xff]  ;;  %v2947_v31 = vld [vmem:[%s10199_s11 + $0xd8] sm:$0xff] }
 0x3c9   :  { %5088 = vmatpush1.bf16.msra.mxu0 %v11435_v9  ;;  %v2990_v9 = vld [vmem:[%s10198_s12 + $0x30] sm:$0xff]  ;;  %v2949_v32 = vld [vmem:[%s10199_s11 + $0xe8] sm:$0xff] }
 0x3ca   :  { %5090 = vmatprep.subr.bf16.mxu0 %v5089_v29  ;;  %v3032_v29 = vld [vmem:[%s10198_s12 + $0x180] sm:$0xff] }
 0x3cb   :  { %5106 = vmatpush3.bf16.msra.mxu1 %v5646_v49  ;;  %v9419_v2 = vpack.c.bf16 %v3036_v47, %v3032_v29  ;;  %v3041_v47 = vld [vmem:[%s10198_s12 + $0x1c8] sm:$0xff] }
 0x3cc   :  { %5107 = vmatprep.subr.bf16.mxu1 %v5646_v49 }
 0x3cd   :  { %5092 = vmatpush1.bf16.msra.mxu0 %v11439_v41  ;;  %v2998_v41 = vld [vmem:[%s10198_s12 + $0x70] sm:$0xff] }
 0x3ce   :  { %2713 = vmatprep.subr.mxu0 %v2480_v6  ;;  %v9434_v6 = vpack.c.bf16 %v2990_v9, %v2986_v15  ;;  %v3045_v15 = vld [vmem:[%s10198_s12 + $0x1e8] sm:$0xff]  ;;  %v3043_v9 = vld [vmem:[%s10198_s12 + $0x1d8] sm:$0xff] }
 0x3cf   :  { %5108 = vmatpush3.bf16.msra.mxu1 %v5646_v49  ;;  %v9551_v59 = vpack.c.bf16 %v3045_v15, %v3041_v47  ;;  %v2932_v47 = vld [vmem:[%s10199_s11 + $0x60] sm:$0xff]  ;;  %v2930_v15 = vld [vmem:[%s10199_s11 + $0x50] sm:$0xff] }
 0x3d0   :  { %5126 = vmatprep.subr.bf16.mxu1 %v9294_v35 }
 0x3d1   :  { %2714 = vmatpush1.msra.mxu0 %v2479_v19  ;;  %v3003_v19 = vld [vmem:[%s10198_s12 + $0x98] sm:$0xff] }
 0x3d2   :  { %4335 = vmatmul.mubr.msk.f32.vlgmr.msra.gmra.mrb[102].mxu0 %vm2484_vm3, %v8986_v53  ;;  %5109 = vmatprep.subr.bf16.mxu0 %v5646_v49  ;;  %v2625_v53 = vpop.f32.mrb[116].mxu1 }
 0x3d3   :  { %5110 = vmatpush3.bf16.msra.mxu0 %v5646_v49  ;;  %v2627_v7 = vpop.f32.mrb[117].mxu1 }
 0x3d4   :  { %5111 = vmatprep.subr.bf16.mxu0 %v5646_v49  ;;  %2838 = vmatprep.mubr.f32.mxu1 %v2627_v7 }
 0x3d5   :  { %2839 = vmatmul.mubr.f32.vlgmr.msra.gmra.mrb[118].mxu1 %v2625_v53  ;;  %v9451_v53 = vpack.c.bf16 %v2998_v41, %v2994_v39  ;;  %v9562_v39 = vpack.c.bf16 %v3047_v56, %v3043_v9  ;;  %v2934_v9 = vld [vmem:[%s10199_s11 + $0x70] sm:$0xff] }
 0x3d6   :  { %3117 = vmatprep.mubr.f32.mxu1 %v11300_v61  ;;  %5128 = vmatpush1.bf16.msra.mxu1 %v9307_v36 }
 0x3d7   :  { %5112 = vmatpush3.bf16.msra.mxu0 %v5646_v49  ;;  %5130 = vmatprep.subr.bf16.mxu1 %v9318_v54  ;;  %11443 = vst [vmem:[#allocation32_spill] sm:$0xff] %v9562_v39 }
 0x3d8   :  { %5113 = vmatprep.subr.bf16.mxu0 %v5646_v49 }
 0x3da   :  { %5132 = vmatpush1.bf16.msra.mxu1 %v9326_v63 }
 0x3db   :  { %5114 = vmatpush3.bf16.msra.mxu0 %v5646_v49  ;;  %5134 = vmatprep.subr.bf16.mxu1 %v9335_v12 }
 0x3dc   :  { %5115 = vmatprep.subr.bf16.mxu0 %v5646_v49 }
 0x3de   :  { %5136 = vmatpush1.bf16.msra.mxu1 %v9344_v60 }
 0x3df   :  { %5116 = vmatpush3.bf16.msra.mxu0 %v5646_v49  ;;  %5138 = vmatprep.subr.bf16.mxu1 %v9353_v30 }
 0x3e0   :  { %5117 = vmatprep.subr.bf16.mxu0 %v5646_v49 }
 0x3e2   :  { %5140 = vmatpush1.bf16.msra.mxu1 %v9362_v13 }
 0x3e3   :  { %5118 = vmatpush3.bf16.msra.mxu0 %v5646_v49  ;;  %5142 = vmatprep.subr.bf16.mxu1 %v9371_v38 }
 0x3e4   :  { %5119 = vmatprep.subr.bf16.mxu0 %v5646_v49 }
 0x3e6   :  { %5144 = vmatpush1.bf16.msra.mxu1 %v9380_v1 }
 0x3e7   :  { %5120 = vmatpush3.bf16.msra.mxu0 %v5646_v49  ;;  %5146 = vmatprep.subr.bf16.mxu1 %v9389_v62 }
 0x3e8   :  { %5121 = vmatprep.subr.bf16.mxu0 %v5646_v49 }
 0x3ea   :  { %5148 = vmatpush1.bf16.msra.mxu1 %v9398_v26 }
 0x3eb   :  { %5122 = vmatpush3.bf16.msra.mxu0 %v5646_v49  ;;  %5150 = vmatprep.subr.bf16.mxu1 %v9410_v22 }
 0x3ec   :  { %5123 = vmatprep.subr.bf16.mxu0 %v5646_v49 }
 0x3ee   :  { %5152 = vmatpush1.bf16.msra.mxu1 %v9419_v2 }
 0x3ef   :  { %5124 = vmatpush3.bf16.msra.mxu0 %v5646_v49  ;;  %v3007_v49 = vld [vmem:[%s10198_s12 + $0xb8] sm:$0xff]  ;;  %5154 = vmatprep.subr.bf16.mxu1 %v9551_v59 }
 0x3f0   :  { %5158 = vmatprep.subr.bf16.mxu0 %v9305_v46  ;;  %v9455_v7 = vpack.c.bf16 %v3007_v49, %v3003_v19  ;;  %v3042_v19 = vld [vmem:[%s10198_s12 + $0x1d0] sm:$0xff] }
 0x3f1   :  { %v3046_v49 = vld [vmem:[%s10198_s12 + $0x1f0] sm:$0xff] }
 0x3f2   :  { %v9576_v37 = vpack.c.bf16 %v3046_v49, %v3042_v19  ;;  %v2939_v19 = vld [vmem:[%s10199_s11 + $0x98] sm:$0xff]  ;;  %v9656_v49 = vpack.c.bf16 %v2934_v9, %v2930_v15  ;;  %v2944_v15 = vld [vmem:[%s10199_s11 + $0xc0] sm:$0xff] }
 0x3f3   :  { %v9670_v27 = vpack.c.bf16 %v2943_v17, %v2939_v19  ;;  %v2948_v9 = vld [vmem:[%s10199_s11 + $0xe0] sm:$0xff]  ;;  %v2950_v19 = vld [vmem:[%s10199_s11 + $0xf0] sm:$0xff]  ;;  %v2953_v17 = vld [vmem:[%s10199_s11 + $0x108] sm:$0xff] }
 0x3f4   :  { %11445 = vst [vmem:[#allocation174_spill] sm:$0xff] %v9576_v37 }
 0x457   :  { %v9402_v25 = vpop.f32.mrb[100].mxu0 }
 0x458   :  { %11442 = vst [vmem:[#allocation184_spill] sm:$0xff] %v9402_v25  ;;  %v4574_v4 = vpop.f32.mrb[101].mxu0 }
 0x459   :  { %v9536_v4 = vpack.c.bf16 %v3038_v11, %v3034_v8  ;;  %v2931_v8 = vld [vmem:[%s10199_s11 + $0x58] sm:$0xff] }
 0x45a   :  { %v2935_v11 = vld [vmem:[%s10199_s11 + $0x78] sm:$0xff] }
 0x4a5   :  { %v2767_v44 = vpop.f32.mrb[102].mxu0 }
 0x4a6   :  { %v2769_v28 = vpop.f32.mrb[103].mxu0 }
 0x4a7   :  { %2908 = vmatprep.mubr.f32.mxu0 %v2769_v28  ;;  %v3044_v28 = vld [vmem:[%s10198_s12 + $0x1e0] sm:$0xff] }
 0x4a8   :  { %2909 = vmatmul.mubr.f32.vlgmr.msra.gmra.mrb[104].mxu0 %v2767_v44  ;;  %v4468_v16 = vpop.f32.mrb[118].mxu1  ;;  %v3040_v44 = vld [vmem:[%s10198_s12 + $0x1c0] sm:$0xff] }
 0x4a9   :  { %5160 = vmatpush1.bf16.msra.mxu0 %v9434_v6  ;;  %3188 = vmatprep.mubr.f32.mxu0 %v11300_v61  ;;  %v4469_v43 = vpop.f32.mrb[119].mxu1  ;;  %v9564_v41 = vpack.c.bf16 %v3044_v28, %v3040_v44  ;;  %v2937_v44 = vld [vmem:[%s10199_s11 + $0x88] sm:$0xff] }
 0x4aa   :  { %5162 = vmatprep.subr.bf16.mxu0 %v9436_v45  ;;  %v9540_v29 = vadd.f32 %v4469_v43, %v4468_v16  ;;  %v2928_v16 = vld [vmem:[%s10199_s11 + $0x40] sm:$0xff]  ;;  %v9630_v43 = vpack.c.bf16 %v2935_v11, %v2931_v8  ;;  %v2941_v28 = vld [vmem:[%s10199_s11 + $0xa8] sm:$0xff]  ;;  %v2951_v8 = vld [vmem:[%s10199_s11 + $0xf8] sm:$0xff]  ;;  %v9693_v11 = vpack.c.bf16 %v2940_v24, %v2936_v23 }
 0x4ab   :  { %11444 = vst [vmem:[#allocation176_spill] sm:$0xff] %v9564_v41  ;;  %5156 = vmatpush1.bf16.msra.mxu1 %v9564_v41  ;;  %v9643_v56 = vpack.c.bf16 %v2932_v47, %v2928_v16  ;;  %v9658_v21 = vpack.c.bf16 %v2941_v28, %v2937_v44  ;;  %v9697_v16 = vpack.c.bf16 %v2942_v10, %v2938_v18  ;;  %v2946_v44 = vld [vmem:[%s10199_s11 + $0xd0] sm:$0xff]  ;;  %v2957_v23 = vld [vmem:[%s10199_s11 + $0x128] sm:$0xff]  ;;  %v2955_v24 = vld [vmem:[%s10199_s11 + $0x118] sm:$0xff] }
 0x4ac   :  { %5190 = vmatprep.subr.bf16.mxu1 %v9589_v57  ;;  %v9699_v47 = vpack.c.bf16 %v2949_v32, %v2945_v0  ;;  %v9711_v28 = vpack.c.bf16 %v2951_v8, %v2947_v31  ;;  %v2959_v18 = vld [vmem:[%s10199_s11 + $0x138] sm:$0xff]  ;;  %v9729_v10 = vpack.c.bf16 %v2948_v9, %v2944_v15  ;;  %v9733_v0 = vpack.c.bf16 %v2950_v19, %v2946_v44  ;;  %v2952_v31 = vld [vmem:[%s10199_s11 + $0x100] sm:$0xff]  ;;  %v2954_v15 = vld [vmem:[%s10199_s11 + $0x110] sm:$0xff] }
 0x4ad   :  { %5164 = vmatpush1.bf16.msra.mxu0 %v9451_v53  ;;  %v9735_v32 = vpack.c.bf16 %v2957_v23, %v2953_v17  ;;  %v2956_v8 = vld [vmem:[%s10199_s11 + $0x120] sm:$0xff]  ;;  %v9747_v9 = vpack.c.bf16 %v2959_v18, %v2955_v24  ;;  %v2958_v44 = vld [vmem:[%s10199_s11 + $0x130] sm:$0xff]  ;;  %v2961_v19 = vld [vmem:[%s10199_s11 + $0x148] sm:$0xff] }
 0x4ae   :  { %5166 = vmatprep.subr.bf16.mxu0 %v9455_v7  ;;  %3118 = vmatmul.mubr.f32.vlgmr.msra.gmra.mrb[120].mxu1 %v11300_v61  ;;  %11448 = vst [vmem:[#allocation144_spill] sm:$0xff] %v9699_v47  ;;  %11449 = vst [vmem:[#allocation7_spill] sm:$0xff] %v9711_v28  ;;  %v2965_v17 = vld [vmem:[%s10199_s11 + $0x168] sm:$0xff]  ;;  %v2963_v23 = vld [vmem:[%s10199_s11 + $0x158] sm:$0xff]  ;;  %v9765_v18 = vpack.c.bf16 %v2956_v8, %v2952_v31  ;;  %v9769_v25 = vpack.c.bf16 %v2958_v44, %v2954_v15 }
 0x4af   :  { %5192 = vmatpush1.bf16.msra.mxu1 %v9603_v40  ;;  %3259 = vmatprep.mubr.f32.mxu1 %v11300_v61  ;;  %11450 = vst [vmem:[#allocation178_spill] sm:$0xff] %v9729_v10  ;;  %11451 = vst [vmem:[#allocation177_spill] sm:$0xff] %v9733_v0  ;;  %v2967_v24 = vld [vmem:[%s10199_s11 + $0x178] sm:$0xff]  ;;  %v9771_v5 = vpack.c.bf16 %v2965_v17, %v2961_v19  ;;  %v2962_v31 = vld [vmem:[%s10199_s11 + $0x150] sm:$0xff] }
 0x4b0   :  { %5194 = vmatprep.subr.bf16.mxu1 %v9618_v20  ;;  %11452 = vst [vmem:[#allocation136_spill] sm:$0xff] %v9735_v32  ;;  %11453 = vst [vmem:[#allocation5_spill] sm:$0xff] %v9747_v9  ;;  %v9783_v8 = vpack.c.bf16 %v2967_v24, %v2963_v23  ;;  %v2966_v15 = vld [vmem:[%s10199_s11 + $0x170] sm:$0xff]  ;;  %v2969_v44 = vld [vmem:[%s10199_s11 + $0x188] sm:$0xff] }
 0x4b1   :  { %5168 = vmatpush1.bf16.msra.mxu0 %v9470_v14  ;;  %11454 = vst [vmem:[#allocation175_spill] sm:$0xff] %v9765_v18  ;;  %11455 = vst [vmem:[#allocation181_spill] sm:$0xff] %v9769_v25  ;;  %v2973_v19 = vld [vmem:[%s10199_s11 + $0x1a8] sm:$0xff]  ;;  %v2971_v17 = vld [vmem:[%s10199_s11 + $0x198] sm:$0xff] }
 0x4b2   :  { %5170 = vmatprep.subr.bf16.mxu0 %v9473_v48  ;;  %11456 = vst [vmem:[#allocation180_spill] sm:$0xff] %v9771_v5  ;;  %11457 = vst [vmem:[#allocation116_spill] sm:$0xff] %v9783_v8  ;;  %v2975_v23 = vld [vmem:[%s10199_s11 + $0x1b8] sm:$0xff] }
 0x4b3   :  { %5196 = vmatpush1.bf16.msra.mxu1 %v9643_v56 }
 0x4b4   :  { %5198 = vmatprep.subr.bf16.mxu1 %v9658_v21 }
 0x4b5   :  { %5172 = vmatpush1.bf16.msra.mxu0 %v9488_v51 }
 0x4b6   :  { %5174 = vmatprep.subr.bf16.mxu0 %v9491_v55 }
 0x4b7   :  { %5200 = vmatpush1.bf16.msra.mxu1 %v9693_v11 }
 0x4b8   :  { %5202 = vmatprep.subr.bf16.mxu1 %v9699_v47  ;;  %v2964_v47 = vld [vmem:[%s10199_s11 + $0x160] sm:$0xff] }
 0x4b9   :  { %5176 = vmatpush1.bf16.msra.mxu0 %v9506_v3 }
 0x4ba   :  { %5178 = vmatprep.subr.bf16.mxu0 %v9509_v34 }
 0x4bb   :  { %5204 = vmatpush1.bf16.msra.mxu1 %v9729_v10  ;;  %v2972_v10 = vld [vmem:[%s10199_s11 + $0x1a0] sm:$0xff] }
 0x4bc   :  { %5206 = vmatprep.subr.bf16.mxu1 %v9735_v32  ;;  %v9807_v32 = vpack.c.bf16 %v2973_v19, %v2969_v44  ;;  %v2981_v44 = vld [vmem:[%s10199_s11 + $0x1e8] sm:$0xff]  ;;  %v2979_v19 = vld [vmem:[%s10199_s11 + $0x1d8] sm:$0xff] }
 0x4bd   :  { %5180 = vmatpush1.bf16.msra.mxu0 %v9524_v58 }
 0x4be   :  { %5182 = vmatprep.subr.bf16.mxu0 %v9527_v33  ;;  %11460 = vst [vmem:[#allocation38_spill] sm:$0xff] %v9807_v32 }
 0x4bf   :  { %5208 = vmatpush1.bf16.msra.mxu1 %v9765_v18  ;;  %v2980_v18 = vld [vmem:[%s10199_s11 + $0x1e0] sm:$0xff] }
 0x4c0   :  { %5210 = vmatprep.subr.bf16.mxu1 %v9771_v5 }
 0x4c1   :  { %5184 = vmatpush1.bf16.msra.mxu0 %v9536_v4 }
 0x4c2   :  { %5186 = vmatprep.subr.bf16.mxu0 %v9562_v39 }
 0x4c5   :  { %5188 = vmatpush1.bf16.msra.mxu0 %v9576_v37 }
 0x4c6   :  { %5222 = vmatprep.subr.bf16.mxu0 %v9591_v52 }
 0x4c8   :  { %3189 = vmatmul.mubr.f32.vlgmr.msra.gmra.mrb[106].mxu0 %v11300_v61 }
 0x4c9   :  { %5224 = vmatpush1.bf16.msra.mxu0 %v9616_v50  ;;  %3330 = vmatprep.mubr.f32.mxu0 %v11300_v61 }
 0x4ca   :  { %5226 = vmatprep.subr.bf16.mxu0 %v9630_v43 }
 0x4cd   :  { %5228 = vmatpush1.bf16.msra.mxu0 %v9656_v49 }
 0x4ce   :  { %5230 = vmatprep.subr.bf16.mxu0 %v9670_v27 }
 0x4d1   :  { %5232 = vmatpush1.bf16.msra.mxu0 %v9697_v16 }
 0x4d2   :  { %5234 = vmatprep.subr.bf16.mxu0 %v9711_v28  ;;  %v2960_v28 = vld [vmem:[%s10199_s11 + $0x140] sm:$0xff] }
 0x4d3   :  { %v9801_v24 = vpack.c.bf16 %v2964_v47, %v2960_v28  ;;  %v2970_v47 = vld [vmem:[%s10199_s11 + $0x190] sm:$0xff]  ;;  %v9819_v28 = vpack.c.bf16 %v2975_v23, %v2971_v17  ;;  %v2983_v17 = vld [vmem:[%s10199_s11 + $0x1f8] sm:$0xff] }
 0x4d5   :  { %5236 = vmatpush1.bf16.msra.mxu0 %v9733_v0  ;;  %11458 = vst [vmem:[#allocation118_spill] sm:$0xff] %v9801_v24  ;;  %v2968_v0 = vld [vmem:[%s10199_s11 + $0x180] sm:$0xff]  ;;  %11461 = vst [vmem:[#allocation183_spill] sm:$0xff] %v9819_v28  ;;  %5212 = vmatpush1.bf16.msra.mxu1 %v9801_v24 }
 0x4d6   :  { %5238 = vmatprep.subr.bf16.mxu0 %v9747_v9  ;;  %v9805_v9 = vpack.c.bf16 %v2966_v15, %v2962_v31  ;;  %v2974_v31 = vld [vmem:[%s10199_s11 + $0x1b0] sm:$0xff]  ;;  %v2977_v15 = vld [vmem:[%s10199_s11 + $0x1c8] sm:$0xff]  ;;  %v9837_v23 = vpack.c.bf16 %v2972_v10, %v2968_v0  ;;  %5214 = vmatprep.subr.bf16.mxu1 %v9807_v32  ;;  %v9852_v10 = vpack.c.bf16 %v2983_v17, %v2979_v19 }
 0x4d7   :  { %v9843_v5 = vpack.c.bf16 %v2981_v44, %v2977_v15  ;;  %v2978_v0 = vld [vmem:[%s10199_s11 + $0x1d0] sm:$0xff] }
 0x4d8   :  { %11459 = vst [vmem:[#allocation192_spill] sm:$0xff] %v9805_v9  ;;  %11464 = vst [vmem:[#allocation185_spill] sm:$0xff] %v9852_v10 }
 0x4d9   :  { %5240 = vmatpush1.bf16.msra.mxu0 %v9769_v25  ;;  %11463 = vst [vmem:[#allocation186_spill] sm:$0xff] %v9843_v5  ;;  %v2976_v25 = vld [vmem:[%s10199_s11 + $0x1c0] sm:$0xff]  ;;  %5216 = vmatpush1.bf16.msra.mxu1 %v9837_v23 }
 0x4da   :  { %5242 = vmatprep.subr.bf16.mxu0 %v9783_v8  ;;  %v9841_v8 = vpack.c.bf16 %v2974_v31, %v2970_v47  ;;  %v2982_v47 = vld [vmem:[%s10199_s11 + $0x1f0] sm:$0xff]  ;;  %v9861_v31 = vpack.c.bf16 %v2980_v18, %v2976_v25  ;;  %5218 = vmatprep.subr.bf16.mxu1 %v9843_v5  ;;  %v2773_v25 = vstv %s10200_s10 }
 0x4db   :  { %v9865_v15 = vpack.c.bf16 %v2982_v47, %v2978_v0  ;;  %v2841_v19 = vadd.f32 %v9540_v29, %v2773_v25 }
 0x4dc   :  { %11462 = vst [vmem:[#allocation182_spill] sm:$0xff] %v9841_v8  ;;  %11465 = vst [vmem:[#allocation120_spill] sm:$0xff] %v9861_v31 }
 0x4dd   :  { %5244 = vmatpush1.bf16.msra.mxu0 %v9805_v9  ;;  %11466 = vst [vmem:[#allocation36_spill] sm:$0xff] %v9865_v15  ;;  %5220 = vmatpush1.bf16.msra.mxu1 %v9861_v31 }
 0x4de   :  { %5246 = vmatprep.subr.bf16.mxu0 %v9819_v28  ;;  %5254 = vmatprep.subr.bf16.mxu1 %v9294_v35 }
 0x4e1   :  { %5248 = vmatpush1.bf16.msra.mxu0 %v9841_v8 }
 0x4e2   :  { %5250 = vmatprep.subr.bf16.mxu0 %v9852_v10 }
 0x4e5   :  { %5252 = vmatpush1.bf16.msra.mxu0 %v9865_v15 }
 0x4e6   :  { %5286 = vmatprep.subr.bf16.mxu0 %v9305_v46 }
 0x57b   :  { %v4503_v18 = vpop.f32.mrb[104].mxu0 }
 0x57c   :  { %v4504_v44 = vpop.f32.mrb[105].mxu0 }
 0x57d   :  { %v4505_v17 = vadd.f32 %v4504_v44, %v4503_v18 }
 0x57f   :  { %v2911_v0 = vadd.f32 %v4505_v17, %v2841_v19 }
 0x581   :  { %v4336_v47 = vmul.f32 -1.442695, %v2911_v0 }
 0x583   :  { %5583 = vpow2.f32 %v4336_v47 }
 0x58d   :  { %v5584_v10 = vpop.eup %5583 }
 0x58e   :  { %v2917_v31 = vadd.f32 1.0, %v5584_v10 }
 0x590   :  { %5585 = vrcp.f32 %v2917_v31 }
 0x59a   :  { %v5586_v15 = vpop.eup %5585 }
 0x59b   :  { %v9876_v5 = vsub.f32 1.0, %v5586_v15  ;;  %v9879_v46 = vmul.f32 %v5586_v15, %v9011_v42  ;;  %v3048_v42 = vld [vmem:[%s10201_s13] sm:$0xf] }
 0x59d   :  { %v3051_v35 = vmul.f32 0.0, %v9876_v5 }
 0x59f   :  { %v3052_v8 = vadd.f32 %v3051_v35, %v9879_v46  ;;  %v11467_v35 = vld [vmem:[#allocation3_spill] sm:$0xff] }
 0x5a0   :  { %v11468_v29 = vsub.s32 0, %v11467_v35  ;;  %v11470_v10 = vsub.s32 1, %v11467_v35 }
 0x5a1   :  { %3260 = vmatmul.mubr.f32.vlgmr.msra.gmra.mrb[120].mxu1 %v3052_v8  ;;  %3331 = vmatmul.mubr.f32.vlgmr.msra.gmra.mrb[106].mxu0 %v3052_v8 }
 0x5a2   :  { %5256 = vmatpush1.bf16.msra.mxu1 %v9307_v36  ;;  %5288 = vmatpush1.bf16.msra.mxu0 %v9434_v6  ;;  %v9922_v8 = vrot.slane %v3048_v42, %v11468_v29  ;;  %v9926_v31 = vrot.slane %v3048_v42, %v11470_v10  ;;  %v11473_v10 = vsub.s32 2, %v11467_v35 }
 0x5a3   :  { %5258 = vmatprep.subr.bf16.mxu1 %v9318_v54  ;;  %5290 = vmatprep.subr.bf16.mxu0 %v9436_v45 }
 0x5a4   :  { %3455 = vmatprep.mubr.f32.mxu1 %v11300_v61  ;;  %3526 = vmatprep.mubr.f32.mxu0 %v11300_v61  ;;  %11469 = vst [vmem:[#allocation45_spill] sm:$0xff] %v9922_v8 }
 0x5a6   :  { %5260 = vmatpush1.bf16.msra.mxu1 %v9326_v63  ;;  %5292 = vmatpush1.bf16.msra.mxu0 %v9451_v53 }
 0x5a7   :  { %5262 = vmatprep.subr.bf16.mxu1 %v9335_v12  ;;  %5294 = vmatprep.subr.bf16.mxu0 %v9455_v7 }
 0x5aa   :  { %5264 = vmatpush1.bf16.msra.mxu1 %v9344_v60  ;;  %5296 = vmatpush1.bf16.msra.mxu0 %v9470_v14 }
 0x5ab   :  { %5266 = vmatprep.subr.bf16.mxu1 %v9353_v30  ;;  %5298 = vmatprep.subr.bf16.mxu0 %v9473_v48 }
 0x5ae   :  { %5268 = vmatpush1.bf16.msra.mxu1 %v9362_v13  ;;  %5300 = vmatpush1.bf16.msra.mxu0 %v9488_v51 }
 0x5af   :  { %5270 = vmatprep.subr.bf16.mxu1 %v9371_v38  ;;  %5302 = vmatprep.subr.bf16.mxu0 %v9491_v55 }
 0x5b2   :  { %5272 = vmatpush1.bf16.msra.mxu1 %v9380_v1  ;;  %5304 = vmatpush1.bf16.msra.mxu0 %v9506_v3 }
 0x5b3   :  { %5274 = vmatprep.subr.bf16.mxu1 %v9389_v62  ;;  %5306 = vmatprep.subr.bf16.mxu0 %v9509_v34 }
 0x5b6   :  { %5276 = vmatpush1.bf16.msra.mxu1 %v9398_v26  ;;  %5308 = vmatpush1.bf16.msra.mxu0 %v9524_v58 }
 0x5b7   :  { %5278 = vmatprep.subr.bf16.mxu1 %v9410_v22  ;;  %5310 = vmatprep.subr.bf16.mxu0 %v9527_v33 }
 0x5ba   :  { %5280 = vmatpush1.bf16.msra.mxu1 %v9419_v2  ;;  %5312 = vmatpush1.bf16.msra.mxu0 %v9536_v4 }
 0x5bb   :  { %5282 = vmatprep.subr.bf16.mxu1 %v9551_v59  ;;  %5314 = vmatprep.subr.bf16.mxu0 %v9562_v39 }
 0x5be   :  { %5284 = vmatpush1.bf16.msra.mxu1 %v9564_v41  ;;  %5316 = vmatpush1.bf16.msra.mxu0 %v9576_v37  ;;  %v9937_v37 = vrot.slane %v3048_v42, %v11473_v10  ;;  %v11477_v10 = vld [vmem:[#allocation177_spill] sm:$0xff] }
 0x5bf   :  { %5318 = vmatprep.subr.bf16.mxu1 %v9589_v57  ;;  %5350 = vmatprep.subr.bf16.mxu0 %v9591_v52  ;;  %v11471_v52 = vsub.s32 3, %v11467_v35 }
 0x5c1   :  { %v9932_v57 = vrot.slane %v3048_v42, %v11471_v52 }
 0x5c3   :  { %11472 = vst [vmem:[#allocation134_spill] sm:$0xff] %v9932_v57 }
 0x674   :  { %v3261_v15 = vpop.f32.mrb[120].mxu1  ;;  %v3332_v25 = vpop.f32.mrb[106].mxu0 }
 0x675   :  { %v3358_v18 = vadd.f32 %v9922_v8, %v3261_v15  ;;  %v3263_v44 = vpop.f32.mrb[121].mxu1  ;;  %v3334_v19 = vpop.f32.mrb[107].mxu0  ;;  %v3360_v15 = vadd.f32 %v9937_v37, %v3332_v25 }
 0x676   :  { %v3359_v17 = vadd.f32 %v9926_v31, %v3263_v44  ;;  %v3361_v29 = vadd.f32 %v9932_v57, %v3334_v19 }
 0x677   :  { %v4337_v0 = vmul.f32 -1.442695, %v3358_v18 }
 0x678   :  { %v4338_v47 = vmul.f32 -1.442695, %v3359_v17  ;;  %v4339_v41 = vmul.f32 -1.442695, %v3361_v29 }
 0x679   :  { %5587 = vpow2.f32 %v4337_v0 }
 0x67a   :  { %5589 = vpow2.f32 %v4338_v47 }
 0x67b   :  { %5591 = vpow2.f32 %v4339_v41  ;;  %v11475_v41 = vld [vmem:[#allocation7_spill] sm:$0xff] }
 0x67c   :  { %5593 = vtanh.f32 %v3360_v15  ;;  %v11478_v15 = vld [vmem:[#allocation136_spill] sm:$0xff] }
 0x683   :  { %v5588_v8 = vpop.eup %5587 }
 0x684   :  { %v5590_v39 = vpop.eup %5589  ;;  %v3365_v44 = vadd.f32 1.0, %v5588_v8 }
 0x685   :  { %v3371_v18 = vadd.f32 1.0, %v5590_v39  ;;  %v5592_v52 = vpop.eup %5591  ;;  %v11474_v39 = vld [vmem:[#allocation144_spill] sm:$0xff] }
 0x686   :  { %5595 = vrcp.f32 %v3365_v44  ;;  %v5594_v17 = vpop.eup %5593  ;;  %v3378_v57 = vadd.f32 1.0, %v5592_v52  ;;  %v11479_v44 = vld [vmem:[#allocation5_spill] sm:$0xff] }
 0x687   :  { %5597 = vrcp.f32 %v3371_v18  ;;  %v11480_v18 = vld [vmem:[#allocation175_spill] sm:$0xff]  ;;  %v11481_v52 = vld [vmem:[#allocation181_spill] sm:$0xff] }
 0x688   :  { %5599 = vrcp.f32 %v3378_v57  ;;  %v11476_v57 = vld [vmem:[#allocation178_spill] sm:$0xff] }
 0x690   :  { %v5596_v0 = vpop.eup %5595 }
 0x691   :  { %v5598_v47 = vpop.eup %5597  ;;  %v3382_v19 = vmul.f32 %v5596_v0, %v5594_v17  ;;  %v11482_v17 = vld [vmem:[#allocation180_spill] sm:$0xff] }
 0x692   :  { %v3381_v35 = vmul.f32 0.0, %v5598_v47  ;;  %v5600_v25 = vpop.eup %5599  ;;  %v11483_v0 = vld [vmem:[#allocation116_spill] sm:$0xff] }
 0x694   :  { %v9940_v42 = vadd.f32 %v3382_v19, %v3381_v35  ;;  %v11484_v35 = vld [vmem:[#allocation182_spill] sm:$0xff] }
 0x696   :  { %5601 = vtanh.f32 %v9940_v42 }
 0x6a0   :  { %v5602_v29 = vpop.eup %5601 }
 0x6a1   :  { %v3385_v8 = vmul.f32 %v5602_v29, %v5600_v25  ;;  %v11485_v25 = vld [vmem:[#allocation186_spill] sm:$0xff]  ;;  %v11486_v29 = vld [vmem:[#allocation185_spill] sm:$0xff] }
 0x6a3   :  { %3456 = vmatmul.mubr.f32.vlgmr.msra.gmra.mrb[122].mxu1 %v3385_v8  ;;  %3527 = vmatmul.mubr.f32.vlgmr.msra.gmra.mrb[108].mxu0 %v3385_v8  ;;  %v3387_v47 = vrot.slane %v3385_v8, 6 }
 0x6a4   :  { %5320 = vmatpush1.bf16.msra.mxu1 %v9603_v40  ;;  %5352 = vmatpush1.bf16.msra.mxu0 %v9616_v50 }
 0x6a5   :  { %5322 = vmatprep.subr.bf16.mxu1 %v9618_v20  ;;  %5354 = vmatprep.subr.bf16.mxu0 %v9630_v43  ;;  %v3389_v19 = vmul.f32 %v3387_v47, %v9876_v5 }
 0x6a6   :  { %3600 = vmatprep.mubr.f32.mxu1 %v11300_v61  ;;  %3671 = vmatprep.mubr.f32.mxu0 %v11300_v61 }
 0x6a7   :  { %v3390_v8 = vadd.f32 %v3389_v19, %v9879_v46 }
 0x6a8   :  { %5324 = vmatpush1.bf16.msra.mxu1 %v9643_v56  ;;  %5356 = vmatpush1.bf16.msra.mxu0 %v9656_v49 }
 0x6a9   :  { %5326 = vmatprep.subr.bf16.mxu1 %v9658_v21  ;;  %5358 = vmatprep.subr.bf16.mxu0 %v9670_v27 }
 0x6ac   :  { %5328 = vmatpush1.bf16.msra.mxu1 %v9693_v11  ;;  %5360 = vmatpush1.bf16.msra.mxu0 %v9697_v16 }
 0x6ad   :  { %5330 = vmatprep.subr.bf16.mxu1 %v11474_v39  ;;  %5362 = vmatprep.subr.bf16.mxu0 %v11475_v41 }
 0x6b0   :  { %5332 = vmatpush1.bf16.msra.mxu1 %v11476_v57  ;;  %5364 = vmatpush1.bf16.msra.mxu0 %v11477_v10 }
 0x6b1   :  { %5334 = vmatprep.subr.bf16.mxu1 %v11478_v15  ;;  %5366 = vmatprep.subr.bf16.mxu0 %v11479_v44 }
 0x6b4   :  { %5336 = vmatpush1.bf16.msra.mxu1 %v11480_v18  ;;  %5368 = vmatpush1.bf16.msra.mxu0 %v11481_v52 }
 0x6b5   :  { %5338 = vmatprep.subr.bf16.mxu1 %v11482_v17  ;;  %5370 = vmatprep.subr.bf16.mxu0 %v11483_v0  ;;  %v11487_v0 = vld [vmem:[#allocation120_spill] sm:$0xff] }
 0x6b8   :  { %5340 = vmatpush1.bf16.msra.mxu1 %v9801_v24  ;;  %5372 = vmatpush1.bf16.msra.mxu0 %v9805_v9  ;;  %v11488_v24 = vld [vmem:[#allocation36_spill] sm:$0xff]  ;;  %v3534_v9 = vrot.slane %v3390_v8, 2 }
 0x6b9   :  { %5342 = vmatprep.subr.bf16.mxu1 %v9807_v32  ;;  %5374 = vmatprep.subr.bf16.mxu0 %v9819_v28  ;;  %v11489_v32 = vld [vmem:[#allocation171_spill] sm:$0xff] }
 0x6ba   :  { %v11490_v28 = vld [vmem:[#allocation31_spill] sm:$0xff] }
 0x6bc   :  { %5344 = vmatpush1.bf16.msra.mxu1 %v9837_v23  ;;  %5376 = vmatpush1.bf16.msra.mxu0 %v11484_v35 }
 0x6bd   :  { %5346 = vmatprep.subr.bf16.mxu1 %v11485_v25  ;;  %5378 = vmatprep.subr.bf16.mxu0 %v11486_v29 }
 0x6c0   :  { %5348 = vmatpush1.bf16.msra.mxu1 %v11487_v0  ;;  %5380 = vmatpush1.bf16.msra.mxu0 %v11488_v24 }
 0x6c1   :  { %5382 = vmatprep.subr.bf16.mxu1 %v11489_v32  ;;  %5414 = vmatprep.subr.bf16.mxu0 %v11490_v28 }
 0x6c3   :  { %3601 = vmatmul.mubr.f32.vlgmr.msra.gmra.mrb[122].mxu1 %v3534_v9  ;;  %3672 = vmatmul.mubr.f32.vlgmr.msra.gmra.mrb[108].mxu0 %v3534_v9 }
 0x6c4   :  { %5384 = vmatpush1.bf16.msra.mxu1 %v9307_v36  ;;  %5416 = vmatpush1.bf16.msra.mxu0 %v9434_v6  ;;  %v11491_v36 = vld [vmem:[#allocation32_spill] sm:$0xff] }
 0x6c5   :  { %5386 = vmatprep.subr.bf16.mxu1 %v9318_v54  ;;  %5418 = vmatprep.subr.bf16.mxu0 %v9436_v45  ;;  %v11492_v54 = vld [vmem:[#allocation176_spill] sm:$0xff]  ;;  %v11497_v45 = vld [vmem:[#allocation134_spill] sm:$0xff] }
 0x6c6   :  { %3775 = vmatprep.mubr.f32.mxu1 %v11300_v61  ;;  %3846 = vmatprep.mubr.f32.mxu0 %v11300_v61 }
 0x6c8   :  { %5388 = vmatpush1.bf16.msra.mxu1 %v9326_v63  ;;  %5420 = vmatpush1.bf16.msra.mxu0 %v9451_v53  ;;  %v11493_v63 = vld [vmem:[#allocation174_spill] sm:$0xff] }
 0x6c9   :  { %5390 = vmatprep.subr.bf16.mxu1 %v9335_v12  ;;  %5422 = vmatprep.subr.bf16.mxu0 %v9455_v7  ;;  %v11494_v12 = vld [vmem:[#allocation154_spill] sm:$0xff] }
 0x6cc   :  { %5392 = vmatpush1.bf16.msra.mxu1 %v9344_v60  ;;  %5424 = vmatpush1.bf16.msra.mxu0 %v9470_v14  ;;  %v11495_v60 = vld [vmem:[#allocation158_spill] sm:$0xff] }
 0x6cd   :  { %5394 = vmatprep.subr.bf16.mxu1 %v9353_v30  ;;  %5426 = vmatprep.subr.bf16.mxu0 %v9473_v48 }
 0x6d0   :  { %5396 = vmatpush1.bf16.msra.mxu1 %v9362_v13  ;;  %5428 = vmatpush1.bf16.msra.mxu0 %v9488_v51 }
 0x6d1   :  { %5398 = vmatprep.subr.bf16.mxu1 %v9371_v38  ;;  %5430 = vmatprep.subr.bf16.mxu0 %v9491_v55  ;;  %v11496_v38 = vld [vmem:[#allocation45_spill] sm:$0xff] }
 0x6d4   :  { %5400 = vmatpush1.bf16.msra.mxu1 %v9380_v1  ;;  %5432 = vmatpush1.bf16.msra.mxu0 %v9506_v3 }
 0x6d5   :  { %5402 = vmatprep.subr.bf16.mxu1 %v9389_v62  ;;  %5434 = vmatprep.subr.bf16.mxu0 %v9509_v34 }
 0x6d8   :  { %5404 = vmatpush1.bf16.msra.mxu1 %v9398_v26  ;;  %5436 = vmatpush1.bf16.msra.mxu0 %v9524_v58 }
 0x6d9   :  { %5406 = vmatprep.subr.bf16.mxu1 %v9410_v22  ;;  %5438 = vmatprep.subr.bf16.mxu0 %v9527_v33 }
 0x6dc   :  { %5408 = vmatpush1.bf16.msra.mxu1 %v9419_v2  ;;  %5440 = vmatpush1.bf16.msra.mxu0 %v9536_v4 }
 0x6dd   :  { %5410 = vmatprep.subr.bf16.mxu1 %v9551_v59  ;;  %5442 = vmatprep.subr.bf16.mxu0 %v11491_v36  ;;  %v4124_v36 = vld [vmem:[%s10203_s16 + $0x10] sm:$0xff] }
 0x6e0   :  { %5412 = vmatpush1.bf16.msra.mxu1 %v11492_v54  ;;  %5444 = vmatpush1.bf16.msra.mxu0 %v11493_v63  ;;  %v4125_v63 = vld [vmem:[%s10203_s16 + $0x18] sm:$0xff] }
 0x6e1   :  { %5446 = vmatprep.subr.bf16.mxu1 %v11494_v12  ;;  %5478 = vmatprep.subr.bf16.mxu0 %v11495_v60  ;;  %v4040_v60 = vld [vmem:[%s10202_s14 + $0x60] sm:$0xff] }
 0x796   :  { %v3602_v30 = vpop.f32.mrb[122].mxu1  ;;  %v3673_v13 = vpop.f32.mrb[108].mxu0 }
 0x797   :  { %v3678_v1 = vadd.f32 %v3602_v30, %v11496_v38  ;;  %v3604_v62 = vpop.f32.mrb[123].mxu1  ;;  %v3675_v26 = vpop.f32.mrb[109].mxu0  ;;  %v3680_v14 = vadd.f32 %v3673_v13, %v9937_v37  ;;  %v4041_v30 = vld [vmem:[%s10202_s14 + $0x68] sm:$0xff]  ;;  %v5537_v13 = vpack.c.bf16 %v4125_v63, %v4124_v36 }
 0x798   :  { %v3679_v22 = vadd.f32 %v3604_v62, %v9926_v31  ;;  %v3681_v53 = vadd.f32 %v3675_v26, %v11497_v45  ;;  %v4127_v62 = vld [vmem:[%s10203_s16 + $0x28] sm:$0xff]  ;;  %v5528_v26 = vpack.c.bf16 %v4041_v30, %v4040_v60 }
 0x799   :  { %v4340_v2 = vmul.f32 -1.442695, %v3678_v1  ;;  %v4126_v1 = vld [vmem:[%s10203_s16 + $0x20] sm:$0xff] }
 0x79a   :  { %v4341_v6 = vmul.f32 -1.442695, %v3679_v22  ;;  %v4342_v7 = vmul.f32 -1.442695, %v3681_v53  ;;  %v4042_v22 = vld [vmem:[%s10202_s14 + $0x70] sm:$0xff] }
 0x79b   :  { %5603 = vpow2.f32 %v4340_v2  ;;  %v4043_v2 = vld [vmem:[%s10202_s14 + $0x78] sm:$0xff]  ;;  %v4128_v53 = vld [vmem:[%s10203_s16 + $0x30] sm:$0xff] }
 0x79c   :  { %5605 = vpow2.f32 %v4341_v6  ;;  %v5540_v6 = vpack.c.bf16 %v4127_v62, %v4126_v1 }
 0x79d   :  { %5607 = vpow2.f32 %v4342_v7  ;;  %v4129_v7 = vld [vmem:[%s10203_s16 + $0x38] sm:$0xff] }
 0x79e   :  { %5609 = vtanh.f32 %v3680_v14  ;;  %v5531_v14 = vpack.c.bf16 %v4043_v2, %v4042_v22 }
 0x7a5   :  { %v5604_v48 = vpop.eup %5603 }
 0x7a6   :  { %v5606_v51 = vpop.eup %5605  ;;  %v3685_v55 = vadd.f32 1.0, %v5604_v48  ;;  %v5543_v48 = vpack.c.bf16 %v4129_v7, %v4128_v53 }
 0x7a7   :  { %v3691_v3 = vadd.f32 1.0, %v5606_v51  ;;  %v5608_v34 = vpop.eup %5607  ;;  %v4130_v51 = vld [vmem:[%s10203_s16 + $0x40] sm:$0xff] }
 0x7a8   :  { %5611 = vrcp.f32 %v3685_v55  ;;  %v5610_v58 = vpop.eup %5609  ;;  %v3698_v32 = vadd.f32 1.0, %v5608_v34  ;;  %v4131_v55 = vld [vmem:[%s10203_s16 + $0x48] sm:$0xff] }
 0x7a9   :  { %5613 = vrcp.f32 %v3691_v3  ;;  %v5546_v3 = vpack.c.bf16 %v4131_v55, %v4130_v51 }
 0x7aa   :  { %5615 = vrcp.f32 %v3698_v32 }
 0x7b2   :  { %v5612_v33 = vpop.eup %5611 }
 0x7b3   :  { %v5614_v4 = vpop.eup %5613  ;;  %v3702_v59 = vmul.f32 %v5612_v33, %v5610_v58 }
 0x7b4   :  { %v3701_v9 = vmul.f32 %v5614_v4, %v9940_v42  ;;  %v5616_v47 = vpop.eup %5615  ;;  %v4031_v42 = vld [vmem:[%s10202_s14 + $0x18] sm:$0xff] }
 0x7b6   :  { %v10018_v28 = vadd.f32 %v3702_v59, %v3701_v9 }
 0x7b8   :  { %5617 = vtanh.f32 %v10018_v28 }
 0x7c2   :  { %v5618_v19 = vpop.eup %5617 }
 0x7c3   :  { %v3705_v8 = vmul.f32 %v5618_v19, %v5616_v47 }
 0x7c5   :  { %3776 = vmatmul.mubr.f32.vlgmr.msra.gmra.mrb[124].mxu1 %v3705_v8  ;;  %3847 = vmatmul.mubr.f32.vlgmr.msra.gmra.mrb[110].mxu0 %v3705_v8 }
 0x7c6   :  { %5448 = vmatpush1.bf16.msra.mxu1 %v9603_v40  ;;  %5480 = vmatpush1.bf16.msra.mxu0 %v9616_v50  ;;  %v11498_v40 = vld [vmem:[#allocation116_spill] sm:$0xff]  ;;  %v3707_v50 = vrot.slane %v3705_v8, 4 }
 0x7c7   :  { %5450 = vmatprep.subr.bf16.mxu1 %v9618_v20  ;;  %5482 = vmatprep.subr.bf16.mxu0 %v9630_v43  ;;  %v11499_v20 = vld [vmem:[#allocation118_spill] sm:$0xff]  ;;  %v11500_v43 = vld [vmem:[#allocation192_spill] sm:$0xff] }
 0x7c8   :  { %3920 = vmatprep.mubr.f32.mxu1 %v11300_v61  ;;  %3991 = vmatprep.mubr.f32.mxu0 %v11300_v61 }
 0x7ca   :  { %5452 = vmatpush1.bf16.msra.mxu1 %v9643_v56  ;;  %5484 = vmatpush1.bf16.msra.mxu0 %v9656_v49  ;;  %v11501_v56 = vld [vmem:[#allocation38_spill] sm:$0xff]  ;;  %v11502_v49 = vld [vmem:[#allocation183_spill] sm:$0xff] }
 0x7cb   :  { %5454 = vmatprep.subr.bf16.mxu1 %v9658_v21  ;;  %5486 = vmatprep.subr.bf16.mxu0 %v9670_v27  ;;  %v3709_v21 = vmul.f32 %v3707_v50, %v9876_v5  ;;  %v4028_v5 = vld [vmem:[%s10202_s14] sm:$0xff] }
 0x7cd   :  { %v3710_v27 = vadd.f32 %v3709_v21, %v9879_v46  ;;  %v4029_v46 = vld [vmem:[%s10202_s14 + $0x8] sm:$0xff] }
 0x7ce   :  { %5456 = vmatpush1.bf16.msra.mxu1 %v9693_v11  ;;  %5488 = vmatpush1.bf16.msra.mxu0 %v9697_v16  ;;  %v11503_v16 = vmov 0.0|0.0  }
 0x7cf   :  { %5458 = vmatprep.subr.bf16.mxu1 %v11474_v39  ;;  %5490 = vmatprep.subr.bf16.mxu0 %v11475_v41  ;;  %v3854_v11 = vrot.slane %v3710_v27, 4  ;;  %v4033_v41 = vld [vmem:[%s10202_s14 + $0x28] sm:$0xff]  ;;  %v4333_v27 = vld [vmem:[%s10204_s8] ss:$0 sm:$0xff] }
 0x7d2   :  { %5460 = vmatpush1.bf16.msra.mxu1 %v11476_v57  ;;  %5492 = vmatpush1.bf16.msra.mxu0 %v11477_v10  ;;  %v4034_v10 = vld [vmem:[%s10202_s14 + $0x30] sm:$0xff] }
 0x7d3   :  { %5462 = vmatprep.subr.bf16.mxu1 %v11478_v15  ;;  %5494 = vmatprep.subr.bf16.mxu0 %v11479_v44  ;;  %v4035_v15 = vld [vmem:[%s10202_s14 + $0x38] sm:$0xff] }
 0x7d4   :  { %v5519_v44 = vpack.c.bf16 %v4035_v15, %v4034_v10  ;;  %v4132_v10 = vld [vmem:[%s10203_s16 + $0x50] sm:$0xff]  ;;  %v4134_v15 = vld [vmem:[%s10203_s16 + $0x60] sm:$0xff] }
 0x7d6   :  { %5464 = vmatpush1.bf16.msra.mxu1 %v11480_v18  ;;  %5496 = vmatpush1.bf16.msra.mxu0 %v11481_v52  ;;  %v4036_v18 = vld [vmem:[%s10202_s14 + $0x40] sm:$0xff]  ;;  %v4037_v52 = vld [vmem:[%s10202_s14 + $0x48] sm:$0xff] }
 0x7d7   :  { %5466 = vmatprep.subr.bf16.mxu1 %v11482_v17  ;;  %5498 = vmatprep.subr.bf16.mxu0 %v11498_v40  ;;  %v5522_v17 = vpack.c.bf16 %v4037_v52, %v4036_v18  ;;  %v4135_v18 = vld [vmem:[%s10203_s16 + $0x68] sm:$0xff] }
 0x7d8   :  { %v5552_v52 = vpack.c.bf16 %v4135_v18, %v4134_v15 }
 0x7da   :  { %5468 = vmatpush1.bf16.msra.mxu1 %v11499_v20  ;;  %5500 = vmatpush1.bf16.msra.mxu0 %v11500_v43 }
 0x7db   :  { %5470 = vmatprep.subr.bf16.mxu1 %v11501_v56  ;;  %5502 = vmatprep.subr.bf16.mxu0 %v11502_v49 }
 0x7de   :  { %5472 = vmatpush1.bf16.msra.mxu1 %v9837_v23  ;;  %5504 = vmatpush1.bf16.msra.mxu0 %v11484_v35  ;;  %v5510_v23 = vpack.c.bf16 %v4029_v46, %v4028_v5  ;;  %v4039_v35 = vld [vmem:[%s10202_s14 + $0x58] sm:$0xff]  ;;  %v11504_v5 = vld [vmem:[#allocation184_spill] sm:$0xff] }
 0x7df   :  { %5474 = vmatprep.subr.bf16.mxu1 %v11485_v25  ;;  %5506 = vmatprep.subr.bf16.mxu0 %v11486_v29  ;;  %v4122_v25 = vld [vmem:[%s10203_s16] sm:$0xff]  ;;  %v4123_v29 = vld [vmem:[%s10203_s16 + $0x8] sm:$0xff]  ;;  %v1853_v46 = vadd.f32 %v4333_v27, %v11504_v5 }
 0x7e0   :  { %v5534_v54 = vpack.c.bf16 %v4123_v29, %v4122_v25  ;;  %v4346_v25 = vld [vmem:[%s10205_s15] ss:$0 sm:$0xff] }
 0x7e2   :  { %5476 = vmatpush1.bf16.msra.mxu1 %v11487_v0  ;;  %5508 = vmatpush1.bf16.msra.mxu0 %v11488_v24  ;;  %v4030_v24 = vld [vmem:[%s10202_s14 + $0x10] sm:$0xff] }
 0x7e3   :  { %5509 = vmatprep.subr.bf16.mxu1 %v11503_v16  ;;  %5533 = vmatprep.subr.bf16.mxu0 %v11503_v16  ;;  %v5513_v39 = vpack.c.bf16 %v4031_v42, %v4030_v24  ;;  %v4038_v0 = vld [vmem:[%s10202_s14 + $0x50] sm:$0xff] }
 0x7e4   :  { %v5525_v12 = vpack.c.bf16 %v4039_v35, %v4038_v0  ;;  %v4137_v0 = vld [vmem:[%s10203_s16 + $0x78] sm:$0xff] }
 0x7e5   :  { %3921 = vmatmul.mubr.f32.vlgmr.msra.gmra.mrb[124].mxu1 %v3854_v11  ;;  %3992 = vmatmul.mubr.f32.vlgmr.msra.gmra.mrb[110].mxu0 %v3854_v11 }
 0x7e6   :  { %4607 = vmatprep.mubr.msk.f32.mxu1 %vm5645_vm2, %v11300_v61  ;;  %4642 = vmatprep.mubr.msk.f32.mxu0 %vm5645_vm2, %v11300_v61  ;;  %v4032_v61 = vld [vmem:[%s10202_s14 + $0x20] sm:$0xff] }
 0x7e7   :  { %5511 = vmatpush3.bf16.msra.mxu1 %v5510_v23  ;;  %v5516_v57 = vpack.c.bf16 %v4033_v41, %v4032_v61  ;;  %5535 = vmatpush3.bf16.msra.mxu0 %v5534_v54 }
 0x7e8   :  { %5512 = vmatprep.subr.bf16.mxu1 %v11503_v16  ;;  %5536 = vmatprep.subr.bf16.mxu0 %v11503_v16 }
 0x7eb   :  { %5514 = vmatpush3.bf16.msra.mxu1 %v5513_v39  ;;  %5538 = vmatpush3.bf16.msra.mxu0 %v5537_v13 }
 0x7ec   :  { %5515 = vmatprep.subr.bf16.mxu1 %v11503_v16  ;;  %5539 = vmatprep.subr.bf16.mxu0 %v11503_v16 }
 0x7ef   :  { %5517 = vmatpush3.bf16.msra.mxu1 %v5516_v57  ;;  %5541 = vmatpush3.bf16.msra.mxu0 %v5540_v6 }
 0x7f0   :  { %5518 = vmatprep.subr.bf16.mxu1 %v11503_v16  ;;  %5542 = vmatprep.subr.bf16.mxu0 %v11503_v16 }
 0x7f3   :  { %5520 = vmatpush3.bf16.msra.mxu1 %v5519_v44  ;;  %5544 = vmatpush3.bf16.msra.mxu0 %v5543_v48 }
 0x7f4   :  { %5521 = vmatprep.subr.bf16.mxu1 %v11503_v16  ;;  %5545 = vmatprep.subr.bf16.mxu0 %v11503_v16 }
 0x7f7   :  { %5523 = vmatpush3.bf16.msra.mxu1 %v5522_v17  ;;  %5547 = vmatpush3.bf16.msra.mxu0 %v5546_v3  ;;  %v4136_v17 = vld [vmem:[%s10203_s16 + $0x70] sm:$0xff] }
 0x7f8   :  { %5524 = vmatprep.subr.bf16.mxu1 %v11503_v16  ;;  %5548 = vmatprep.subr.bf16.mxu0 %v11503_v16  ;;  %v5555_v35 = vpack.c.bf16 %v4137_v0, %v4136_v17 }
 0x7fb   :  { %5526 = vmatpush3.bf16.msra.mxu1 %v5525_v12  ;;  %v4347_v12 = vld [vmem:[%s10206_s17] ss:$0 sm:$0xff] }
 0x7fc   :  { %5527 = vmatprep.subr.bf16.mxu1 %v11503_v16 }
 0x7ff   :  { %5529 = vmatpush3.bf16.msra.mxu1 %v5528_v26 }
 0x800   :  { %5530 = vmatprep.subr.bf16.mxu1 %v11503_v16 }
 0x803   :  { %5532 = vmatpush3.bf16.msra.mxu1 %v5531_v14 }
 0x8b8   :  { %v3922_v34 = vpop.f32.mrb[124].mxu1  ;;  %v3993_v58 = vpop.f32.mrb[110].mxu0 }
 0x8b9   :  { %v3998_v33 = vadd.f32 %v3922_v34, %v11496_v38  ;;  %v3924_v4 = vpop.f32.mrb[125].mxu1  ;;  %v3995_v59 = vpop.f32.mrb[111].mxu0  ;;  %v4000_v40 = vadd.f32 %v3993_v58, %v9937_v37 }
 0x8ba   :  { %v3999_v32 = vadd.f32 %v3924_v4, %v9926_v31  ;;  %v4001_v19 = vadd.f32 %v3995_v59, %v11497_v45 }
 0x8bb   :  { %v4343_v9 = vmul.f32 -1.442695, %v3998_v33 }
 0x8bc   :  { %v4344_v47 = vmul.f32 -1.442695, %v3999_v32  ;;  %v4345_v8 = vmul.f32 -1.442695, %v4001_v19 }
 0x8bd   :  { %5619 = vpow2.f32 %v4343_v9 }
 0x8be   :  { %5621 = vpow2.f32 %v4344_v47 }
 0x8bf   :  { %5623 = vpow2.f32 %v4345_v8 }
 0x8c0   :  { %5625 = vtanh.f32 %v4000_v40 }
 0x8c7   :  { %v5620_v50 = vpop.eup %5619 }
 0x8c8   :  { %v5622_v20 = vpop.eup %5621  ;;  %v4005_v43 = vadd.f32 1.0, %v5620_v50 }
 0x8c9   :  { %v4011_v56 = vadd.f32 1.0, %v5622_v20  ;;  %v5624_v38 = vpop.eup %5623 }
 0x8ca   :  { %5627 = vrcp.f32 %v4005_v43  ;;  %v5626_v49 = vpop.eup %5625  ;;  %v4018_v11 = vadd.f32 1.0, %v5624_v38 }
 0x8cb   :  { %5629 = vrcp.f32 %v4011_v56 }
 0x8cc   :  { %5631 = vrcp.f32 %v4018_v11 }
 0x8d4   :  { %v5628_v31 = vpop.eup %5627 }
 0x8d5   :  { %v5630_v21 = vpop.eup %5629  ;;  %v4022_v45 = vmul.f32 %v5628_v31, %v5626_v49 }
 0x8d6   :  { %v4021_v37 = vmul.f32 %v5630_v21, %v10018_v28  ;;  %v5632_v23 = vpop.eup %5631  ;;  %v4133_v28 = vld [vmem:[%s10203_s16 + $0x58] sm:$0xff] }
 0x8d7   :  { %v5549_v44 = vpack.c.bf16 %v4133_v28, %v4132_v10 }
 0x8d8   :  { %v4023_v24 = vadd.f32 %v4022_v45, %v4021_v37 }
 0x8d9   :  { %5550 = vmatpush3.bf16.msra.mxu0 %v5549_v44 }
 0x8da   :  { %5633 = vtanh.f32 %v4023_v24  ;;  %5551 = vmatprep.subr.bf16.mxu0 %v11503_v16 }
 0x8db   :  { %5635 = vtanh.f32 %v1853_v46 }
 0x8dd   :  { %5553 = vmatpush3.bf16.msra.mxu0 %v5552_v52 }
 0x8de   :  { %5554 = vmatprep.subr.bf16.mxu0 %v11503_v16 }
 0x8e1   :  { %5556 = vmatpush3.bf16.msra.mxu0 %v5555_v35 }
 0x8e4   :  { %v5634_v42 = vpop.eup %5633 }
 0x8e5   :  { %v4025_v39 = vmul.f32 %v5634_v42, %v5632_v23  ;;  %v5636_v61 = vpop.eup %5635 }
 0x8e7   :  { %v4026_v41 = vsub.f32 %v4025_v39, %v5636_v61 }
 0x8e9   :  { %v4027_v57 = vand.u32 2147483647, %v4026_v41 }
 0x8eb   :  { %4608 = vmatmul.mubr.f32.vlgmr.msra.gmra.mrb[126].mxu1 %v4027_v57 }
 0x9be   :  { %v4117_v29 = vpop.f32.mrb[126].mxu1 }
 0x9bf   :  { %v4118_v36 = vadd.f32 %v4346_v25, %v4117_v29  ;;  %v4609_v54 = vpop.f32.mrb[127].mxu1 }
 0x9c1   :  { %5637 = vtanh.f32 %v4118_v36 }
 0x9cb   :  { %v5638_v63 = vpop.eup %5637 }
 0x9cc   :  { %4643 = vmatmul.mubr.f32.vlgmr.msra.gmra.mrb[112].mxu0 %v5638_v63 }
 0xa9f   :  { %v4211_v60 = vpop.f32.mrb[112].mxu0 }
 0xaa0   :  { %v4212_v30 = vadd.f32 %v4347_v12, %v4211_v60  ;;  %v4644_v13 = vpop.f32.mrb[113].mxu0 }
 0xaa2   :  { %v4348_v1 = vmul.f32 -1.442695, %v4212_v30 }
 0xaa4   :  { %5639 = vpow2.f32 %v4348_v1 }
 0xaae   :  { %v5640_v16 = vpop.eup %5639 }
 0xaaf   :  { %v4218_v62 = vadd.f32 1.0, %v5640_v16 }
 0xab1   :  { %5641 = vrcp.f32 %v4218_v62 }
 0xabb   :  { %v5642_v26 = vpop.eup %5641 }
 0xabc   :  { %4221 = vst [vmem:[%s10207_s18] sm:$0x3] %v5642_v26 }

</bundles_post_ra>
